<compile_context>
chip_gen: v7x
topology: tpu7x:2x2x1
jax: 0.10.0
libtpu: 0.0.40
codegen_flags: <defaults>
</compile_context>

<pallas_src>
import functools

import jax
import jax.numpy as jnp
from jax import lax
from jax.experimental import pallas as pl
from jax.experimental.pallas import tpu as pltpu


def _proto_attention_kernel(
    x_ref,        # (C, N, d)        f32   tokens for the C classes of this block
    p0_ref,       # (C, P, d)        f32   initial prototypes
    wkv_ref,      # (d, 2d)          bf16  [wk | wv]
    wpk_ref,      # (d, 7d + hid)    bf16  [wq | wih | whh | w1]
    w2_ref,       # (hid, d)         bf16
    b_ref,        # (1, 12d + hid)   f32   [bq|bk|bv|bih|bhh|gamma|beta|b1|b2]
    out_ref,      # (C, P, d)        f32
    *, iters: int, eps: float):
  C, n_tok, d = x_ref.shape
  n_proto = p0_ref.shape[1]
  hid = w2_ref.shape[0]
  scale = d ** -0.5
  bf16 = jnp.bfloat16

  # Packed-bias offsets (all lane-aligned multiples of d=128 here).
  o_bk, o_bv = d, 2 * d
  o_bih, o_bhh = 3 * d, 6 * d
  o_g, o_b = 9 * d, 10 * d
  o_b1, o_b2 = 11 * d, 11 * d + hid

  # Loop-invariant loads (hoisted; fori_loop body closes over these values).
  bq = b_ref[:, 0:d]
  bk = b_ref[:, o_bk:o_bk + d]
  bv = b_ref[:, o_bv:o_bv + d]
  bih = b_ref[:, o_bih:o_bih + 3 * d]
  bhh = b_ref[:, o_bhh:o_bhh + 3 * d]
  gamma = b_ref[:, o_g:o_g + d]
  beta = b_ref[:, o_b:o_b + d]
  b1 = b_ref[:, o_b1:o_b1 + hid]
  b2 = b_ref[:, o_b2:o_b2 + d]

  # to_k / to_v: single (C*N, d) @ (d, 2d) matmul, computed once (loop invariant).
  x2 = x_ref[...].reshape(C * n_tok, d).astype(bf16)
  kv = jnp.dot(x2, wkv_ref[...], preferred_element_type=jnp.float32)
  k = (kv[:, 0:d] + bk).reshape(C, n_tok, d).astype(bf16)
  v = (kv[:, d:2 * d] + bv).reshape(C, n_tok, d).astype(bf16)

  def body(_, proto):                              # proto: (C*P, d) f32 carry
    # to_q
    q = jnp.dot(proto.astype(bf16), wpk_ref[:, 0:d],
                preferred_element_type=jnp.float32) + bq
    q3 = q.reshape(C, n_proto, d).astype(bf16)

    # dots: contract the feature axis directly (no k transpose)  -> (C, P, N)
    # NOTE: lane dim is only N=16/128 occupied; keep ops on this tensor minimal.
    dots = lax.dot_general(
        q3, k, dimension_numbers=(((2,), (2,)), ((0,), (0,))),
        preferred_element_type=jnp.float32) * scale

    # softmax over the prototype axis, +eps, renormalize over tokens (f32).
    m = jnp.max(dots, axis=1, keepdims=True)
    e = jnp.exp(dots - m)
    attn = e * pl.reciprocal(jnp.sum(e, axis=1, keepdims=True), approx=True) + eps
    attn = attn * pl.reciprocal(jnp.sum(attn, axis=-1, keepdims=True), approx=True)

    # updates = attn @ v  (per class)  -> (C*P, d)
    updates = lax.dot_general(
        attn.astype(bf16), v,
        dimension_numbers=(((2,), (1,)), ((0,), (0,))),
        preferred_element_type=jnp.float32).reshape(C * n_proto, d)

    # GRUCell(updates, proto): gate order (r, z, n); r gates the hidden-side
    # contribution including b_hn -- matches torch.nn.GRUCell.
    gi = jnp.dot(updates.astype(bf16), wpk_ref[:, d:4 * d],
                 preferred_element_type=jnp.float32) + bih
    gh = jnp.dot(proto.astype(bf16), wpk_ref[:, 4 * d:7 * d],
                 preferred_element_type=jnp.float32) + bhh
    r = jax.nn.sigmoid(gi[:, 0:d] + gh[:, 0:d])
    z = jax.nn.sigmoid(gi[:, d:2 * d] + gh[:, d:2 * d])
    n = jnp.tanh(gi[:, 2 * d:3 * d] + r * gh[:, 2 * d:3 * d])
    h = (1.0 - z) * n + z * proto

    # LayerNorm norm_pre_ff (torch default eps=1e-5), f32 statistics.
    mu = jnp.mean(h, axis=-1, keepdims=True)
    var = jnp.mean(jnp.square(h - mu), axis=-1, keepdims=True)
    h = (h - mu) * lax.rsqrt(var + 1e-5) * gamma + beta

    # residual MLP: Linear -> ReLU -> Linear
    a = jnp.maximum(
        jnp.dot(h.astype(bf16), wpk_ref[:, 7 * d:7 * d + hid],
                preferred_element_type=jnp.float32) + b1, 0.0)
    return h + jnp.dot(a.astype(bf16), w2_ref[...],
                       preferred_element_type=jnp.float32) + b2

  proto0 = p0_ref[...].reshape(C * n_proto, d)
  proto = lax.fori_loop(0, iters, body, proto0, unroll=True)
  out_ref[...] = proto.reshape(C, n_proto, d).astype(out_ref.dtype)


def proto_attention(inputs, all_proto, params, *, iters, eps,
                    classes_per_block=None):
  """inputs: (n_class, N, d); all_proto: (n_class, P, d) -> (n_class, P, d)."""
  n_class, n_tok, d = inputs.shape
  n_proto = all_proto.shape[1]
  hid = params['w1'].shape[1]

  if classes_per_block is None:
    # v7x has 2 TensorCores/chip -> keep one class per ("parallel") grid step so
    # the class axis shards across cores.  Single-TC v5e/v6e: batch all classes
    # into one grid step (drops per-step overhead, 2x MXU row occupancy).
    try:
      kind = jax.devices()[0].device_kind.lower()
    except Exception:  # pragma: no cover - detection is best-effort only
      kind = ""
    classes_per_block = 1 if ("v7" in kind or "tpu7" in kind) else n_class
  C = classes_per_block
  assert n_class % C == 0
  n_blocks = n_class // C

  bf16 = jnp.bfloat16
  # Pack weights (already [in, out]) as bf16 MXU operands, and all 1-row
  # bias/affine vectors into a single f32 buffer: 18 inputs -> 6.
  wkv = jnp.concatenate([params['wk'], params['wv']], axis=1).astype(bf16)
  wpk = jnp.concatenate(
      [params['wq'], params['wih'], params['whh'], params['w1']],
      axis=1).astype(bf16)
  w2 = params['w2'].astype(bf16)
  biases = jnp.concatenate(
      [params['bq'], params['bk'], params['bv'], params['bih'], params['bhh'],
       params['gamma'], params['beta'], params['b1'], params['b2']],
      axis=1).astype(jnp.float32)

  def fixed(shape):
    # Constant index_map: Pallas keeps the block resident across grid steps
    # (no re-DMA of the weight slabs when n_blocks > 1).
    return pl.BlockSpec(shape, lambda i: (0, 0))

  kernel = functools.partial(_proto_attention_kernel, iters=iters, eps=eps)
  return pl.pallas_call(
      kernel,
      out_shape=jax.ShapeDtypeStruct((n_class, n_proto, d), jnp.float32),
      grid=(n_blocks,),
      in_specs=[
          pl.BlockSpec((C, n_tok, d), lambda i: (i, 0, 0)),    # x block
          pl.BlockSpec((C, n_proto, d), lambda i: (i, 0, 0)),  # proto init
          fixed((d, 2 * d)),                                   # [wk | wv]
          fixed((d, 7 * d + hid)),                             # [wq|wih|whh|w1]
          fixed((hid, d)),                                     # w2
          fixed((1, 12 * d + hid)),                            # packed biases
      ],
      out_specs=pl.BlockSpec((C, n_proto, d), lambda i: (i, 0, 0)),
      compiler_params=pltpu.CompilerParams(
          dimension_semantics=("parallel",)),
  )(inputs.astype(jnp.float32), all_proto.astype(jnp.float32),
    wkv, wpk, w2, biases)


def proto_attention_reference(inputs, all_proto, params, *, iters, eps):
  """Pure-JAX f32 reference mirroring the PyTorch forward, for verification."""
  d = inputs.shape[-1]
  scale = d ** -0.5

  def one_class(x, proto):
    k = x @ params['wk'] + params['bk'][0]
    v = x @ params['wv'] + params['bv'][0]
    for _ in range(iters):
      proto_prev = proto
      q = proto @ params['wq'] + params['bq'][0]
      dots = (q @ k.T) * scale
      attn = jax.nn.softmax(dots, axis=0) + eps
      attn = attn / attn.sum(axis=-1, keepdims=True)
      updates = attn @ v
      gi = updates @ params['wih'] + params['bih'][0]
      gh = proto_prev @ params['whh'] + params['bhh'][0]
      r = jax.nn.sigmoid(gi[:, :d] + gh[:, :d])
      z = jax.nn.sigmoid(gi[:, d:2 * d] + gh[:, d:2 * d])
      n = jnp.tanh(gi[:, 2 * d:] + r * gh[:, 2 * d:])
      proto = (1.0 - z) * n + z * proto_prev
      mu = proto.mean(-1, keepdims=True)
      var = jnp.square(proto - mu).mean(-1, keepdims=True)
      proto = (proto - mu) * jax.lax.rsqrt(var + 1e-5) * params['gamma'][0] + params['beta'][0]
      h = jnp.maximum(proto @ params['w1'] + params['b1'][0], 0.0)
      proto = proto + h @ params['w2'] + params['b2'][0]
    return proto

  return jax.vmap(one_class)(inputs, all_proto)


if __name__ == "__main__":
  # Small config consistent with the module's forward.
  N_CLASS = 2       # config['data']['num_classes']
  N_PROTO = 8       # config['proto']['num']
  N_TOK = 16        # tokens per class (inputs[i] is (N, d))
  DIM = 128         # config['arch']['num_hiddens']
  HID = 128         # max(dim, config['proto']['hidden_dim'])
  ITERS = 3         # config['proto']['n_iter']
  EPS = 1e-6        # config['proto']['eps']

  key = jax.random.PRNGKey(0)
  ks = jax.random.split(key, 20)

  def w(k, shape, s=0.1):
    return (s * jax.random.normal(k, shape)).astype(jnp.float32)

  # Deterministic synthetic parameters (shapes match nn.Module __init__,
  # Linear / GRU weights stored pre-transposed as [in, out]).
  params = {
      'wq': w(ks[0], (DIM, DIM)),       'bq': w(ks[1], (1, DIM)),
      'wk': w(ks[2], (DIM, DIM)),       'bk': w(ks[3], (1, DIM)),
      'wv': w(ks[4], (DIM, DIM)),       'bv': w(ks[5], (1, DIM)),
      'wih': w(ks[6], (DIM, 3 * DIM)),  'whh': w(ks[7], (DIM, 3 * DIM)),
      'bih': w(ks[8], (1, 3 * DIM)),    'bhh': w(ks[9], (1, 3 * DIM)),
      'gamma': jnp.ones((1, DIM), jnp.float32),
      'beta': jnp.zeros((1, DIM), jnp.float32),
      'w1': w(ks[10], (DIM, HID)),      'b1': w(ks[11], (1, HID)),
      'w2': w(ks[12], (HID, DIM)),      'b2': w(ks[13], (1, DIM)),
  }

  # inputs: list of n_class tensors (N, d) -> stacked [n_class, N, d]
  inputs = jax.random.normal(ks[14], (N_CLASS, N_TOK, DIM)).astype(jnp.float32)
  # init_strategy == 'random': all_proto = self.proto  (num_classes, num_proto, dim)
  all_proto = jax.random.normal(ks[15], (N_CLASS, N_PROTO, DIM)).astype(jnp.float32)

  out = proto_attention(inputs, all_proto, params, iters=ITERS, eps=EPS)
  out = jax.block_until_ready(out)

  ref = proto_attention_reference(inputs, all_proto, params, iters=ITERS, eps=EPS)
  assert out.shape == (N_CLASS, N_PROTO, DIM)
  assert jnp.all(jnp.isfinite(out))
  max_diff = jnp.max(jnp.abs(out - ref))
  # bf16 MXU operands + approx reciprocal vs. pure-f32 reference -> loose tol.
  assert jnp.allclose(out, ref, atol=5e-2, rtol=5e-2), \
      f"max abs diff {max_diff}"

  print("KERNEL_OK")
</pallas_src>

<mosaic_0001>
module attributes {stable_mosaic.version = 11 : i64} {
  func.func @_proto_attention_kernel(%arg0: i32, %arg1: memref<2x16x128xf32, #tpu.memory_space<vmem>>, %arg2: memref<2x8x128xf32, #tpu.memory_space<vmem>>, %arg3: memref<128x256xbf16, #tpu.memory_space<vmem>>, %arg4: memref<128x1024xbf16, #tpu.memory_space<vmem>>, %arg5: memref<128x128xbf16, #tpu.memory_space<vmem>>, %arg6: memref<1x1664xf32, #tpu.memory_space<vmem>>, %arg7: memref<2x8x128xf32, #tpu.memory_space<vmem>>) attributes {dimension_semantics = [#tpu.dimension_semantics<parallel>], iteration_bounds = array<i64: 1>, scalar_prefetch = 0 : i64, scratch_operands = 0 : i64, tpu.core_type = #tpu.core_type<tc>, window_params = [{transform_indices = @transform_0, window_bounds = array<i64: 2, 16, 128>}, {transform_indices = @transform_1, window_bounds = array<i64: 2, 8, 128>}, {pipeline_mode = #tpu.pipeline_mode<synchronous>, transform_indices = @transform_2, window_bounds = array<i64: 128, 256>}, {pipeline_mode = #tpu.pipeline_mode<synchronous>, transform_indices = @transform_3, window_bounds = array<i64: 128, 1024>}, {pipeline_mode = #tpu.pipeline_mode<synchronous>, transform_indices = @transform_4, window_bounds = array<i64: 128, 128>}, {pipeline_mode = #tpu.pipeline_mode<synchronous>, transform_indices = @transform_5, window_bounds = array<i64: 1, 1664>}, {transform_indices = @transform_6, window_bounds = array<i64: 2, 8, 128>}]} {
    %c0 = arith.constant 0 : index
    %c0_0 = arith.constant 0 : index
    %0 = vector.load %arg6[%c0, %c0_0] : memref<1x1664xf32, #tpu.memory_space<vmem>>, vector<1x128xf32>
    %c0_1 = arith.constant 0 : index
    %c128 = arith.constant 128 : index
    %1 = vector.load %arg6[%c0_1, %c128] : memref<1x1664xf32, #tpu.memory_space<vmem>>, vector<1x128xf32>
    %c0_2 = arith.constant 0 : index
    %c256 = arith.constant 256 : index
    %2 = vector.load %arg6[%c0_2, %c256] : memref<1x1664xf32, #tpu.memory_space<vmem>>, vector<1x128xf32>
    %c0_3 = arith.constant 0 : index
    %c384 = arith.constant 384 : index
    %3 = vector.load %arg6[%c0_3, %c384] : memref<1x1664xf32, #tpu.memory_space<vmem>>, vector<1x384xf32>
    %c0_4 = arith.constant 0 : index
    %c768 = arith.constant 768 : index
    %4 = vector.load %arg6[%c0_4, %c768] : memref<1x1664xf32, #tpu.memory_space<vmem>>, vector<1x384xf32>
    %c0_5 = arith.constant 0 : index
    %c1152 = arith.constant 1152 : index
    %5 = vector.load %arg6[%c0_5, %c1152] : memref<1x1664xf32, #tpu.memory_space<vmem>>, vector<1x128xf32>
    %c0_6 = arith.constant 0 : index
    %c1280 = arith.constant 1280 : index
    %6 = vector.load %arg6[%c0_6, %c1280] : memref<1x1664xf32, #tpu.memory_space<vmem>>, vector<1x128xf32>
    %c0_7 = arith.constant 0 : index
    %c1408 = arith.constant 1408 : index
    %7 = vector.load %arg6[%c0_7, %c1408] : memref<1x1664xf32, #tpu.memory_space<vmem>>, vector<1x128xf32>
    %c0_8 = arith.constant 0 : index
    %c1536 = arith.constant 1536 : index
    %8 = vector.load %arg6[%c0_8, %c1536] : memref<1x1664xf32, #tpu.memory_space<vmem>>, vector<1x128xf32>
    %c0_9 = arith.constant 0 : index
    %c0_10 = arith.constant 0 : index
    %c0_11 = arith.constant 0 : index
    %9 = vector.load %arg1[%c0_9, %c0_10, %c0_11] : memref<2x16x128xf32, #tpu.memory_space<vmem>>, vector<2x16x128xf32>
    %10 = vector.shape_cast %9 : vector<2x16x128xf32> to vector<32x128xf32>
    %11 = arith.truncf %10 : vector<32x128xf32> to vector<32x128xbf16>
    %c0_12 = arith.constant 0 : index
    %c0_13 = arith.constant 0 : index
    %12 = vector.load %arg3[%c0_12, %c0_13] : memref<128x256xbf16, #tpu.memory_space<vmem>>, vector<128x256xbf16>
    %cst = arith.constant dense<0.000000e+00> : vector<32x256xf32>
    %13 = tpu.matmul %11, %12, %cst {dimension_numbers = #tpu.dot_dimension_numbers<[1], [0], [0], [1], [0, 0, 1, 1], [], []>} : vector<32x128xbf16>, vector<128x256xbf16>, vector<32x256xf32> -> vector<32x256xf32>
    %14 = vector.extract_strided_slice %13 {offsets = [0, 0], sizes = [32, 128], strides = [1, 1]} : vector<32x256xf32> to vector<32x128xf32>
    %15 = vector.broadcast %1 : vector<1x128xf32> to vector<32x128xf32>
    %16 = arith.addf %14, %15 : vector<32x128xf32>
    %17 = vector.shape_cast %16 : vector<32x128xf32> to vector<2x16x128xf32>
    %18 = arith.truncf %17 : vector<2x16x128xf32> to vector<2x16x128xbf16>
    %19 = vector.extract_strided_slice %13 {offsets = [0, 128], sizes = [32, 128], strides = [1, 1]} : vector<32x256xf32> to vector<32x128xf32>
    %20 = vector.broadcast %2 : vector<1x128xf32> to vector<32x128xf32>
    %21 = arith.addf %19, %20 : vector<32x128xf32>
    %22 = vector.shape_cast %21 : vector<32x128xf32> to vector<2x16x128xf32>
    %23 = arith.truncf %22 : vector<2x16x128xf32> to vector<2x16x128xbf16>
    %c0_14 = arith.constant 0 : index
    %c0_15 = arith.constant 0 : index
    %c0_16 = arith.constant 0 : index
    %24 = vector.load %arg2[%c0_14, %c0_15, %c0_16] : memref<2x8x128xf32, #tpu.memory_space<vmem>>, vector<2x8x128xf32>
    %25 = vector.shape_cast %24 : vector<2x8x128xf32> to vector<16x128xf32>
    %c0_i32 = arith.constant 0 : i32
    %26 = arith.truncf %25 : vector<16x128xf32> to vector<16x128xbf16>
    %c0_17 = arith.constant 0 : index
    %c0_18 = arith.constant 0 : index
    %27 = vector.load %arg4[%c0_17, %c0_18] : memref<128x1024xbf16, #tpu.memory_space<vmem>>, vector<128x128xbf16>
    %cst_19 = arith.constant dense<0.000000e+00> : vector<16x128xf32>
    %28 = tpu.matmul %26, %27, %cst_19 {dimension_numbers = #tpu.dot_dimension_numbers<[1], [0], [0], [1], [0, 0, 1, 1], [], []>} : vector<16x128xbf16>, vector<128x128xbf16>, vector<16x128xf32> -> vector<16x128xf32>
    %29 = vector.broadcast %0 : vector<1x128xf32> to vector<16x128xf32>
    %30 = arith.addf %28, %29 : vector<16x128xf32>
    %31 = vector.shape_cast %30 : vector<16x128xf32> to vector<2x8x128xf32>
    %32 = arith.truncf %31 : vector<2x8x128xf32> to vector<2x8x128xbf16>
    %cst_20 = arith.constant dense<0.000000e+00> : vector<2x8x16xf32>
    %33 = tpu.matmul %32, %18, %cst_20 {dimension_numbers = #tpu.dot_dimension_numbers<[2], [2], [1], [1], [0, 0, 0, 1, 1, 1], [0], [0]>} : vector<2x8x128xbf16>, vector<2x16x128xbf16>, vector<2x8x16xf32> -> vector<2x8x16xf32>
    %cst_21 = arith.constant 0.0883883461 : f32
    %34 = vector.broadcast %cst_21 : f32 to vector<2x8x16xf32>
    %35 = arith.mulf %33, %34 : vector<2x8x16xf32>
    %cst_22 = arith.constant dense<0xFF800000> : vector<2x16xf32>
    %36 = vector.multi_reduction <maximumf>, %35, %cst_22 [1] : vector<2x8x16xf32> to vector<2x16xf32>
    %37 = vector.shape_cast %36 : vector<2x16xf32> to vector<2x1x16xf32>
    %38 = vector.broadcast %37 : vector<2x1x16xf32> to vector<2x8x16xf32>
    %39 = arith.subf %35, %38 : vector<2x8x16xf32>
    %40 = math.exp %39 : vector<2x8x16xf32>
    %cst_23 = arith.constant dense<0.000000e+00> : vector<2x16xf32>
    %41 = vector.multi_reduction <add>, %40, %cst_23 [1] : vector<2x8x16xf32> to vector<2x16xf32>
    %42 = vector.shape_cast %41 : vector<2x16xf32> to vector<2x1x16xf32>
    %43 = tpu.reciprocal %42 {approx = true} : vector<2x1x16xf32> -> vector<2x1x16xf32>
    %44 = vector.broadcast %43 : vector<2x1x16xf32> to vector<2x8x16xf32>
    %45 = arith.mulf %40, %44 : vector<2x8x16xf32>
    %cst_24 = arith.constant 9.99999997E-7 : f32
    %46 = vector.broadcast %cst_24 : f32 to vector<2x8x16xf32>
    %47 = arith.addf %45, %46 : vector<2x8x16xf32>
    %cst_25 = arith.constant dense<0.000000e+00> : vector<2x8xf32>
    %48 = vector.multi_reduction <add>, %47, %cst_25 [2] : vector<2x8x16xf32> to vector<2x8xf32>
    %49 = vector.shape_cast %48 : vector<2x8xf32> to vector<2x8x1xf32>
    %50 = tpu.reciprocal %49 {approx = true} : vector<2x8x1xf32> -> vector<2x8x1xf32>
    %51 = vector.broadcast %50 : vector<2x8x1xf32> to vector<2x8x16xf32>
    %52 = arith.mulf %47, %51 : vector<2x8x16xf32>
    %53 = arith.truncf %52 : vector<2x8x16xf32> to vector<2x8x16xbf16>
    %cst_26 = arith.constant dense<0.000000e+00> : vector<2x8x128xf32>
    %54 = tpu.matmul %53, %23, %cst_26 {dimension_numbers = #tpu.dot_dimension_numbers<[2], [1], [1], [2], [0, 0, 0, 1, 1, 2], [0], [0]>} : vector<2x8x16xbf16>, vector<2x16x128xbf16>, vector<2x8x128xf32> -> vector<2x8x128xf32>
    %55 = vector.shape_cast %54 : vector<2x8x128xf32> to vector<16x128xf32>
    %56 = arith.truncf %55 : vector<16x128xf32> to vector<16x128xbf16>
    %c0_27 = arith.constant 0 : index
    %c128_28 = arith.constant 128 : index
    %57 = vector.load %arg4[%c0_27, %c128_28] : memref<128x1024xbf16, #tpu.memory_space<vmem>>, vector<128x384xbf16>
    %cst_29 = arith.constant dense<0.000000e+00> : vector<16x384xf32>
    %58 = tpu.matmul %56, %57, %cst_29 {dimension_numbers = #tpu.dot_dimension_numbers<[1], [0], [0], [1], [0, 0, 1, 1], [], []>} : vector<16x128xbf16>, vector<128x384xbf16>, vector<16x384xf32> -> vector<16x384xf32>
    %59 = vector.broadcast %3 : vector<1x384xf32> to vector<16x384xf32>
    %60 = arith.addf %58, %59 : vector<16x384xf32>
    %61 = arith.truncf %25 : vector<16x128xf32> to vector<16x128xbf16>
    %c0_30 = arith.constant 0 : index
    %c512 = arith.constant 512 : index
    %62 = vector.load %arg4[%c0_30, %c512] : memref<128x1024xbf16, #tpu.memory_space<vmem>>, vector<128x384xbf16>
    %cst_31 = arith.constant dense<0.000000e+00> : vector<16x384xf32>
    %63 = tpu.matmul %61, %62, %cst_31 {dimension_numbers = #tpu.dot_dimension_numbers<[1], [0], [0], [1], [0, 0, 1, 1], [], []>} : vector<16x128xbf16>, vector<128x384xbf16>, vector<16x384xf32> -> vector<16x384xf32>
    %64 = vector.broadcast %4 : vector<1x384xf32> to vector<16x384xf32>
    %65 = arith.addf %63, %64 : vector<16x384xf32>
    %66 = vector.extract_strided_slice %60 {offsets = [0, 0], sizes = [16, 128], strides = [1, 1]} : vector<16x384xf32> to vector<16x128xf32>
    %67 = vector.extract_strided_slice %65 {offsets = [0, 0], sizes = [16, 128], strides = [1, 1]} : vector<16x384xf32> to vector<16x128xf32>
    %68 = arith.addf %66, %67 : vector<16x128xf32>
    %69 = arith.negf %68 : vector<16x128xf32>
    %70 = math.exp %69 : vector<16x128xf32>
    %cst_32 = arith.constant 1.000000e+00 : f32
    %71 = vector.broadcast %cst_32 : f32 to vector<16x128xf32>
    %72 = arith.addf %71, %70 : vector<16x128xf32>
    %73 = arith.divf %71, %72 : vector<16x128xf32>
    %74 = vector.extract_strided_slice %60 {offsets = [0, 128], sizes = [16, 128], strides = [1, 1]} : vector<16x384xf32> to vector<16x128xf32>
    %75 = vector.extract_strided_slice %65 {offsets = [0, 128], sizes = [16, 128], strides = [1, 1]} : vector<16x384xf32> to vector<16x128xf32>
    %76 = arith.addf %74, %75 : vector<16x128xf32>
    %77 = arith.negf %76 : vector<16x128xf32>
    %78 = math.exp %77 : vector<16x128xf32>
    %cst_33 = arith.constant 1.000000e+00 : f32
    %79 = vector.broadcast %cst_33 : f32 to vector<16x128xf32>
    %80 = arith.addf %79, %78 : vector<16x128xf32>
    %81 = arith.divf %79, %80 : vector<16x128xf32>
    %82 = vector.extract_strided_slice %60 {offsets = [0, 256], sizes = [16, 128], strides = [1, 1]} : vector<16x384xf32> to vector<16x128xf32>
    %83 = vector.extract_strided_slice %65 {offsets = [0, 256], sizes = [16, 128], strides = [1, 1]} : vector<16x384xf32> to vector<16x128xf32>
    %84 = arith.mulf %73, %83 : vector<16x128xf32>
    %85 = arith.addf %82, %84 : vector<16x128xf32>
    %86 = math.tanh %85 : vector<16x128xf32>
    %cst_34 = arith.constant 1.000000e+00 : f32
    %87 = vector.broadcast %cst_34 : f32 to vector<16x128xf32>
    %88 = arith.subf %87, %81 : vector<16x128xf32>
    %89 = arith.mulf %88, %86 : vector<16x128xf32>
    %90 = arith.mulf %81, %25 : vector<16x128xf32>
    %91 = arith.addf %89, %90 : vector<16x128xf32>
    %cst_35 = arith.constant dense<0.000000e+00> : vector<16xf32>
    %92 = vector.multi_reduction <add>, %91, %cst_35 [1] : vector<16x128xf32> to vector<16xf32>
    %93 = vector.shape_cast %92 : vector<16xf32> to vector<16x1xf32>
    %cst_36 = arith.constant 1.280000e+02 : f32
    %94 = vector.broadcast %cst_36 : f32 to vector<16x1xf32>
    %95 = arith.divf %93, %94 : vector<16x1xf32>
    %96 = vector.broadcast %95 : vector<16x1xf32> to vector<16x128xf32>
    %97 = arith.subf %91, %96 : vector<16x128xf32>
    %98 = arith.mulf %97, %97 : vector<16x128xf32>
    %cst_37 = arith.constant dense<0.000000e+00> : vector<16xf32>
    %99 = vector.multi_reduction <add>, %98, %cst_37 [1] : vector<16x128xf32> to vector<16xf32>
    %100 = vector.shape_cast %99 : vector<16xf32> to vector<16x1xf32>
    %cst_38 = arith.constant 1.280000e+02 : f32
    %101 = vector.broadcast %cst_38 : f32 to vector<16x1xf32>
    %102 = arith.divf %100, %101 : vector<16x1xf32>
    %103 = vector.broadcast %95 : vector<16x1xf32> to vector<16x128xf32>
    %104 = arith.subf %91, %103 : vector<16x128xf32>
    %cst_39 = arith.constant 9.99999974E-6 : f32
    %105 = vector.broadcast %cst_39 : f32 to vector<16x1xf32>
    %106 = arith.addf %102, %105 : vector<16x1xf32>
    %107 = math.rsqrt %106 : vector<16x1xf32>
    %108 = vector.broadcast %107 : vector<16x1xf32> to vector<16x128xf32>
    %109 = arith.mulf %104, %108 : vector<16x128xf32>
    %110 = vector.broadcast %5 : vector<1x128xf32> to vector<16x128xf32>
    %111 = arith.mulf %109, %110 : vector<16x128xf32>
    %112 = vector.broadcast %6 : vector<1x128xf32> to vector<16x128xf32>
    %113 = arith.addf %111, %112 : vector<16x128xf32>
    %114 = arith.truncf %113 : vector<16x128xf32> to vector<16x128xbf16>
    %c0_40 = arith.constant 0 : index
    %c896 = arith.constant 896 : index
    %115 = vector.load %arg4[%c0_40, %c896] : memref<128x1024xbf16, #tpu.memory_space<vmem>>, vector<128x128xbf16>
    %cst_41 = arith.constant dense<0.000000e+00> : vector<16x128xf32>
    %116 = tpu.matmul %114, %115, %cst_41 {dimension_numbers = #tpu.dot_dimension_numbers<[1], [0], [0], [1], [0, 0, 1, 1], [], []>} : vector<16x128xbf16>, vector<128x128xbf16>, vector<16x128xf32> -> vector<16x128xf32>
    %117 = vector.broadcast %7 : vector<1x128xf32> to vector<16x128xf32>
    %118 = arith.addf %116, %117 : vector<16x128xf32>
    %cst_42 = arith.constant 0.000000e+00 : f32
    %119 = vector.broadcast %cst_42 : f32 to vector<16x128xf32>
    %120 = arith.maximumf %118, %119 : vector<16x128xf32>
    %121 = arith.truncf %120 : vector<16x128xf32> to vector<16x128xbf16>
    %c0_43 = arith.constant 0 : index
    %c0_44 = arith.constant 0 : index
    %122 = vector.load %arg5[%c0_43, %c0_44] : memref<128x128xbf16, #tpu.memory_space<vmem>>, vector<128x128xbf16>
    %cst_45 = arith.constant dense<0.000000e+00> : vector<16x128xf32>
    %123 = tpu.matmul %121, %122, %cst_45 {dimension_numbers = #tpu.dot_dimension_numbers<[1], [0], [0], [1], [0, 0, 1, 1], [], []>} : vector<16x128xbf16>, vector<128x128xbf16>, vector<16x128xf32> -> vector<16x128xf32>
    %124 = arith.addf %113, %123 : vector<16x128xf32>
    %125 = vector.broadcast %8 : vector<1x128xf32> to vector<16x128xf32>
    %126 = arith.addf %124, %125 : vector<16x128xf32>
    %c1_i32 = arith.constant 1 : i32
    %127 = arith.truncf %126 : vector<16x128xf32> to vector<16x128xbf16>
    %c0_46 = arith.constant 0 : index
    %c0_47 = arith.constant 0 : index
    %128 = vector.load %arg4[%c0_46, %c0_47] : memref<128x1024xbf16, #tpu.memory_space<vmem>>, vector<128x128xbf16>
    %cst_48 = arith.constant dense<0.000000e+00> : vector<16x128xf32>
    %129 = tpu.matmul %127, %128, %cst_48 {dimension_numbers = #tpu.dot_dimension_numbers<[1], [0], [0], [1], [0, 0, 1, 1], [], []>} : vector<16x128xbf16>, vector<128x128xbf16>, vector<16x128xf32> -> vector<16x128xf32>
    %130 = vector.broadcast %0 : vector<1x128xf32> to vector<16x128xf32>
    %131 = arith.addf %129, %130 : vector<16x128xf32>
    %132 = vector.shape_cast %131 : vector<16x128xf32> to vector<2x8x128xf32>
    %133 = arith.truncf %132 : vector<2x8x128xf32> to vector<2x8x128xbf16>
    %cst_49 = arith.constant dense<0.000000e+00> : vector<2x8x16xf32>
    %134 = tpu.matmul %133, %18, %cst_49 {dimension_numbers = #tpu.dot_dimension_numbers<[2], [2], [1], [1], [0, 0, 0, 1, 1, 1], [0], [0]>} : vector<2x8x128xbf16>, vector<2x16x128xbf16>, vector<2x8x16xf32> -> vector<2x8x16xf32>
    %cst_50 = arith.constant 0.0883883461 : f32
    %135 = vector.broadcast %cst_50 : f32 to vector<2x8x16xf32>
    %136 = arith.mulf %134, %135 : vector<2x8x16xf32>
    %cst_51 = arith.constant dense<0xFF800000> : vector<2x16xf32>
    %137 = vector.multi_reduction <maximumf>, %136, %cst_51 [1] : vector<2x8x16xf32> to vector<2x16xf32>
    %138 = vector.shape_cast %137 : vector<2x16xf32> to vector<2x1x16xf32>
    %139 = vector.broadcast %138 : vector<2x1x16xf32> to vector<2x8x16xf32>
    %140 = arith.subf %136, %139 : vector<2x8x16xf32>
    %141 = math.exp %140 : vector<2x8x16xf32>
    %cst_52 = arith.constant dense<0.000000e+00> : vector<2x16xf32>
    %142 = vector.multi_reduction <add>, %141, %cst_52 [1] : vector<2x8x16xf32> to vector<2x16xf32>
    %143 = vector.shape_cast %142 : vector<2x16xf32> to vector<2x1x16xf32>
    %144 = tpu.reciprocal %143 {approx = true} : vector<2x1x16xf32> -> vector<2x1x16xf32>
    %145 = vector.broadcast %144 : vector<2x1x16xf32> to vector<2x8x16xf32>
    %146 = arith.mulf %141, %145 : vector<2x8x16xf32>
    %cst_53 = arith.constant 9.99999997E-7 : f32
    %147 = vector.broadcast %cst_53 : f32 to vector<2x8x16xf32>
    %148 = arith.addf %146, %147 : vector<2x8x16xf32>
    %cst_54 = arith.constant dense<0.000000e+00> : vector<2x8xf32>
    %149 = vector.multi_reduction <add>, %148, %cst_54 [2] : vector<2x8x16xf32> to vector<2x8xf32>
    %150 = vector.shape_cast %149 : vector<2x8xf32> to vector<2x8x1xf32>
    %151 = tpu.reciprocal %150 {approx = true} : vector<2x8x1xf32> -> vector<2x8x1xf32>
    %152 = vector.broadcast %151 : vector<2x8x1xf32> to vector<2x8x16xf32>
    %153 = arith.mulf %148, %152 : vector<2x8x16xf32>
    %154 = arith.truncf %153 : vector<2x8x16xf32> to vector<2x8x16xbf16>
    %cst_55 = arith.constant dense<0.000000e+00> : vector<2x8x128xf32>
    %155 = tpu.matmul %154, %23, %cst_55 {dimension_numbers = #tpu.dot_dimension_numbers<[2], [1], [1], [2], [0, 0, 0, 1, 1, 2], [0], [0]>} : vector<2x8x16xbf16>, vector<2x16x128xbf16>, vector<2x8x128xf32> -> vector<2x8x128xf32>
    %156 = vector.shape_cast %155 : vector<2x8x128xf32> to vector<16x128xf32>
    %157 = arith.truncf %156 : vector<16x128xf32> to vector<16x128xbf16>
    %c0_56 = arith.constant 0 : index
    %c128_57 = arith.constant 128 : index
    %158 = vector.load %arg4[%c0_56, %c128_57] : memref<128x1024xbf16, #tpu.memory_space<vmem>>, vector<128x384xbf16>
    %cst_58 = arith.constant dense<0.000000e+00> : vector<16x384xf32>
    %159 = tpu.matmul %157, %158, %cst_58 {dimension_numbers = #tpu.dot_dimension_numbers<[1], [0], [0], [1], [0, 0, 1, 1], [], []>} : vector<16x128xbf16>, vector<128x384xbf16>, vector<16x384xf32> -> vector<16x384xf32>
    %160 = vector.broadcast %3 : vector<1x384xf32> to vector<16x384xf32>
    %161 = arith.addf %159, %160 : vector<16x384xf32>
    %162 = arith.truncf %126 : vector<16x128xf32> to vector<16x128xbf16>
    %c0_59 = arith.constant 0 : index
    %c512_60 = arith.constant 512 : index
    %163 = vector.load %arg4[%c0_59, %c512_60] : memref<128x1024xbf16, #tpu.memory_space<vmem>>, vector<128x384xbf16>
    %cst_61 = arith.constant dense<0.000000e+00> : vector<16x384xf32>
    %164 = tpu.matmul %162, %163, %cst_61 {dimension_numbers = #tpu.dot_dimension_numbers<[1], [0], [0], [1], [0, 0, 1, 1], [], []>} : vector<16x128xbf16>, vector<128x384xbf16>, vector<16x384xf32> -> vector<16x384xf32>
    %165 = vector.broadcast %4 : vector<1x384xf32> to vector<16x384xf32>
    %166 = arith.addf %164, %165 : vector<16x384xf32>
    %167 = vector.extract_strided_slice %161 {offsets = [0, 0], sizes = [16, 128], strides = [1, 1]} : vector<16x384xf32> to vector<16x128xf32>
    %168 = vector.extract_strided_slice %166 {offsets = [0, 0], sizes = [16, 128], strides = [1, 1]} : vector<16x384xf32> to vector<16x128xf32>
    %169 = arith.addf %167, %168 : vector<16x128xf32>
    %170 = arith.negf %169 : vector<16x128xf32>
    %171 = math.exp %170 : vector<16x128xf32>
    %cst_62 = arith.constant 1.000000e+00 : f32
    %172 = vector.broadcast %cst_62 : f32 to vector<16x128xf32>
    %173 = arith.addf %172, %171 : vector<16x128xf32>
    %174 = arith.divf %172, %173 : vector<16x128xf32>
    %175 = vector.extract_strided_slice %161 {offsets = [0, 128], sizes = [16, 128], strides = [1, 1]} : vector<16x384xf32> to vector<16x128xf32>
    %176 = vector.extract_strided_slice %166 {offsets = [0, 128], sizes = [16, 128], strides = [1, 1]} : vector<16x384xf32> to vector<16x128xf32>
    %177 = arith.addf %175, %176 : vector<16x128xf32>
    %178 = arith.negf %177 : vector<16x128xf32>
    %179 = math.exp %178 : vector<16x128xf32>
    %cst_63 = arith.constant 1.000000e+00 : f32
    %180 = vector.broadcast %cst_63 : f32 to vector<16x128xf32>
    %181 = arith.addf %180, %179 : vector<16x128xf32>
    %182 = arith.divf %180, %181 : vector<16x128xf32>
    %183 = vector.extract_strided_slice %161 {offsets = [0, 256], sizes = [16, 128], strides = [1, 1]} : vector<16x384xf32> to vector<16x128xf32>
    %184 = vector.extract_strided_slice %166 {offsets = [0, 256], sizes = [16, 128], strides = [1, 1]} : vector<16x384xf32> to vector<16x128xf32>
    %185 = arith.mulf %174, %184 : vector<16x128xf32>
    %186 = arith.addf %183, %185 : vector<16x128xf32>
    %187 = math.tanh %186 : vector<16x128xf32>
    %cst_64 = arith.constant 1.000000e+00 : f32
    %188 = vector.broadcast %cst_64 : f32 to vector<16x128xf32>
    %189 = arith.subf %188, %182 : vector<16x128xf32>
    %190 = arith.mulf %189, %187 : vector<16x128xf32>
    %191 = arith.mulf %182, %126 : vector<16x128xf32>
    %192 = arith.addf %190, %191 : vector<16x128xf32>
    %cst_65 = arith.constant dense<0.000000e+00> : vector<16xf32>
    %193 = vector.multi_reduction <add>, %192, %cst_65 [1] : vector<16x128xf32> to vector<16xf32>
    %194 = vector.shape_cast %193 : vector<16xf32> to vector<16x1xf32>
    %cst_66 = arith.constant 1.280000e+02 : f32
    %195 = vector.broadcast %cst_66 : f32 to vector<16x1xf32>
    %196 = arith.divf %194, %195 : vector<16x1xf32>
    %197 = vector.broadcast %196 : vector<16x1xf32> to vector<16x128xf32>
    %198 = arith.subf %192, %197 : vector<16x128xf32>
    %199 = arith.mulf %198, %198 : vector<16x128xf32>
    %cst_67 = arith.constant dense<0.000000e+00> : vector<16xf32>
    %200 = vector.multi_reduction <add>, %199, %cst_67 [1] : vector<16x128xf32> to vector<16xf32>
    %201 = vector.shape_cast %200 : vector<16xf32> to vector<16x1xf32>
    %cst_68 = arith.constant 1.280000e+02 : f32
    %202 = vector.broadcast %cst_68 : f32 to vector<16x1xf32>
    %203 = arith.divf %201, %202 : vector<16x1xf32>
    %204 = vector.broadcast %196 : vector<16x1xf32> to vector<16x128xf32>
    %205 = arith.subf %192, %204 : vector<16x128xf32>
    %cst_69 = arith.constant 9.99999974E-6 : f32
    %206 = vector.broadcast %cst_69 : f32 to vector<16x1xf32>
    %207 = arith.addf %203, %206 : vector<16x1xf32>
    %208 = math.rsqrt %207 : vector<16x1xf32>
    %209 = vector.broadcast %208 : vector<16x1xf32> to vector<16x128xf32>
    %210 = arith.mulf %205, %209 : vector<16x128xf32>
    %211 = vector.broadcast %5 : vector<1x128xf32> to vector<16x128xf32>
    %212 = arith.mulf %210, %211 : vector<16x128xf32>
    %213 = vector.broadcast %6 : vector<1x128xf32> to vector<16x128xf32>
    %214 = arith.addf %212, %213 : vector<16x128xf32>
    %215 = arith.truncf %214 : vector<16x128xf32> to vector<16x128xbf16>
    %c0_70 = arith.constant 0 : index
    %c896_71 = arith.constant 896 : index
    %216 = vector.load %arg4[%c0_70, %c896_71] : memref<128x1024xbf16, #tpu.memory_space<vmem>>, vector<128x128xbf16>
    %cst_72 = arith.constant dense<0.000000e+00> : vector<16x128xf32>
    %217 = tpu.matmul %215, %216, %cst_72 {dimension_numbers = #tpu.dot_dimension_numbers<[1], [0], [0], [1], [0, 0, 1, 1], [], []>} : vector<16x128xbf16>, vector<128x128xbf16>, vector<16x128xf32> -> vector<16x128xf32>
    %218 = vector.broadcast %7 : vector<1x128xf32> to vector<16x128xf32>
    %219 = arith.addf %217, %218 : vector<16x128xf32>
    %cst_73 = arith.constant 0.000000e+00 : f32
    %220 = vector.broadcast %cst_73 : f32 to vector<16x128xf32>
    %221 = arith.maximumf %219, %220 : vector<16x128xf32>
    %222 = arith.truncf %221 : vector<16x128xf32> to vector<16x128xbf16>
    %c0_74 = arith.constant 0 : index
    %c0_75 = arith.constant 0 : index
    %223 = vector.load %arg5[%c0_74, %c0_75] : memref<128x128xbf16, #tpu.memory_space<vmem>>, vector<128x128xbf16>
    %cst_76 = arith.constant dense<0.000000e+00> : vector<16x128xf32>
    %224 = tpu.matmul %222, %223, %cst_76 {dimension_numbers = #tpu.dot_dimension_numbers<[1], [0], [0], [1], [0, 0, 1, 1], [], []>} : vector<16x128xbf16>, vector<128x128xbf16>, vector<16x128xf32> -> vector<16x128xf32>
    %225 = arith.addf %214, %224 : vector<16x128xf32>
    %226 = vector.broadcast %8 : vector<1x128xf32> to vector<16x128xf32>
    %227 = arith.addf %225, %226 : vector<16x128xf32>
    %c2_i32 = arith.constant 2 : i32
    %228 = arith.truncf %227 : vector<16x128xf32> to vector<16x128xbf16>
    %c0_77 = arith.constant 0 : index
    %c0_78 = arith.constant 0 : index
    %229 = vector.load %arg4[%c0_77, %c0_78] : memref<128x1024xbf16, #tpu.memory_space<vmem>>, vector<128x128xbf16>
    %cst_79 = arith.constant dense<0.000000e+00> : vector<16x128xf32>
    %230 = tpu.matmul %228, %229, %cst_79 {dimension_numbers = #tpu.dot_dimension_numbers<[1], [0], [0], [1], [0, 0, 1, 1], [], []>} : vector<16x128xbf16>, vector<128x128xbf16>, vector<16x128xf32> -> vector<16x128xf32>
    %231 = vector.broadcast %0 : vector<1x128xf32> to vector<16x128xf32>
    %232 = arith.addf %230, %231 : vector<16x128xf32>
    %233 = vector.shape_cast %232 : vector<16x128xf32> to vector<2x8x128xf32>
    %234 = arith.truncf %233 : vector<2x8x128xf32> to vector<2x8x128xbf16>
    %cst_80 = arith.constant dense<0.000000e+00> : vector<2x8x16xf32>
    %235 = tpu.matmul %234, %18, %cst_80 {dimension_numbers = #tpu.dot_dimension_numbers<[2], [2], [1], [1], [0, 0, 0, 1, 1, 1], [0], [0]>} : vector<2x8x128xbf16>, vector<2x16x128xbf16>, vector<2x8x16xf32> -> vector<2x8x16xf32>
    %cst_81 = arith.constant 0.0883883461 : f32
    %236 = vector.broadcast %cst_81 : f32 to vector<2x8x16xf32>
    %237 = arith.mulf %235, %236 : vector<2x8x16xf32>
    %cst_82 = arith.constant dense<0xFF800000> : vector<2x16xf32>
    %238 = vector.multi_reduction <maximumf>, %237, %cst_82 [1] : vector<2x8x16xf32> to vector<2x16xf32>
    %239 = vector.shape_cast %238 : vector<2x16xf32> to vector<2x1x16xf32>
    %240 = vector.broadcast %239 : vector<2x1x16xf32> to vector<2x8x16xf32>
    %241 = arith.subf %237, %240 : vector<2x8x16xf32>
    %242 = math.exp %241 : vector<2x8x16xf32>
    %cst_83 = arith.constant dense<0.000000e+00> : vector<2x16xf32>
    %243 = vector.multi_reduction <add>, %242, %cst_83 [1] : vector<2x8x16xf32> to vector<2x16xf32>
    %244 = vector.shape_cast %243 : vector<2x16xf32> to vector<2x1x16xf32>
    %245 = tpu.reciprocal %244 {approx = true} : vector<2x1x16xf32> -> vector<2x1x16xf32>
    %246 = vector.broadcast %245 : vector<2x1x16xf32> to vector<2x8x16xf32>
    %247 = arith.mulf %242, %246 : vector<2x8x16xf32>
    %cst_84 = arith.constant 9.99999997E-7 : f32
    %248 = vector.broadcast %cst_84 : f32 to vector<2x8x16xf32>
    %249 = arith.addf %247, %248 : vector<2x8x16xf32>
    %cst_85 = arith.constant dense<0.000000e+00> : vector<2x8xf32>
    %250 = vector.multi_reduction <add>, %249, %cst_85 [2] : vector<2x8x16xf32> to vector<2x8xf32>
    %251 = vector.shape_cast %250 : vector<2x8xf32> to vector<2x8x1xf32>
    %252 = tpu.reciprocal %251 {approx = true} : vector<2x8x1xf32> -> vector<2x8x1xf32>
    %253 = vector.broadcast %252 : vector<2x8x1xf32> to vector<2x8x16xf32>
    %254 = arith.mulf %249, %253 : vector<2x8x16xf32>
    %255 = arith.truncf %254 : vector<2x8x16xf32> to vector<2x8x16xbf16>
    %cst_86 = arith.constant dense<0.000000e+00> : vector<2x8x128xf32>
    %256 = tpu.matmul %255, %23, %cst_86 {dimension_numbers = #tpu.dot_dimension_numbers<[2], [1], [1], [2], [0, 0, 0, 1, 1, 2], [0], [0]>} : vector<2x8x16xbf16>, vector<2x16x128xbf16>, vector<2x8x128xf32> -> vector<2x8x128xf32>
    %257 = vector.shape_cast %256 : vector<2x8x128xf32> to vector<16x128xf32>
    %258 = arith.truncf %257 : vector<16x128xf32> to vector<16x128xbf16>
    %c0_87 = arith.constant 0 : index
    %c128_88 = arith.constant 128 : index
    %259 = vector.load %arg4[%c0_87, %c128_88] : memref<128x1024xbf16, #tpu.memory_space<vmem>>, vector<128x384xbf16>
    %cst_89 = arith.constant dense<0.000000e+00> : vector<16x384xf32>
    %260 = tpu.matmul %258, %259, %cst_89 {dimension_numbers = #tpu.dot_dimension_numbers<[1], [0], [0], [1], [0, 0, 1, 1], [], []>} : vector<16x128xbf16>, vector<128x384xbf16>, vector<16x384xf32> -> vector<16x384xf32>
    %261 = vector.broadcast %3 : vector<1x384xf32> to vector<16x384xf32>
    %262 = arith.addf %260, %261 : vector<16x384xf32>
    %263 = arith.truncf %227 : vector<16x128xf32> to vector<16x128xbf16>
    %c0_90 = arith.constant 0 : index
    %c512_91 = arith.constant 512 : index
    %264 = vector.load %arg4[%c0_90, %c512_91] : memref<128x1024xbf16, #tpu.memory_space<vmem>>, vector<128x384xbf16>
    %cst_92 = arith.constant dense<0.000000e+00> : vector<16x384xf32>
    %265 = tpu.matmul %263, %264, %cst_92 {dimension_numbers = #tpu.dot_dimension_numbers<[1], [0], [0], [1], [0, 0, 1, 1], [], []>} : vector<16x128xbf16>, vector<128x384xbf16>, vector<16x384xf32> -> vector<16x384xf32>
    %266 = vector.broadcast %4 : vector<1x384xf32> to vector<16x384xf32>
    %267 = arith.addf %265, %266 : vector<16x384xf32>
    %268 = vector.extract_strided_slice %262 {offsets = [0, 0], sizes = [16, 128], strides = [1, 1]} : vector<16x384xf32> to vector<16x128xf32>
    %269 = vector.extract_strided_slice %267 {offsets = [0, 0], sizes = [16, 128], strides = [1, 1]} : vector<16x384xf32> to vector<16x128xf32>
    %270 = arith.addf %268, %269 : vector<16x128xf32>
    %271 = arith.negf %270 : vector<16x128xf32>
    %272 = math.exp %271 : vector<16x128xf32>
    %cst_93 = arith.constant 1.000000e+00 : f32
    %273 = vector.broadcast %cst_93 : f32 to vector<16x128xf32>
    %274 = arith.addf %273, %272 : vector<16x128xf32>
    %275 = arith.divf %273, %274 : vector<16x128xf32>
    %276 = vector.extract_strided_slice %262 {offsets = [0, 128], sizes = [16, 128], strides = [1, 1]} : vector<16x384xf32> to vector<16x128xf32>
    %277 = vector.extract_strided_slice %267 {offsets = [0, 128], sizes = [16, 128], strides = [1, 1]} : vector<16x384xf32> to vector<16x128xf32>
    %278 = arith.addf %276, %277 : vector<16x128xf32>
    %279 = arith.negf %278 : vector<16x128xf32>
    %280 = math.exp %279 : vector<16x128xf32>
    %cst_94 = arith.constant 1.000000e+00 : f32
    %281 = vector.broadcast %cst_94 : f32 to vector<16x128xf32>
    %282 = arith.addf %281, %280 : vector<16x128xf32>
    %283 = arith.divf %281, %282 : vector<16x128xf32>
    %284 = vector.extract_strided_slice %262 {offsets = [0, 256], sizes = [16, 128], strides = [1, 1]} : vector<16x384xf32> to vector<16x128xf32>
    %285 = vector.extract_strided_slice %267 {offsets = [0, 256], sizes = [16, 128], strides = [1, 1]} : vector<16x384xf32> to vector<16x128xf32>
    %286 = arith.mulf %275, %285 : vector<16x128xf32>
    %287 = arith.addf %284, %286 : vector<16x128xf32>
    %288 = math.tanh %287 : vector<16x128xf32>
    %cst_95 = arith.constant 1.000000e+00 : f32
    %289 = vector.broadcast %cst_95 : f32 to vector<16x128xf32>
    %290 = arith.subf %289, %283 : vector<16x128xf32>
    %291 = arith.mulf %290, %288 : vector<16x128xf32>
    %292 = arith.mulf %283, %227 : vector<16x128xf32>
    %293 = arith.addf %291, %292 : vector<16x128xf32>
    %cst_96 = arith.constant dense<0.000000e+00> : vector<16xf32>
    %294 = vector.multi_reduction <add>, %293, %cst_96 [1] : vector<16x128xf32> to vector<16xf32>
    %295 = vector.shape_cast %294 : vector<16xf32> to vector<16x1xf32>
    %cst_97 = arith.constant 1.280000e+02 : f32
    %296 = vector.broadcast %cst_97 : f32 to vector<16x1xf32>
    %297 = arith.divf %295, %296 : vector<16x1xf32>
    %298 = vector.broadcast %297 : vector<16x1xf32> to vector<16x128xf32>
    %299 = arith.subf %293, %298 : vector<16x128xf32>
    %300 = arith.mulf %299, %299 : vector<16x128xf32>
    %cst_98 = arith.constant dense<0.000000e+00> : vector<16xf32>
    %301 = vector.multi_reduction <add>, %300, %cst_98 [1] : vector<16x128xf32> to vector<16xf32>
    %302 = vector.shape_cast %301 : vector<16xf32> to vector<16x1xf32>
    %cst_99 = arith.constant 1.280000e+02 : f32
    %303 = vector.broadcast %cst_99 : f32 to vector<16x1xf32>
    %304 = arith.divf %302, %303 : vector<16x1xf32>
    %305 = vector.broadcast %297 : vector<16x1xf32> to vector<16x128xf32>
    %306 = arith.subf %293, %305 : vector<16x128xf32>
    %cst_100 = arith.constant 9.99999974E-6 : f32
    %307 = vector.broadcast %cst_100 : f32 to vector<16x1xf32>
    %308 = arith.addf %304, %307 : vector<16x1xf32>
    %309 = math.rsqrt %308 : vector<16x1xf32>
    %310 = vector.broadcast %309 : vector<16x1xf32> to vector<16x128xf32>
    %311 = arith.mulf %306, %310 : vector<16x128xf32>
    %312 = vector.broadcast %5 : vector<1x128xf32> to vector<16x128xf32>
    %313 = arith.mulf %311, %312 : vector<16x128xf32>
    %314 = vector.broadcast %6 : vector<1x128xf32> to vector<16x128xf32>
    %315 = arith.addf %313, %314 : vector<16x128xf32>
    %316 = arith.truncf %315 : vector<16x128xf32> to vector<16x128xbf16>
    %c0_101 = arith.constant 0 : index
    %c896_102 = arith.constant 896 : index
    %317 = vector.load %arg4[%c0_101, %c896_102] : memref<128x1024xbf16, #tpu.memory_space<vmem>>, vector<128x128xbf16>
    %cst_103 = arith.constant dense<0.000000e+00> : vector<16x128xf32>
    %318 = tpu.matmul %316, %317, %cst_103 {dimension_numbers = #tpu.dot_dimension_numbers<[1], [0], [0], [1], [0, 0, 1, 1], [], []>} : vector<16x128xbf16>, vector<128x128xbf16>, vector<16x128xf32> -> vector<16x128xf32>
    %319 = vector.broadcast %7 : vector<1x128xf32> to vector<16x128xf32>
    %320 = arith.addf %318, %319 : vector<16x128xf32>
    %cst_104 = arith.constant 0.000000e+00 : f32
    %321 = vector.broadcast %cst_104 : f32 to vector<16x128xf32>
    %322 = arith.maximumf %320, %321 : vector<16x128xf32>
    %323 = arith.truncf %322 : vector<16x128xf32> to vector<16x128xbf16>
    %c0_105 = arith.constant 0 : index
    %c0_106 = arith.constant 0 : index
    %324 = vector.load %arg5[%c0_105, %c0_106] : memref<128x128xbf16, #tpu.memory_space<vmem>>, vector<128x128xbf16>
    %cst_107 = arith.constant dense<0.000000e+00> : vector<16x128xf32>
    %325 = tpu.matmul %323, %324, %cst_107 {dimension_numbers = #tpu.dot_dimension_numbers<[1], [0], [0], [1], [0, 0, 1, 1], [], []>} : vector<16x128xbf16>, vector<128x128xbf16>, vector<16x128xf32> -> vector<16x128xf32>
    %326 = arith.addf %315, %325 : vector<16x128xf32>
    %327 = vector.broadcast %8 : vector<1x128xf32> to vector<16x128xf32>
    %328 = arith.addf %326, %327 : vector<16x128xf32>
    %329 = vector.shape_cast %328 : vector<16x128xf32> to vector<2x8x128xf32>
    %c0_108 = arith.constant 0 : index
    %c0_109 = arith.constant 0 : index
    %c0_110 = arith.constant 0 : index
    %330 = vector.load %arg7[%c0_108, %c0_109, %c0_110] : memref<2x8x128xf32, #tpu.memory_space<vmem>>, vector<2x8x128xf32>
    tpu.vector_store %arg7[%c0_108, %c0_109, %c0_110], %329 {strides = array<i32>} : memref<2x8x128xf32, #tpu.memory_space<vmem>>, vector<2x8x128xf32>,
    return
  }
  func.func @transform_0(%arg0: i32) -> (i32, i32, i32) {
    %c0_i32 = arith.constant 0 : i32
    %c0_i32_0 = arith.constant 0 : i32
    %c0_i32_1 = arith.constant 0 : i32
    return %arg0, %c0_i32, %c0_i32_0 : i32, i32, i32
  }
  func.func @transform_1(%arg0: i32) -> (i32, i32, i32) {
    %c0_i32 = arith.constant 0 : i32
    %c0_i32_0 = arith.constant 0 : i32
    %c0_i32_1 = arith.constant 0 : i32
    return %arg0, %c0_i32, %c0_i32_0 : i32, i32, i32
  }
  func.func @transform_2(%arg0: i32) -> (i32, i32) {
    %c0_i32 = arith.constant 0 : i32
    %c0_i32_0 = arith.constant 0 : i32
    %c0_i32_1 = arith.constant 0 : i32
    return %c0_i32, %c0_i32_0 : i32, i32
  }
  func.func @transform_3(%arg0: i32) -> (i32, i32) {
    %c0_i32 = arith.constant 0 : i32
    %c0_i32_0 = arith.constant 0 : i32
    %c0_i32_1 = arith.constant 0 : i32
    return %c0_i32, %c0_i32_0 : i32, i32
  }
  func.func @transform_4(%arg0: i32) -> (i32, i32) {
    %c0_i32 = arith.constant 0 : i32
    %c0_i32_0 = arith.constant 0 : i32
    %c0_i32_1 = arith.constant 0 : i32
    return %c0_i32, %c0_i32_0 : i32, i32
  }
  func.func @transform_5(%arg0: i32) -> (i32, i32) {
    %c0_i32 = arith.constant 0 : i32
    %c0_i32_0 = arith.constant 0 : i32
    %c0_i32_1 = arith.constant 0 : i32
    return %c0_i32, %c0_i32_0 : i32, i32
  }
  func.func @transform_6(%arg0: i32) -> (i32, i32, i32) {
    %c0_i32 = arith.constant 0 : i32
    %c0_i32_0 = arith.constant 0 : i32
    %c0_i32_1 = arith.constant 0 : i32
    return %arg0, %c0_i32, %c0_i32_0 : i32, i32, i32
  }
}

</mosaic_0001>

<bundles_post_ra>
// kernel: tpu_custom_call.1
= control target key start
LH: loop header
LB: loop body
LE: loop exit
PB: predicated region body
PF: predicated region fallthrough
CT: control target
= control target key end

     0   :  { %11 = vsyncpa [#allocation3], 0  ;;  %s4532_s0 = inlined_call_operand.hbm [shape: f32[2,16,128], index: 0, kind: input, shape index: {}]   ;;  %s4533_s1 = inlined_call_operand.hbm [shape: f32[2,8,128], index: 1, kind: input, shape index: {}]   ;;  %s4534_s2 = inlined_call_operand.hbm [shape: bf16[128,256], index: 2, kind: input, shape index: {}]   ;;  %s4535_s3 = inlined_call_operand.hbm [shape: bf16[128,1024], index: 3, kind: input, shape index: {}]   ;;  %s4536_s4 = inlined_call_operand.hbm [shape: bf16[128,128], index: 4, kind: input, shape index: {}]   ;;  %s4537_s5 = inlined_call_operand.vmem [shape: f32[1,1664], index: 5, kind: input, shape index: {}]   ;;  %s4538_s6 = inlined_call_operand.hbm [shape: f32[2,8,128], index: 6, kind: output, shape index: {}]  }
   0x1   :  { %12 = vsyncpa [#allocation6], 0 }
   0x2   :  { %13 = vsyncpa [#allocation9], 0 }
   0x3   :  { %14 = vsyncpa [#allocation4], 0  ;;  %s3641_s21 = smov [#allocation5]   ;;  %s3642_s23 = smov [#allocation8]  }
   0x4   :  { %s32_s22 = sshll.u32 %s3641_s21, 4  ;;  %s56_s24 = sshll.u32 %s3642_s23, 4  ;;  %s33_s22 = int_to_ptr.vmem [resolvable:$true] %s32_s22  ;;  %s3691_s24 = int_to_ptr.vmem [resolvable:$true] %s56_s24 }
   0x5   :  { %s3501_s27 = scalar_lea.hbm %s4533_s1, 256 }
   0x6   :  { %p3502_p0 = scmp.ne.s32.totalorder %s4533_s1, %s3501_s27  ;;  %p3505_p1 = scmp.lt.u32.totalorder %s3501_s27, %s4533_s1 }
   0x8   :  { %p3507_p2 = pnand %p3505_p1, %p3502_p0 }
   0xa   :  { %3510 = shalt.err (!%p3507_p2)
}
   0xb   :  { %s3511_s8 = scalar_lea.vmem %s33_s22, 256  ;;  %p3516_p4 = scmp.lt.s32.totalorder %s33_s22, %s33_s22 }
   0xc   :  { %p3512_p3 = scmp.ne.s32.totalorder %s33_s22, %s3511_s8  ;;  %p3517_p5 = scmp.lt.s32.totalorder %s3511_s8, %s3511_s8 }
   0xe   :  { %p3518_p6 = por %p3517_p5, %p3516_p4 }
  0x10   :  { %p3519_p7 = pnand %p3518_p6, %p3512_p3 }
  0x12   :  { %3522 = shalt.err (!%p3519_p7)
}
  0x13   :  { %s3643_s9 = smov 128   ;;  %s3644_s10 = smov 8  }
  0x14   :  { %38 = dma.hbm_to_vmem [thread:$0]  %s4533_s1, 256, %s33_s22, [#allocation6], %s3643_s9, %s3643_s9, %s3644_s10  }
  0x15   :  { %s3523_s15 = scalar_lea.hbm %s4535_s3, 8192 }
  0x16   :  { %p3524_p8 = scmp.ne.s32.totalorder %s4535_s3, %s3523_s15  ;;  %p3527_p9 = scmp.lt.u32.totalorder %s3523_s15, %s4535_s3 }
  0x18   :  { %p3529_p10 = pnand %p3527_p9, %p3524_p8 }
  0x1a   :  { %3532 = shalt.err (!%p3529_p10)
}
  0x1b   :  { %s3533_s20 = scalar_lea.vmem %s3691_s24, 8192  ;;  %p3538_p12 = scmp.lt.s32.totalorder %s3691_s24, %s3691_s24 }
  0x1c   :  { %p3534_p11 = scmp.ne.s32.totalorder %s3691_s24, %s3533_s20  ;;  %p3539_p13 = scmp.lt.s32.totalorder %s3533_s20, %s3533_s20 }
  0x1e   :  { %p3540_p0 = por %p3539_p13, %p3538_p12 }
  0x20   :  { %p3541_p1 = pnand %p3540_p0, %p3534_p11 }
  0x22   :  { %3544 = shalt.err (!%p3541_p1)
}
  0x23   :  { %s3645_s1 = smov 512   ;;  %s3646_s21 = smov 32  }
  0x24   :  { %62 = dma.hbm_to_vmem [thread:$0]  %s4535_s3, 8192, %s3691_s24, [#allocation9], %s3645_s1, %s3645_s1, %s3646_s21  }
  0x25   :  { %s3647_s25 = smov [#allocation2]   ;;  %s3648_s27 = smov [#allocation7]  }
  0x26   :  { %s20_s26 = sshll.u32 %s3647_s25, 4  ;;  %s44_s28 = sshll.u32 %s3648_s27, 4  ;;  %s21_s26 = int_to_ptr.vmem [resolvable:$true] %s20_s26  ;;  %s3725_s28 = int_to_ptr.vmem [resolvable:$true] %s44_s28 }
  0x27   :  { %s3545_s7 = scalar_lea.hbm %s4532_s0, 512 }
  0x28   :  { %p3546_p2 = scmp.ne.s32.totalorder %s4532_s0, %s3545_s7  ;;  %p3549_p3 = scmp.lt.u32.totalorder %s3545_s7, %s4532_s0 }
  0x2a   :  { %p3551_p4 = pnand %p3549_p3, %p3546_p2 }
  0x2c   :  { %3554 = shalt.err (!%p3551_p4)
}
  0x2d   :  { %s3555_s3 = scalar_lea.vmem %s21_s26, 512  ;;  %p3560_p6 = scmp.lt.s32.totalorder %s21_s26, %s21_s26 }
  0x2e   :  { %p3556_p5 = scmp.ne.s32.totalorder %s21_s26, %s3555_s3  ;;  %p3561_p7 = scmp.lt.s32.totalorder %s3555_s3, %s3555_s3 }
  0x30   :  { %p3562_p8 = por %p3561_p7, %p3560_p6 }
  0x32   :  { %p3563_p9 = pnand %p3562_p8, %p3556_p5 }
  0x34   :  { %3566 = shalt.err (!%p3563_p9)
}
  0x35   :  { %26 = dma.hbm_to_vmem [thread:$0]  %s4532_s0, 512, %s21_s26, [#allocation3], %s3643_s9, %s3643_s9, %s3644_s10  }
  0x36   :  { %s3567_s17 = scalar_lea.hbm %s4534_s2, 2048 }
  0x37   :  { %p3568_p10 = scmp.ne.s32.totalorder %s4534_s2, %s3567_s17  ;;  %p3571_p11 = scmp.lt.u32.totalorder %s3567_s17, %s4534_s2 }
  0x39   :  { %p3573_p12 = pnand %p3571_p11, %p3568_p10 }
  0x3b   :  { %3576 = shalt.err (!%p3573_p12)
}
  0x3c   :  { %s3577_s21 = scalar_lea.vmem %s3725_s28, 2048  ;;  %p3582_p0 = scmp.lt.s32.totalorder %s3725_s28, %s3725_s28 }
  0x3d   :  { %p3578_p13 = scmp.ne.s32.totalorder %s3725_s28, %s3577_s21  ;;  %p3583_p1 = scmp.lt.s32.totalorder %s3577_s21, %s3577_s21 }
  0x3f   :  { %p3584_p2 = por %p3583_p1, %p3582_p0 }
  0x41   :  { %p3585_p3 = pnand %p3584_p2, %p3578_p13 }
  0x43   :  { %3588 = shalt.err (!%p3585_p3)
}
  0x44   :  { %50 = dma.hbm_to_vmem [thread:$0]  %s4534_s2, 2048, %s3725_s28, [#allocation6], %s3643_s9, %s3643_s9, %s3644_s10  }
  0x45   :  { %s3649_s23 = smov [#allocation10]   ;;  %s3589_s29 = scalar_lea.hbm %s4536_s4, 1024 }
  0x46   :  { %s68_s25 = sshll.u32 %s3649_s23, 4  ;;  %p3590_p4 = scmp.ne.s32.totalorder %s4536_s4, %s3589_s29  ;;  %s69_s25 = int_to_ptr.vmem [resolvable:$true] %s68_s25 }
  0x47   :  { %p3593_p5 = scmp.lt.u32.totalorder %s3589_s29, %s4536_s4 }
  0x49   :  { %p3595_p6 = pnand %p3593_p5, %p3590_p4 }
  0x4b   :  { %3598 = shalt.err (!%p3595_p6)
}
  0x4c   :  { %s3599_s12 = scalar_lea.vmem %s69_s25, 1024  ;;  %p3604_p8 = scmp.lt.s32.totalorder %s69_s25, %s69_s25 }
  0x4d   :  { %p3600_p7 = scmp.ne.s32.totalorder %s69_s25, %s3599_s12  ;;  %p3605_p9 = scmp.lt.s32.totalorder %s3599_s12, %s3599_s12 }
  0x4f   :  { %p3606_p10 = por %p3605_p9, %p3604_p8 }
  0x51   :  { %p3607_p11 = pnand %p3606_p10, %p3600_p7 }
  0x53   :  { %3610 = shalt.err (!%p3607_p11)
}
  0x54   :  { %s3650_s2 = smov 64   ;;  %s3651_s28 = smov 4  }
  0x55   :  { %74 = dma.hbm_to_vmem [thread:$0]  %s4536_s4, 1024, %s69_s25, [#allocation9], %s3650_s2, %s3650_s2, %s3651_s28  }
  0x56   :  { %3633 = dma.done.wait [#allocation3], 512  }
  0x57   :  { %3634 = vsyncadd [#allocation3], 4294966784 }
  0x58   :  { %3635 = dma.done.wait [#allocation6], 2304  }
  0x59   :  { %3636 = vsyncadd [#allocation6], 4294964992 }
  0x5a   :  { %3637 = dma.done.wait [#allocation9], 9216  }
  0x5b   :  { %3638 = vsyncadd [#allocation9], 4294958080  ;;  %v4565_v0 = vmov 0.0   ;;  %v4539_v1 = vmov 0   ;;  %vm3654_vm0 = vmmov 0   ;;  %v102_v38 = vld [vmem:[#allocation2] sm:$0xff] }
  0x5c   :  { %2925 = vmatprep.subr.bf16.mxu1 %v4565_v0  ;;  %236 = vmatprep.mubr.bf16.mxu0 %v4539_v1  ;;  %v3348_v2 = vld [vmem:[#allocation7 + $0x4] ss:$8 sps:$4 sm:$0xff]   ;;  %v3350_v3 = vld [vmem:[#allocation7] ss:$8 sps:$4 sm:$0xff]   ;;  %v3351_v4 = vld [vmem:[#allocation7 + $0x14] ss:$8 sps:$4 sm:$0xff]  }
  0x5d   :  { %2941 = vmatprep.mubr.msk.bf16.mxu1 %vm3654_vm0, %v4565_v0  ;;  %204 = vmatprep.subr.bf16.mxu0 %v3348_v2  ;;  %v3353_v5 = vld [vmem:[#allocation7 + $0x10] ss:$8 sps:$4 sm:$0xff]   ;;  %v3354_v6 = vld [vmem:[#allocation7 + $0x24] ss:$8 sps:$4 sm:$0xff]   ;;  %v284_v7 = vld [vmem:[#allocation8] sm:$0xf] }
  0x5e   :  { %205 = vmatpush1.bf16.msra.mxu0 %v3350_v3  ;;  %v285_v8 = vld [vmem:[#allocation8 + $0x20] sm:$0xf]  ;;  %v3357_v13 = vld [vmem:[#allocation7 + $0x34] ss:$8 sps:$4 sm:$0xff]   ;;  %v3359_v17 = vld [vmem:[#allocation7 + $0x30] ss:$8 sps:$4 sm:$0xff]  }
  0x5f   :  { %206 = vmatprep.subr.bf16.mxu0 %v3351_v4  ;;  %v3778_v9 = vcombine.low %v284_v7, %v285_v8  ;;  %v286_v10 = vld [vmem:[#allocation8 + $0x40] sm:$0xf]  ;;  %v3360_v18 = vld [vmem:[#allocation7 + $0x44] ss:$8 sps:$4 sm:$0xff]   ;;  %v3363_v24 = vld [vmem:[#allocation7 + $0x54] ss:$8 sps:$4 sm:$0xff]  }
  0x60   :  { %v287_v11 = vld [vmem:[#allocation8 + $0x60] sm:$0xf]  ;;  %v3365_v27 = vld [vmem:[#allocation7 + $0x50] ss:$8 sps:$4 sm:$0xff]   ;;  %v3366_v28 = vld [vmem:[#allocation7 + $0x64] ss:$8 sps:$4 sm:$0xff]  }
  0x61   :  { %v3356_v12 = vld [vmem:[#allocation7 + $0x20] ss:$8 sps:$4 sm:$0xff]   ;;  %2926 = vmatpush3.bf16.msra.mxu1 %v3778_v9  ;;  %v3781_v14 = vcombine.low %v286_v10, %v287_v11  ;;  %v3369_v34 = vld [vmem:[#allocation7 + $0x74] ss:$8 sps:$4 sm:$0xff]   ;;  %v3371_v37 = vld [vmem:[#allocation7 + $0x70] ss:$8 sps:$4 sm:$0xff]  }
  0x62   :  { %207 = vmatpush1.bf16.msra.mxu0 %v3353_v5  ;;  %2927 = vmatprep.subr.bf16.mxu1 %v4565_v0  ;;  %v288_v15 = vld [vmem:[#allocation8 + $0x80] sm:$0xf]  ;;  %v103_v39 = vld [vmem:[#allocation2 + $0x8] sm:$0xff]  ;;  %v3807_v45 = vld [vmem:[#allocation5] sm:$0xff]  ;;  %vm479_vm1 = vcmask 130048   ;;  %s3655_s3 = smov [#allocation11]  }
  0x63   :  { %208 = vmatprep.subr.bf16.mxu0 %v3354_v6  ;;  %v289_v16 = vld [vmem:[#allocation8 + $0xa0] sm:$0xf]  ;;  %v106_v43 = vpack.c.bf16 %v103_v39, %v102_v38  ;;  %v3809_v46 = vld [vmem:[#allocation5 + $0x8] sm:$0xff]  ;;  %v105_v49 = vld [vmem:[#allocation2 + $0x18] sm:$0xff]  ;;  %s2639_s4 = sshll.u32 %s3655_s3, 4  ;;  %s2640_s4 = int_to_ptr.vmem [resolvable:$true] %s2639_s4 }
  0x64   :  { %v3785_v19 = vcombine.low %v288_v15, %v289_v16  ;;  %v290_v20 = vld [vmem:[#allocation8 + $0xc0] sm:$0xf]  ;;  %v3815_v47 = vpack.c.bf16 %v3809_v46, %v3807_v45  ;;  %v2669_v51 = vld [vmem:[%s4537_s5 + $0x1] ss:$0 sm:$0xff]  ;;  %v2670_v53 = vld [vmem:[%s4537_s5 + $0x2] ss:$0 sm:$0xff]  ;;  %p3616_p13 = scmp.lt.s32.totalorder %s2640_s4, %s2640_s4 }
  0x65   :  { %2928 = vmatpush3.bf16.msra.mxu1 %v3781_v14  ;;  %v291_v21 = vld [vmem:[#allocation8 + $0xe0] sm:$0xf]  ;;  %v2671_v59 = vld [vmem:[%s4537_s5] ss:$0 sm:$0xff]  ;;  %s3611_s15 = scalar_lea.vmem %s2640_s4, 256 }
  0x66   :  { %209 = vmatpush1.bf16.msra.mxu0 %v3356_v12  ;;  %2929 = vmatprep.subr.bf16.mxu1 %v4565_v0  ;;  %v3362_v22 = vld [vmem:[#allocation7 + $0x40] ss:$8 sps:$4 sm:$0xff]   ;;  %v3789_v23 = vcombine.low %v290_v20, %v291_v21  ;;  %p3612_p12 = scmp.ne.s32.totalorder %s2640_s4, %s3611_s15  ;;  %p3617_p0 = scmp.lt.s32.totalorder %s3611_s15, %s3611_s15 }
  0x67   :  { %210 = vmatprep.subr.bf16.mxu0 %v3357_v13  ;;  %v292_v25 = vld [vmem:[#allocation8 + $0x100] sm:$0xf] }
  0x68   :  { %v293_v26 = vld [vmem:[#allocation8 + $0x120] sm:$0xf]  ;;  %p3618_p1 = por %p3617_p0, %p3616_p13 }
  0x69   :  { %2930 = vmatpush3.bf16.msra.mxu1 %v3785_v19  ;;  %v294_v29 = vld [vmem:[#allocation8 + $0x140] sm:$0xf]  ;;  %v3793_v31 = vcombine.low %v292_v25, %v293_v26 }
  0x6a   :  { %211 = vmatpush1.bf16.msra.mxu0 %v3359_v17  ;;  %2931 = vmatprep.subr.bf16.mxu1 %v4565_v0  ;;  %v295_v30 = vld [vmem:[#allocation8 + $0x160] sm:$0xf]  ;;  %p3619_p2 = pnand %p3618_p1, %p3612_p12 }
  0x6b   :  { %212 = vmatprep.subr.bf16.mxu0 %v3360_v18  ;;  %v3368_v32 = vld [vmem:[#allocation7 + $0x60] ss:$8 sps:$4 sm:$0xff]   ;;  %v3797_v33 = vcombine.low %v294_v29, %v295_v30 }
  0x6c   :  { %v296_v35 = vld [vmem:[#allocation8 + $0x180] sm:$0xf] }
  0x6d   :  { %2932 = vmatpush3.bf16.msra.mxu1 %v3789_v23  ;;  %4630 = vst [vmem:[#allocation16_spill] sm:$0xff] %v3797_v33  ;;  %v297_v36 = vld [vmem:[#allocation8 + $0x1a0] sm:$0xf] }
  0x6e   :  { %213 = vmatpush1.bf16.msra.mxu0 %v3362_v22  ;;  %2933 = vmatprep.subr.bf16.mxu1 %v4565_v0  ;;  %v3801_v40 = vcombine.low %v296_v35, %v297_v36  ;;  %v298_v41 = vld [vmem:[#allocation8 + $0x1c0] sm:$0xf] }
  0x6f   :  { %214 = vmatprep.subr.bf16.mxu0 %v3363_v24  ;;  %v299_v42 = vld [vmem:[#allocation8 + $0x1e0] sm:$0xf] }
  0x70   :  { %4631 = vst [vmem:[#allocation17_spill] sm:$0xff] %v3801_v40  ;;  %v3805_v44 = vcombine.low %v298_v41, %v299_v42  ;;  %v104_v48 = vld [vmem:[#allocation2 + $0x10] sm:$0xff] }
  0x71   :  { %2934 = vmatpush3.bf16.msra.mxu1 %v3793_v31  ;;  %v107_v50 = vpack.c.bf16 %v105_v49, %v104_v48 }
  0x72   :  { %215 = vmatpush1.bf16.msra.mxu0 %v3365_v27  ;;  %2935 = vmatprep.subr.bf16.mxu1 %v4565_v0  ;;  %4632 = vst [vmem:[#allocation18_spill] sm:$0xff] %v3805_v44 }
  0x73   :  { %216 = vmatprep.subr.bf16.mxu0 %v3366_v28 }
  0x75   :  { %2936 = vmatpush3.bf16.msra.mxu1 %v3797_v33 }
  0x76   :  { %217 = vmatpush1.bf16.msra.mxu0 %v3368_v32  ;;  %2937 = vmatprep.subr.bf16.mxu1 %v4565_v0 }
  0x77   :  { %218 = vmatprep.subr.bf16.mxu0 %v3369_v34 }
  0x79   :  { %2938 = vmatpush3.bf16.msra.mxu1 %v3801_v40 }
  0x7a   :  { %219 = vmatpush1.bf16.msra.mxu0 %v3371_v37  ;;  %2939 = vmatprep.subr.bf16.mxu1 %v4565_v0 }
  0x7b   :  { %2951 = vmatprep.subr.bf16.mxu0 %v4565_v0 }
  0x7d   :  { %237 = vmatmul.mubr.bf16.vlgmr.msra.gmra.mrb[0].mxu0 %v106_v43  ;;  %2940 = vmatpush3.bf16.msra.mxu1 %v3805_v44 }
  0x7e   :  { %246 = vmatprep.mubr.bf16.mxu0 %v4539_v1  ;;  %2945 = vmatprep.subr.bf16.mxu1 %v4565_v0 }
  0x80   :  { %2942 = vmatmul.mubr.bf16.vlgmr.msra.gmra.mrb[0].mxu1 %v3815_v47 }
  0x81   :  { %2947 = vmatprep.mubr.msk.bf16.mxu1 %vm3654_vm0, %v4565_v0 }
  0x85   :  { %247 = vmatmul.mubr.bf16.gmra.mrb[4].mxu0 %v107_v50 }
  0x86   :  { %2953 = vmatprep.mubr.msk.bf16.mxu0 %vm3654_vm0, %v4565_v0 }
 0x150   :  { %v238_v52 = vpop.f32.mrb[0].mxu0 }
 0x151   :  { %v240_v54 = vpop.f32.mrb[1].mxu0  ;;  %v263_v56 = vadd.f32 %v2669_v51, %v238_v52 }
 0x152   :  { %v242_v55 = vpop.f32.mrb[2].mxu0  ;;  %v275_v60 = vadd.f32 %v2670_v53, %v240_v54 }
 0x153   :  { %v264_v57 = vadd.f32 %v2669_v51, %v242_v55  ;;  %v244_v58 = vpop.f32.mrb[3].mxu0  ;;  %v388_v62 = vpop.f32.mrb[0].mxu1 }
 0x154   :  { %v276_v61 = vadd.f32 %v2670_v53, %v244_v58  ;;  %v2943_v2 = vpop.f32.mrb[1].mxu1  ;;  %v389_v4 = vadd.f32 %v2671_v59, %v388_v62 }
 0x155   :  { %v3834_v63 = vpack.c.bf16 %v264_v57, %v263_v56  ;;  %v391_v5 = vpop.f32.mrb[2].mxu1 }
 0x156   :  { %v3836_v3 = vpack.c.bf16 %v276_v61, %v275_v60  ;;  %v2944_v6 = vpop.f32.mrb[3].mxu1  ;;  %v395_v10 = vpack.c.bf16 %v389_v4, %v389_v4  ;;  %v392_v21 = vadd.f32 %v2671_v59, %v391_v5 }
 0x157   :  { %2946 = vmatpush3.bf16.xpose.msra.mxu1 %v3834_v63 }
 0x158   :  { %4633 = vst [vmem:[#allocation19_spill] sm:$0xff] %v3836_v3  ;;  %v248_v7 = vpop.f32.mrb[4].mxu0  ;;  %2957 = vmatprep.subr.bf16.mxu1 %v4565_v0  ;;  %v396_v22 = vpack.c.bf16 %v392_v21, %v392_v21 }
 0x159   :  { %v250_v8 = vpop.f32.mrb[5].mxu0  ;;  %v265_v12 = vadd.f32 %v2669_v51, %v248_v7 }
 0x15a   :  { %v252_v11 = vpop.f32.mrb[6].mxu0  ;;  %v277_v16 = vadd.f32 %v2670_v53, %v250_v8 }
 0x15b   :  { %v266_v13 = vadd.f32 %v2669_v51, %v252_v11  ;;  %v254_v15 = vpop.f32.mrb[7].mxu0 }
 0x15c   :  { %v278_v17 = vadd.f32 %v2670_v53, %v254_v15 }
 0x15d   :  { %v3840_v18 = vpack.c.bf16 %v266_v13, %v265_v12 }
 0x15e   :  { %v3842_v20 = vpack.c.bf16 %v278_v17, %v277_v16  ;;  %2948 = vmatmul.mubr.bf16.vlgmr.msra.gmra.mrb[4].mxu1 %v395_v10 }
 0x15f   :  { %4634 = vst [vmem:[#allocation20_spill] sm:$0xff] %v3840_v18  ;;  %2952 = vmatpush3.bf16.xpose.msra.mxu0 %v3840_v18  ;;  %2958 = vmatpush3.bf16.msra.mxu1 %v3836_v3 }
 0x160   :  { %2963 = vmatprep.subr.bf16.mxu0 %v4565_v0  ;;  %2959 = vmatprep.mubr.msk.bf16.mxu1 %vm3654_vm0, %v4565_v0 }
 0x166   :  { %2954 = vmatmul.mubr.bf16.vlgmr.msra.gmra.mrb[8].mxu0 %v396_v22 }
 0x167   :  { %2964 = vmatpush3.bf16.msra.mxu0 %v3842_v20  ;;  %2965 = vmatprep.mubr.msk.bf16.mxu0 %vm3654_vm0, %v4565_v0 }
 0x168   :  { %2969 = vmatprep.subr.bf16.mxu0 %v4565_v0 }
 0x231   :  { %v431_v24 = vpop.f32.mrb[4].mxu1 }
 0x232   :  { %v477_v25 = vmul.f32 0.088388346, %v431_v24  ;;  %v2949_v26 = vpop.f32.mrb[5].mxu1 }
 0x233   :  { %v434_v27 = vpop.f32.mrb[6].mxu1 }
 0x234   :  { %v480_v28 = vsel %vm479_vm1, %v477_v25, -inf  ;;  %v2950_v29 = vpop.f32.mrb[7].mxu1 }
 0x235   :  { %v481_v30 = vrot.slane %v480_v28, 4  ;;  %v619_v29 = vld [vmem:[#allocation8 + $0x4] sm:$0xff] }
 0x237   :  { %v482_v32 = vmax.f32 %v480_v28, %v481_v30  ;;  %v621_v30 = vld [vmem:[#allocation8 + $0x24] sm:$0xff] }
 0x239   :  { %v483_v34 = vrot.slane %v482_v32, 2  ;;  %v471_v35 = vpop.f32.mrb[8].mxu0 }
 0x23a   :  { %v478_v36 = vmul.f32 0.088388346, %v471_v35  ;;  %v2955_v37 = vpop.f32.mrb[9].mxu0 }
 0x23b   :  { %v484_v38 = vmax.f32 %v482_v32, %v483_v34  ;;  %v474_v39 = vpop.f32.mrb[10].mxu0  ;;  %v3859_v32 = vcombine.low %v619_v29, %v621_v30  ;;  %v3861_v34 = vcombine.high %v619_v29, %v621_v30  ;;  %v640_v29 = vld [vmem:[#allocation8 + $0x14c] sm:$0xf] }
 0x23c   :  { %v487_v41 = vsel %vm479_vm1, %v478_v36, -inf  ;;  %v2956_v42 = vpop.f32.mrb[11].mxu0  ;;  %v625_v39 = vld [vmem:[#allocation8 + $0x64] sm:$0xff]  ;;  %v642_v30 = vld [vmem:[#allocation8 + $0x16c] sm:$0xf] }
 0x23d   :  { %v485_v43 = vrot.slane %v484_v38, 1  ;;  %v488_v48 = vrot.slane %v487_v41, 4  ;;  %4635 = vst [vmem:[#allocation21_spill] sm:$0xff] %v3861_v34  ;;  %795 = vmatprep.subr.bf16.mxu1 %v3861_v34 }
 0x23f   :  { %v486_v49 = vmax.f32 %v484_v38, %v485_v43  ;;  %v489_v50 = vmax.f32 %v487_v41, %v488_v48  ;;  %v623_v38 = vld [vmem:[#allocation8 + $0x44] sm:$0xff] }
 0x240   :  { %v3864_v43 = vcombine.high %v623_v38, %v625_v39  ;;  %v627_v48 = vld [vmem:[#allocation8 + $0x84] sm:$0xff] }
 0x241   :  { %v494_v51 = vsub.f32 %v477_v25, %v486_v49  ;;  %v490_v52 = vrot.slane %v489_v50, 2  ;;  %v629_v49 = vld [vmem:[#allocation8 + $0xa4] sm:$0xff] }
 0x243   :  { %v496_v53 = vmul.f32 1.442695, %v494_v51  ;;  %v491_v54 = vmax.f32 %v489_v50, %v490_v52  ;;  %v3868_v50 = vcombine.low %v623_v38, %v625_v39  ;;  %v620_v51 = vld [vmem:[#allocation8 + $0xc] sm:$0xf] }
 0x244   :  { %v622_v52 = vld [vmem:[#allocation8 + $0x2c] sm:$0xf] }
 0x245   :  { %3380 = vpow2.f32 %v496_v53  ;;  %v492_v55 = vrot.slane %v491_v54, 1  ;;  %v3872_v53 = vcombine.high %v627_v48, %v629_v49 }
 0x247   :  { %v493_v56 = vmax.f32 %v491_v54, %v492_v55  ;;  %v631_v55 = vld [vmem:[#allocation8 + $0xc4] sm:$0xff] }
 0x249   :  { %v495_v57 = vsub.f32 %v478_v36, %v493_v56  ;;  %v633_v56 = vld [vmem:[#allocation8 + $0xe4] sm:$0xff] }
 0x24b   :  { %v498_v58 = vmul.f32 1.442695, %v495_v57 }
 0x24d   :  { %3382 = vpow2.f32 %v498_v58  ;;  %v3874_v58 = vcombine.low %v620_v51, %v622_v52  ;;  %v649_v51 = vld [vmem:[#allocation8 + $0x1e4] sm:$0xff] }
 0x24f   :  { %v3381_v59 = vpop.eup %3380 }
 0x250   :  { %v500_v60 = vsel %vm479_vm1, %v3381_v59, 0.0 }
 0x251   :  { %v501_v61 = vrot.slane %v500_v60, 4 }
 0x253   :  { %v502_v62 = vadd.f32 %v501_v61, %v500_v60  ;;  %v624_v61 = vld [vmem:[#allocation8 + $0x4c] sm:$0xf] }
 0x255   :  { %v503_v2 = vrot.slane %v502_v62, 2 }
 0x257   :  { %v3383_v4 = vpop.eup %3382  ;;  %v504_v5 = vadd.f32 %v503_v2, %v502_v62  ;;  %v626_v62 = vld [vmem:[#allocation8 + $0x6c] sm:$0xf]  ;;  %v3880_v2 = vcombine.high %v631_v55, %v633_v56 }
 0x258   :  { %v507_v6 = vsel %vm479_vm1, %v3383_v4, 0.0 }
 0x259   :  { %v508_v7 = vrot.slane %v507_v6, 4  ;;  %v505_v8 = vrot.slane %v504_v5, 1  ;;  %4637 = vst [vmem:[#allocation23_spill] sm:$0xff] %v3880_v2 }
 0x25b   :  { %v509_v10 = vadd.f32 %v508_v7, %v507_v6  ;;  %v506_v11 = vadd.f32 %v505_v8, %v504_v5  ;;  %v637_v5 = vld [vmem:[#allocation8 + $0x124] sm:$0xff]  ;;  %v3884_v6 = vcombine.low %v624_v61, %v626_v62  ;;  %v3887_v7 = vcombine.low %v631_v55, %v633_v56  ;;  %v628_v8 = vld [vmem:[#allocation8 + $0x8c] sm:$0xf]  ;;  %v881_v61 = vld [vmem:[#allocation8 + $0x30] sm:$0xff] }
 0x25c   :  { %v648_v55 = vld [vmem:[#allocation8 + $0x1cc] sm:$0xf] }
 0x25d   :  { %v510_v12 = vrot.slane %v509_v10, 2  ;;  %3384 = vrcp.f32 %v506_v11  ;;  %4638 = vst [vmem:[#allocation24_spill] sm:$0xff] %v3887_v7  ;;  %v650_v56 = vld [vmem:[#allocation8 + $0x1ec] sm:$0xf] }
 0x25f   :  { %v511_v13 = vadd.f32 %v510_v12, %v509_v10  ;;  %v630_v10 = vld [vmem:[#allocation8 + $0xac] sm:$0xf]  ;;  %v639_v12 = vld [vmem:[#allocation8 + $0x144] sm:$0xff] }
 0x261   :  { %v512_v15 = vrot.slane %v511_v13, 1 }
 0x263   :  { %v513_v16 = vadd.f32 %v512_v15, %v511_v13  ;;  %v641_v13 = vld [vmem:[#allocation8 + $0x164] sm:$0xff]  ;;  %v3896_v15 = vcombine.low %v628_v8, %v630_v10 }
 0x265   :  { %3386 = vrcp.f32 %v513_v16 }
 0x267   :  { %v3385_v17 = vpop.eup %3384 }
 0x268   :  { %v516_v21 = vmul.f32 %v3385_v17, %v3381_v59  ;;  %v3877_v59 = vcombine.low %v627_v48, %v629_v49  ;;  %v632_v17 = vld [vmem:[#allocation8 + $0xcc] sm:$0xf]  ;;  %v647_v49 = vld [vmem:[#allocation8 + $0x1c4] sm:$0xff] }
 0x269   :  { %v3933_v52 = vcombine.low %v647_v49, %v649_v51 }
 0x26a   :  { %v518_v22 = vadd.f32 1e-06, %v516_v21  ;;  %4636 = vst [vmem:[#allocation22_spill] sm:$0xff] %v3877_v59  ;;  %v634_v21 = vld [vmem:[#allocation8 + $0xec] sm:$0xf] }
 0x26b   :  { %4645 = vst [vmem:[#allocation31_spill] sm:$0xff] %v3933_v52 }
 0x26c   :  { %v520_v24 = vsel %vm479_vm1, %v518_v22, 0.0 }
 0x26d   :  { %521 = vadd.xlane.f32.xlu0 %v520_v24  ;;  %v3906_v24 = vcombine.low %v632_v17, %v634_v21  ;;  %v882_v17 = vld [vmem:[#allocation8 + $0x38] sm:$0xf]  ;;  %v883_v21 = vld [vmem:[#allocation8 + $0x50] sm:$0xff] }
 0x26f   :  { %v3387_v25 = vpop.eup %3386 }
 0x270   :  { %v517_v26 = vmul.f32 %v3387_v25, %v3383_v4  ;;  %v635_v4 = vld [vmem:[#allocation8 + $0x104] sm:$0xff]  ;;  %v3909_v25 = vcombine.low %v639_v12, %v641_v13 }
 0x271   :  { %v3891_v11 = vcombine.high %v635_v4, %v637_v5  ;;  %v3899_v16 = vcombine.low %v635_v4, %v637_v5 }
 0x272   :  { %v519_v27 = vadd.f32 1e-06, %v517_v26  ;;  %4642 = vst [vmem:[#allocation28_spill] sm:$0xff] %v3909_v25  ;;  %v636_v26 = vld [vmem:[#allocation8 + $0x10c] sm:$0xf] }
 0x273   :  { %4639 = vst [vmem:[#allocation25_spill] sm:$0xff] %v3891_v11  ;;  %4640 = vst [vmem:[#allocation26_spill] sm:$0xff] %v3899_v16 }
 0x274   :  { %v523_v28 = vsel %vm479_vm1, %v519_v27, 0.0 }
 0x275   :  { %524 = vadd.xlane.f32.xlu0 %v523_v28 }
 0x2fa   :  { %v522_v35 = vpop.xlane.xlu0 %521 }
 0x2fb   :  { %3388 = vrcp.f32 %v522_v35  ;;  %v3920_v35 = vcombine.low %v640_v29, %v642_v30 }
 0x302   :  { %v525_v36 = vpop.xlane.xlu0 %524 }
 0x303   :  { %3390 = vrcp.f32 %v525_v36  ;;  %v643_v36 = vld [vmem:[#allocation8 + $0x184] sm:$0xff] }
 0x305   :  { %v3389_v37 = vpop.eup %3388 }
 0x306   :  { %v528_v41 = vmul.f32 %v3389_v37, %v518_v22  ;;  %v3903_v22 = vcombine.high %v639_v12, %v641_v13  ;;  %v645_v37 = vld [vmem:[#allocation8 + $0x1a4] sm:$0xff]  ;;  %v880_v13 = vld [vmem:[#allocation8 + $0x18] sm:$0xf] }
 0x307   :  { %v3923_v38 = vcombine.high %v643_v36, %v645_v37  ;;  %v3925_v39 = vcombine.low %v643_v36, %v645_v37  ;;  %v3949_v29 = vcombine.low %v880_v13, %v882_v17  ;;  %v893_v13 = vld [vmem:[#allocation8 + $0xf0] sm:$0xff] }
 0x308   :  { %v530_v42 = vpack.c.bf16 %v528_v41, %v528_v41  ;;  %4641 = vst [vmem:[#allocation27_spill] sm:$0xff] %v3903_v22  ;;  %v644_v41 = vld [vmem:[#allocation8 + $0x18c] sm:$0xf] }
 0x309   :  { %4643 = vst [vmem:[#allocation29_spill] sm:$0xff] %v3923_v38  ;;  %4644 = vst [vmem:[#allocation30_spill] sm:$0xff] %v3925_v39 }
 0x30a   :  { %2960 = vmatmul.mubr.msk.bf16.vlgmr.msra.gmra.mrb[8].mxu1 %vm479_vm1, %v530_v42  ;;  %v646_v42 = vld [vmem:[#allocation8 + $0x1ac] sm:$0xf]  ;;  %4649 = vst [vmem:[#allocation35_spill] sm:$0xff] %v3949_v29 }
 0x30b   :  { %796 = vmatpush1.bf16.msra.mxu1 %v3859_v32  ;;  %827 = vmatprep.mubr.bf16.mxu1 %v4539_v1  ;;  %v3929_v48 = vcombine.low %v644_v41, %v646_v42  ;;  %v884_v41 = vld [vmem:[#allocation8 + $0x58] sm:$0xf] }
 0x30c   :  { %797 = vmatprep.subr.bf16.mxu1 %v3864_v43  ;;  %v886_v42 = vld [vmem:[#allocation8 + $0x78] sm:$0xf] }
 0x30d   :  { %v3391_v54 = vpop.eup %3390 }
 0x30e   :  { %v529_v57 = vmul.f32 %v3391_v54, %v519_v27  ;;  %v638_v27 = vld [vmem:[#allocation8 + $0x12c] sm:$0xf]  ;;  %v3935_v54 = vcombine.high %v647_v49, %v649_v51  ;;  %v887_v51 = vld [vmem:[#allocation8 + $0x90] sm:$0xff] }
 0x30f   :  { %798 = vmatpush1.bf16.msra.mxu1 %v3868_v50  ;;  %v3914_v28 = vcombine.low %v636_v26, %v638_v27  ;;  %v885_v26 = vld [vmem:[#allocation8 + $0x70] sm:$0xff] }
 0x310   :  { %v531_v60 = vpack.c.bf16 %v529_v57, %v529_v57  ;;  %799 = vmatprep.subr.bf16.mxu1 %v3872_v53  ;;  %4646 = vst [vmem:[#allocation32_spill] sm:$0xff] %v3935_v54  ;;  %v3939_v57 = vcombine.low %v648_v55, %v650_v56  ;;  %v3951_v37 = vcombine.high %v883_v21, %v885_v26  ;;  %v889_v55 = vld [vmem:[#allocation8 + $0xb0] sm:$0xff] }
 0x311   :  { %v3967_v17 = vcombine.low %v887_v51, %v889_v55 }
 0x312   :  { %2966 = vmatmul.mubr.msk.bf16.vlgmr.msra.gmra.mrb[12].mxu0 %vm479_vm1, %v531_v60  ;;  %v879_v60 = vld [vmem:[#allocation8 + $0x10] sm:$0xff]  ;;  %4650 = vst [vmem:[#allocation36_spill] sm:$0xff] %v3951_v37 }
 0x313   :  { %2970 = vmatpush3.bf16.msra.mxu0 %v3874_v58  ;;  %800 = vmatpush1.bf16.msra.mxu1 %v3877_v59  ;;  %v3943_v62 = vcombine.high %v879_v60, %v881_v61  ;;  %v3945_v4 = vcombine.low %v879_v60, %v881_v61  ;;  %v3954_v60 = vcombine.low %v883_v21, %v885_v26 }
 0x314   :  { %2971 = vmatprep.subr.bf16.mxu0 %v4565_v0  ;;  %801 = vmatprep.subr.bf16.mxu1 %v3880_v2  ;;  %v3957_v61 = vcombine.low %v884_v41, %v886_v42  ;;  %4654 = vst [vmem:[#allocation40_spill] sm:$0xff] %v3967_v17  ;;  %v897_v41 = vld [vmem:[#allocation8 + $0x130] sm:$0xff] }
 0x315   :  { %2985 = vmatprep.mubr.msk.bf16.mxu0 %vm3654_vm0, %v4565_v0  ;;  %4647 = vst [vmem:[#allocation33_spill] sm:$0xff] %v3943_v62  ;;  %4648 = vst [vmem:[#allocation34_spill] sm:$0xff] %v3945_v4 }
 0x316   :  { %4651 = vst [vmem:[#allocation37_spill] sm:$0xff] %v3954_v60  ;;  %4652 = vst [vmem:[#allocation38_spill] sm:$0xff] %v3957_v61 }
 0x317   :  { %2972 = vmatpush3.bf16.msra.mxu0 %v3884_v6  ;;  %802 = vmatpush1.bf16.msra.mxu1 %v3887_v7 }
 0x318   :  { %2973 = vmatprep.subr.bf16.mxu0 %v4565_v0  ;;  %803 = vmatprep.subr.bf16.mxu1 %v3891_v11 }
 0x31b   :  { %2974 = vmatpush3.bf16.msra.mxu0 %v3896_v15  ;;  %804 = vmatpush1.bf16.msra.mxu1 %v3899_v16 }
 0x31c   :  { %2975 = vmatprep.subr.bf16.mxu0 %v4565_v0  ;;  %805 = vmatprep.subr.bf16.mxu1 %v3903_v22 }
 0x31f   :  { %2976 = vmatpush3.bf16.msra.mxu0 %v3906_v24  ;;  %806 = vmatpush1.bf16.msra.mxu1 %v3909_v25 }
 0x320   :  { %2977 = vmatprep.subr.bf16.mxu0 %v4565_v0  ;;  %807 = vmatprep.subr.bf16.mxu1 %v3923_v38 }
 0x323   :  { %2978 = vmatpush3.bf16.msra.mxu0 %v3914_v28  ;;  %808 = vmatpush1.bf16.msra.mxu1 %v3925_v39 }
 0x324   :  { %2979 = vmatprep.subr.bf16.mxu0 %v4565_v0  ;;  %809 = vmatprep.subr.bf16.mxu1 %v3935_v54 }
 0x327   :  { %2980 = vmatpush3.bf16.msra.mxu0 %v3920_v35  ;;  %810 = vmatpush1.bf16.msra.mxu1 %v3933_v52 }
 0x328   :  { %2981 = vmatprep.subr.bf16.mxu0 %v4565_v0  ;;  %1055 = vmatprep.subr.bf16.mxu1 %v3943_v62 }
 0x32b   :  { %2982 = vmatpush3.bf16.msra.mxu0 %v3929_v48 }
 0x32c   :  { %2983 = vmatprep.subr.bf16.mxu0 %v4565_v0 }
 0x32f   :  { %2984 = vmatpush3.bf16.msra.mxu0 %v3939_v57 }
 0x330   :  { %2989 = vmatprep.subr.bf16.mxu0 %v4565_v0 }
 0x3dd   :  { %v569_v5 = vpop.f32.mrb[8].mxu1 }
 0x3de   :  { %v2961_v8 = vpop.f32.mrb[9].mxu1 }
 0x3df   :  { %v572_v10 = vpop.f32.mrb[10].mxu1  ;;  %v888_v8 = vld [vmem:[#allocation8 + $0x98] sm:$0xf] }
 0x3e0   :  { %v2962_v12 = vpop.f32.mrb[11].mxu1  ;;  %v890_v10 = vld [vmem:[#allocation8 + $0xb8] sm:$0xf] }
 0x3e1   :  { %v891_v12 = vld [vmem:[#allocation8 + $0xd0] sm:$0xff]  ;;  %v3970_v21 = vcombine.low %v888_v8, %v890_v10 }
 0x3e2   :  { %v3973_v26 = vcombine.high %v891_v12, %v893_v13  ;;  %v3977_v42 = vcombine.low %v891_v12, %v893_v13  ;;  %v899_v8 = vld [vmem:[#allocation8 + $0x150] sm:$0xff] }
 0x3e3   :  { %4655 = vst [vmem:[#allocation41_spill] sm:$0xff] %v3970_v21  ;;  %v901_v10 = vld [vmem:[#allocation8 + $0x170] sm:$0xff] }
 0x3e4   :  { %4656 = vst [vmem:[#allocation42_spill] sm:$0xff] %v3973_v26  ;;  %4657 = vst [vmem:[#allocation43_spill] sm:$0xff] %v3977_v42  ;;  %v3993_v13 = vcombine.high %v899_v8, %v901_v10 }
 0x3e5   :  { %v612_v27 = vpop.f32.mrb[12].mxu0 }
 0x3e6   :  { %v618_v30 = vpack.c.bf16 %v612_v27, %v569_v5  ;;  %v2967_v36 = vpop.f32.mrb[13].mxu0  ;;  %v3960_v5 = vcombine.high %v887_v51, %v889_v55  ;;  %v892_v27 = vld [vmem:[#allocation8 + $0xd8] sm:$0xf]  ;;  %4662 = vst [vmem:[#allocation48_spill] sm:$0xff] %v3993_v13 }
 0x3e7   :  { %v615_v49 = vpop.f32.mrb[14].mxu0  ;;  %v895_v36 = vld [vmem:[#allocation8 + $0x110] sm:$0xff]  ;;  %v896_v55 = vld [vmem:[#allocation8 + $0x118] sm:$0xf] }
 0x3e8   :  { %v2968_v56 = vpop.f32.mrb[15].mxu0  ;;  %828 = vmatmul.mubr.bf16.vlgmr.msra.gmra.mrb[12].mxu1 %v618_v30  ;;  %2986 = vmatmul.mubr.bf16.vlgmr.msra.gmra.mrb[16].mxu0 %v618_v30  ;;  %4653 = vst [vmem:[#allocation39_spill] sm:$0xff] %v3960_v5  ;;  %v894_v30 = vld [vmem:[#allocation8 + $0xf8] sm:$0xf]  ;;  %v3983_v51 = vcombine.high %v895_v36, %v897_v41 }
 0x3e9   :  { %1056 = vmatpush1.bf16.msra.mxu1 %v3945_v4  ;;  %2990 = vmatpush3.bf16.msra.mxu0 %v3949_v29  ;;  %v3980_v49 = vcombine.low %v892_v27, %v894_v30  ;;  %v898_v56 = vld [vmem:[#allocation8 + $0x138] sm:$0xf] }
 0x3ea   :  { %1057 = vmatprep.subr.bf16.mxu1 %v3951_v37  ;;  %2991 = vmatprep.subr.bf16.mxu0 %v4565_v0  ;;  %4659 = vst [vmem:[#allocation45_spill] sm:$0xff] %v3983_v51  ;;  %v3990_v12 = vcombine.low %v896_v55, %v898_v56  ;;  %v900_v27 = vld [vmem:[#allocation8 + $0x158] sm:$0xf] }
 0x3eb   :  { %1087 = vmatprep.mubr.bf16.mxu1 %v4539_v1  ;;  %3005 = vmatprep.mubr.msk.bf16.mxu0 %vm3654_vm0, %v4565_v0  ;;  %4658 = vst [vmem:[#allocation44_spill] sm:$0xff] %v3980_v49  ;;  %v3987_v1 = vcombine.low %v895_v36, %v897_v41  ;;  %v902_v30 = vld [vmem:[#allocation8 + $0x178] sm:$0xf] }
 0x3ec   :  { %4661 = vst [vmem:[#allocation47_spill] sm:$0xff] %v3990_v12  ;;  %v4000_v36 = vcombine.low %v900_v27, %v902_v30  ;;  %v904_v55 = vld [vmem:[#allocation8 + $0x198] sm:$0xf] }
 0x3ed   :  { %1058 = vmatpush1.bf16.msra.mxu1 %v3954_v60  ;;  %2992 = vmatpush3.bf16.msra.mxu0 %v3957_v61  ;;  %4660 = vst [vmem:[#allocation46_spill] sm:$0xff] %v3987_v1  ;;  %v906_v56 = vld [vmem:[#allocation8 + $0x1b8] sm:$0xf] }
 0x3ee   :  { %1059 = vmatprep.subr.bf16.mxu1 %v3960_v5  ;;  %2993 = vmatprep.subr.bf16.mxu0 %v4565_v0  ;;  %4664 = vst [vmem:[#allocation50_spill] sm:$0xff] %v4000_v36  ;;  %v908_v27 = vld [vmem:[#allocation8 + $0x1d8] sm:$0xf] }
 0x3ef   :  { %v910_v30 = vld [vmem:[#allocation8 + $0x1f8] sm:$0xf] }
 0x3f1   :  { %1060 = vmatpush1.bf16.msra.mxu1 %v3967_v17  ;;  %2994 = vmatpush3.bf16.msra.mxu0 %v3970_v21  ;;  %v905_v21 = vld [vmem:[#allocation8 + $0x1b0] sm:$0xff]  ;;  %v3997_v17 = vcombine.low %v899_v8, %v901_v10  ;;  %v4010_v8 = vcombine.low %v904_v55, %v906_v56  ;;  %v652_v56 = vlaneseq }
 0x3f2   :  { %1061 = vmatprep.subr.bf16.mxu1 %v3973_v26  ;;  %2995 = vmatprep.subr.bf16.mxu0 %v4565_v0  ;;  %v903_v26 = vld [vmem:[#allocation8 + $0x190] sm:$0xff] }
 0x3f3   :  { %4663 = vst [vmem:[#allocation49_spill] sm:$0xff] %v3997_v17  ;;  %v4003_v41 = vcombine.high %v903_v26, %v905_v21  ;;  %4667 = vst [vmem:[#allocation53_spill] sm:$0xff] %v4010_v8 }
 0x3f5   :  { %1062 = vmatpush1.bf16.msra.mxu1 %v3977_v42  ;;  %2996 = vmatpush3.bf16.msra.mxu0 %v3980_v49  ;;  %4665 = vst [vmem:[#allocation51_spill] sm:$0xff] %v4003_v41  ;;  %v909_v49 = vld [vmem:[#allocation8 + $0x1f0] sm:$0xff]  ;;  %v4007_v42 = vcombine.low %v903_v26, %v905_v21  ;;  %v4020_v21 = vcombine.low %v908_v27, %v910_v30  ;;  %v653_v27 = vshrl.u32 %v652_v56, 7 }
 0x3f6   :  { %1063 = vmatprep.subr.bf16.mxu1 %v3983_v51  ;;  %2997 = vmatprep.subr.bf16.mxu0 %v4565_v0  ;;  %v907_v51 = vld [vmem:[#allocation8 + $0x1d0] sm:$0xff] }
 0x3f7   :  { %4666 = vst [vmem:[#allocation52_spill] sm:$0xff] %v4007_v42  ;;  %v4013_v10 = vcombine.high %v907_v51, %v909_v49  ;;  %4670 = vst [vmem:[#allocation56_spill] sm:$0xff] %v4020_v21  ;;  %v654_v30 = vsub.s32 0, %v653_v27  ;;  %v662_v4 = vsub.s32 2, %v653_v27 }
 0x3f9   :  { %1064 = vmatpush1.bf16.msra.mxu1 %v3987_v1  ;;  %2998 = vmatpush3.bf16.msra.mxu0 %v3990_v12  ;;  %4668 = vst [vmem:[#allocation54_spill] sm:$0xff] %v4013_v10 }
 0x3fa   :  { %1065 = vmatprep.subr.bf16.mxu1 %v3993_v13  ;;  %2999 = vmatprep.subr.bf16.mxu0 %v4565_v0  ;;  %v4017_v13 = vcombine.low %v907_v51, %v909_v49 }
 0x3fc   :  { %4669 = vst [vmem:[#allocation55_spill] sm:$0xff] %v4017_v13 }
 0x3fd   :  { %1066 = vmatpush1.bf16.msra.mxu1 %v3997_v17  ;;  %3000 = vmatpush3.bf16.msra.mxu0 %v4000_v36 }
 0x3fe   :  { %1067 = vmatprep.subr.bf16.mxu1 %v4003_v41  ;;  %3001 = vmatprep.subr.bf16.mxu0 %v4565_v0 }
 0x401   :  { %1068 = vmatpush1.bf16.msra.mxu1 %v4007_v42  ;;  %3002 = vmatpush3.bf16.msra.mxu0 %v4010_v8 }
 0x402   :  { %1069 = vmatprep.subr.bf16.mxu1 %v4013_v10  ;;  %3003 = vmatprep.subr.bf16.mxu0 %v4565_v0 }
 0x405   :  { %1070 = vmatpush1.bf16.msra.mxu1 %v4017_v13  ;;  %3004 = vmatpush3.bf16.msra.mxu0 %v4020_v21  ;;  %v97_v21 = vld [vmem:[%s4537_s5 + $0x6] sm:$0x7]  ;;  %v658_v13 = vsub.s32 1, %v653_v27 }
 0x406   :  { %3009 = vmatprep.subr.bf16.mxu1 %v4565_v0  ;;  %3029 = vmatprep.subr.bf16.mxu0 %v4565_v0  ;;  %v915_v8 = vrot.slane %v97_v21, %v654_v30 }
 0x408   :  { %1088 = vmatmul.mubr.bf16.vlgmr.msra.gmra.mrb[12].mxu1 %v3815_v47  ;;  %3006 = vmatmul.mubr.bf16.vlgmr.msra.gmra.mrb[20].mxu0 %v3815_v47  ;;  %v96_v47 = vld [vmem:[%s4537_s5 + $0x3] sm:$0x7] }
 0x409   :  { %3025 = vmatprep.mubr.msk.bf16.mxu1 %vm3654_vm0, %v4565_v0  ;;  %3045 = vmatprep.mubr.msk.bf16.mxu0 %vm3654_vm0, %v4565_v0  ;;  %v655_v10 = vrot.slane %v96_v47, %v654_v30  ;;  %v659_v42 = vrot.slane %v96_v47, %v658_v13  ;;  %v919_v0 = vrot.slane %v97_v21, %v658_v13 }
 0x40b   :  { %v4040_v41 = vadd.f32 %v915_v8, %v655_v10 }
 0x40d   :  { %4671 = vst [vmem:[#allocation57_spill] sm:$0xff] %v4040_v41 }
 0x4bb   :  { %v872_v26 = vpop.f32.mrb[16].mxu0 }
 0x4bc   :  { %v2987_v49 = vpop.f32.mrb[17].mxu0 }
 0x4bd   :  { %v875_v51 = vpop.f32.mrb[18].mxu0 }
 0x4be   :  { %v2988_v55 = vpop.f32.mrb[19].mxu0 }
 0x4bf   :  { %v4042_v55 = vadd.f32 %v919_v0, %v659_v42 }
 0x4c1   :  { %4672 = vst [vmem:[#allocation58_spill] sm:$0xff] %v4042_v55 }
 0x4db   :  { %v1089_v49 = vpop.f32.mrb[12].mxu1  ;;  %v1132_v56 = vpop.f32.mrb[20].mxu0 }
 0x4dc   :  { %v3298_v36 = vadd.f32 %v4040_v41, %v1089_v49  ;;  %v1091_v17 = vpop.f32.mrb[13].mxu1  ;;  %v3007_v12 = vpop.f32.mrb[21].mxu0 }
 0x4dd   :  { %v1093_v1 = vpop.f32.mrb[14].mxu1  ;;  %v1135_v5 = vpop.f32.mrb[22].mxu0  ;;  %v3300_v30 = vadd.f32 %v4042_v55, %v1091_v17 }
 0x4de   :  { %v2730_v61 = vmul.f32 -1.442695, %v3298_v36  ;;  %v3302_v60 = vadd.f32 %v4040_v41, %v1093_v1  ;;  %v1095_v37 = vpop.f32.mrb[15].mxu1  ;;  %v3008_v29 = vpop.f32.mrb[23].mxu0  ;;  %v4048_v1 = vrot.slane %v97_v21, %v662_v4  ;;  %v4130_v41 = vld [vmem:[%s4537_s5 + $0x9] ss:$0 sm:$0xff] }
 0x4df   :  { %v3304_v8 = vadd.f32 %v4042_v55, %v1095_v37  ;;  %v2732_v0 = vmul.f32 -1.442695, %v3300_v30 }
 0x4e0   :  { %3392 = vpow2.f32 %v2730_v61  ;;  %v2731_v13 = vmul.f32 -1.442695, %v3302_v60  ;;  %4673 = vst [vmem:[#allocation59_spill] sm:$0xff] %v4048_v1  ;;  %v4050_v61 = vrot.slane %v96_v47, %v662_v4  ;;  %v1133_v37 = vadd.f32 %v1132_v56, %v4048_v1 }
 0x4e1   :  { %v2733_v42 = vmul.f32 -1.442695, %v3304_v8 }
 0x4e2   :  { %3394 = vpow2.f32 %v2731_v13  ;;  %4674 = vst [vmem:[#allocation60_spill] sm:$0xff] %v4050_v61  ;;  %v873_v8 = vadd.f32 %v872_v26, %v4050_v61  ;;  %v876_v27 = vadd.f32 %v875_v51, %v4050_v61 }
 0x4e3   :  { %3396 = vpow2.f32 %v2732_v0 }
 0x4e4   :  { %3398 = vpow2.f32 %v2733_v42  ;;  %v1136_v42 = vadd.f32 %v1135_v5, %v4048_v1 }
 0x4ea   :  { %v3393_v10 = vpop.eup %3392 }
 0x4eb   :  { %v1147_v12 = vadd.f32 1.0, %v3393_v10 }
 0x4ec   :  { %v3395_v49 = vpop.eup %3394 }
 0x4ed   :  { %3400 = vrcp.f32 %v1147_v12  ;;  %v1148_v36 = vadd.f32 1.0, %v3395_v49  ;;  %v3397_v29 = vpop.eup %3396 }
 0x4ee   :  { %v3399_v17 = vpop.eup %3398  ;;  %v1161_v60 = vadd.f32 1.0, %v3397_v29 }
 0x4ef   :  { %3402 = vrcp.f32 %v1148_v36  ;;  %v1162_v30 = vadd.f32 1.0, %v3399_v17 }
 0x4f0   :  { %3404 = vrcp.f32 %v1161_v60 }
 0x4f1   :  { %3406 = vrcp.f32 %v1162_v30  ;;  %v1221_v30 = vld [vmem:[#allocation8 + $0x1c] sm:$0xf] }
 0x4f7   :  { %v3401_v13 = vpop.eup %3400 }
 0x4f8   :  { %v1167_v0 = vmul.f32 %v3401_v13, %v1133_v37 }
 0x4f9   :  { %v3403_v10 = vpop.eup %3402 }
 0x4fa   :  { %v1169_v21 = vadd.f32 %v1167_v0, %v873_v8  ;;  %v1168_v12 = vmul.f32 %v3403_v10, %v1136_v42  ;;  %v3405_v47 = vpop.eup %3404  ;;  %v1222_v8 = vld [vmem:[#allocation8 + $0x3c] sm:$0xf]  ;;  %v4676_v42 = vmov 0.0  }
 0x4fb   :  { %v3407_v49 = vpop.eup %3406  ;;  %v1173_v56 = vsub.f32 1.0, %v3405_v47  ;;  %v1177_v26 = vmul.f32 %v3405_v47, %v3807_v45  ;;  %v4058_v0 = vcombine.low %v1221_v30, %v1222_v8  ;;  %v1231_v8 = vld [vmem:[#allocation8 + $0x15c] sm:$0xf] }
 0x4fc   :  { %3408 = vtanh.f32 %v1169_v21  ;;  %v1170_v4 = vadd.f32 %v1168_v12, %v876_v27  ;;  %v1174_v17 = vsub.f32 1.0, %v3407_v49  ;;  %v1178_v13 = vmul.f32 %v3407_v49, %v3809_v46  ;;  %v1223_v49 = vld [vmem:[#allocation8 + $0x5c] sm:$0xf] }
 0x4fd   :  { %4675 = vst [vmem:[#allocation61_spill] sm:$0xff] %v4058_v0  ;;  %3010 = vmatpush3.bf16.msra.mxu1 %v4058_v0 }
 0x4fe   :  { %3410 = vtanh.f32 %v1170_v4  ;;  %3011 = vmatprep.subr.bf16.mxu1 %v4676_v42 }
 0x506   :  { %v3409_v36 = vpop.eup %3408 }
 0x507   :  { %v1175_v29 = vmul.f32 %v3409_v36, %v1173_v56  ;;  %v1224_v56 = vld [vmem:[#allocation8 + $0x7c] sm:$0xf] }
 0x508   :  { %v3411_v60 = vpop.eup %3410  ;;  %v4070_v36 = vcombine.low %v1223_v49, %v1224_v56  ;;  %v1236_v49 = vld [vmem:[#allocation8 + $0x1fc] sm:$0xf] }
 0x509   :  { %v1179_v37 = vadd.f32 %v1177_v26, %v1175_v29  ;;  %v1176_v5 = vmul.f32 %v3411_v60, %v1174_v17  ;;  %v1225_v29 = vld [vmem:[#allocation8 + $0x9c] sm:$0xf] }
 0x50a   :  { %4677 = vst [vmem:[#allocation62_spill] sm:$0xff] %v4070_v36  ;;  %3012 = vmatpush3.bf16.msra.mxu1 %v4070_v36  ;;  %v1226_v26 = vld [vmem:[#allocation8 + $0xbc] sm:$0xf] }
 0x50b   :  { %1181 = vadd.xlane.f32.xlu1 %v1179_v37  ;;  %v1180_v51 = vadd.f32 %v1178_v13, %v1176_v5  ;;  %3013 = vmatprep.subr.bf16.mxu1 %v4676_v42  ;;  %v4074_v17 = vcombine.low %v1225_v29, %v1226_v26  ;;  %v1227_v60 = vld [vmem:[#allocation8 + $0xdc] sm:$0xf]  ;;  %v4098_v29 = vld [vmem:[#allocation10] sm:$0xff]   ;;  %v4101_v26 = vld [vmem:[#allocation10 + $0x8] sm:$0xff]  }
 0x50c   :  { %v1229_v13 = vld [vmem:[#allocation8 + $0x11c] sm:$0xf]  ;;  %3030 = vmatpush3.bf16.msra.mxu0 %v4098_v29 }
 0x50d   :  { %4678 = vst [vmem:[#allocation63_spill] sm:$0xff] %v4074_v17  ;;  %3031 = vmatprep.subr.bf16.mxu0 %v4676_v42 }
 0x50e   :  { %3014 = vmatpush3.bf16.msra.mxu1 %v4074_v17 }
 0x50f   :  { %1183 = vadd.xlane.f32.xlu1 %v1180_v51  ;;  %3015 = vmatprep.subr.bf16.mxu1 %v4676_v42 }
 0x510   :  { %3032 = vmatpush3.bf16.msra.mxu0 %v4101_v26 }
 0x511   :  { %3033 = vmatprep.subr.bf16.mxu0 %v4676_v42 }
 0x598   :  { %v1182_v10 = vpop.xlane.xlu1 %1181 }
 0x599   :  { %v1186_v27 = vmul.f32 0.0078125, %v1182_v10  ;;  %v1232_v10 = vld [vmem:[#allocation8 + $0x17c] sm:$0xf] }
 0x59b   :  { %v4062_v45 = vsub.f32 %v1179_v37, %v1186_v27  ;;  %v1228_v37 = vld [vmem:[#allocation8 + $0xfc] sm:$0xf]  ;;  %v4086_v27 = vcombine.low %v1231_v8, %v1232_v10  ;;  %v4121_v8 = vld [vmem:[#allocation10 + $0x30] sm:$0xff]  }
 0x59c   :  { %v1184_v21 = vpop.xlane.xlu1 %1183  ;;  %v4078_v5 = vcombine.low %v1227_v60, %v1228_v37  ;;  %v4105_v60 = vld [vmem:[#allocation10 + $0x10] sm:$0xff]   ;;  %v4109_v37 = vld [vmem:[#allocation10 + $0x18] sm:$0xff]   ;;  %4684 = vst [vmem:[#allocation69_spill] sm:$0xff] %v4121_v8 }
 0x59d   :  { %v1187_v12 = vmul.f32 0.0078125, %v1184_v21  ;;  %v1190_v46 = vmul.f32 %v4062_v45, %v4062_v45  ;;  %4681 = vst [vmem:[#allocation66_spill] sm:$0xff] %v4086_v27  ;;  %v1233_v21 = vld [vmem:[#allocation8 + $0x19c] sm:$0xf]  ;;  %3034 = vmatpush3.bf16.msra.mxu0 %v4105_v60 }
 0x59e   :  { %4679 = vst [vmem:[#allocation64_spill] sm:$0xff] %v4078_v5  ;;  %3016 = vmatpush3.bf16.msra.mxu1 %v4078_v5  ;;  %3035 = vmatprep.subr.bf16.mxu0 %v4676_v42 }
 0x59f   :  { %v4066_v4 = vsub.f32 %v1180_v51, %v1187_v12  ;;  %1192 = vadd.xlane.f32.xlu0 %v1190_v46  ;;  %3017 = vmatprep.subr.bf16.mxu1 %v4676_v42  ;;  %v1230_v51 = vld [vmem:[#allocation8 + $0x13c] sm:$0xf] }
 0x5a0   :  { %v4082_v30 = vcombine.low %v1229_v13, %v1230_v51  ;;  %v1234_v12 = vld [vmem:[#allocation8 + $0x1bc] sm:$0xf]  ;;  %v4113_v13 = vld [vmem:[#allocation10 + $0x20] sm:$0xff]   ;;  %v4117_v51 = vld [vmem:[#allocation10 + $0x28] sm:$0xff]  }
 0x5a1   :  { %v1191_v47 = vmul.f32 %v4066_v4, %v4066_v4  ;;  %v4090_v46 = vcombine.low %v1233_v21, %v1234_v12  ;;  %3036 = vmatpush3.bf16.msra.mxu0 %v4109_v37 }
 0x5a2   :  { %4680 = vst [vmem:[#allocation65_spill] sm:$0xff] %v4082_v30  ;;  %3018 = vmatpush3.bf16.msra.mxu1 %v4082_v30  ;;  %3037 = vmatprep.subr.bf16.mxu0 %v4676_v42 }
 0x5a3   :  { %1194 = vadd.xlane.f32.xlu1 %v1191_v47  ;;  %3019 = vmatprep.subr.bf16.mxu1 %v4676_v42  ;;  %4682 = vst [vmem:[#allocation67_spill] sm:$0xff] %v4090_v46  ;;  %v1235_v47 = vld [vmem:[#allocation8 + $0x1dc] sm:$0xf] }
 0x5a4   :  { %v4093_v56 = vcombine.low %v1235_v47, %v1236_v49 }
 0x5a5   :  { %3038 = vmatpush3.bf16.msra.mxu0 %v4113_v13 }
 0x5a6   :  { %3020 = vmatpush3.bf16.msra.mxu1 %v4086_v27  ;;  %4683 = vst [vmem:[#allocation68_spill] sm:$0xff] %v4093_v56  ;;  %3039 = vmatprep.subr.bf16.mxu0 %v4676_v42 }
 0x5a7   :  { %3021 = vmatprep.subr.bf16.mxu1 %v4676_v42 }
 0x5a9   :  { %3040 = vmatpush3.bf16.msra.mxu0 %v4117_v51 }
 0x5aa   :  { %3022 = vmatpush3.bf16.msra.mxu1 %v4090_v46  ;;  %3041 = vmatprep.subr.bf16.mxu0 %v4676_v42 }
 0x5ab   :  { %3023 = vmatprep.subr.bf16.mxu1 %v4676_v42 }
 0x5ad   :  { %3042 = vmatpush3.bf16.msra.mxu0 %v4121_v8 }
 0x5ae   :  { %3024 = vmatpush3.bf16.msra.mxu1 %v4093_v56  ;;  %3043 = vmatprep.subr.bf16.mxu0 %v4676_v42 }
 0x5af   :  { %3049 = vmatprep.subr.bf16.mxu1 %v4676_v42 }
 0x62c   :  { %v1193_v10 = vpop.xlane.xlu0 %1192 }
 0x62d   :  { %v1196_v21 = vmul.f32 0.0078125, %v1193_v10  ;;  %v4137_v10 = vld [vmem:[%s4537_s5 + $0xa] ss:$0 sm:$0xff] }
 0x62f   :  { %v1198_v12 = vadd.f32 1e-05, %v1196_v21 }
 0x630   :  { %v1195_v47 = vpop.xlane.xlu1 %1194 }
 0x631   :  { %3412 = vrsqrt.f32 %v1198_v12  ;;  %v1197_v49 = vmul.f32 0.0078125, %v1195_v47 }
 0x633   :  { %v1199_v61 = vadd.f32 1e-05, %v1197_v49 }
 0x635   :  { %3414 = vrsqrt.f32 %v1199_v61 }
 0x63b   :  { %v3413_v1 = vpop.eup %3412 }
 0x63c   :  { %v1202_v55 = vmul.f32 %v3413_v1, %v4062_v45 }
 0x63e   :  { %v1210_v46 = vmul.f32 %v4130_v41, %v1202_v55  ;;  %v4160_v55 = vld [vmem:[#allocation10 + $0x38] sm:$0xff]  }
 0x63f   :  { %v3415_v56 = vpop.eup %3414  ;;  %3044 = vmatpush3.bf16.msra.mxu0 %v4160_v55 }
 0x640   :  { %v1203_v8 = vmul.f32 %v3415_v56, %v4066_v4  ;;  %v1218_v21 = vadd.f32 %v4137_v10, %v1210_v46  ;;  %3069 = vmatprep.subr.bf16.mxu0 %v4676_v42  ;;  %v4167_v4 = vld [vmem:[%s4537_s5 + $0xb] ss:$0 sm:$0xff] }
 0x642   :  { %v1211_v61 = vmul.f32 %v4130_v41, %v1203_v8 }
 0x644   :  { %v1219_v1 = vadd.f32 %v4137_v10, %v1211_v61 }
 0x646   :  { %v1220_v45 = vpack.c.bf16 %v1219_v1, %v1218_v21 }
 0x648   :  { %3026 = vmatmul.mubr.bf16.vlgmr.msra.gmra.mrb[16].mxu1 %v1220_v45 }
 0x649   :  { %3050 = vmatpush3.bf16.msra.mxu1 %v3778_v9  ;;  %3065 = vmatprep.mubr.msk.bf16.mxu1 %vm3654_vm0, %v4676_v42 }
 0x64a   :  { %3051 = vmatprep.subr.bf16.mxu1 %v4676_v42 }
 0x64d   :  { %3052 = vmatpush3.bf16.msra.mxu1 %v3781_v14 }
 0x64e   :  { %3053 = vmatprep.subr.bf16.mxu1 %v4676_v42 }
 0x651   :  { %3054 = vmatpush3.bf16.msra.mxu1 %v3785_v19 }
 0x652   :  { %3055 = vmatprep.subr.bf16.mxu1 %v4676_v42 }
 0x655   :  { %3056 = vmatpush3.bf16.msra.mxu1 %v3789_v23 }
 0x656   :  { %3057 = vmatprep.subr.bf16.mxu1 %v4676_v42 }
 0x659   :  { %3058 = vmatpush3.bf16.msra.mxu1 %v3793_v31 }
 0x65a   :  { %3059 = vmatprep.subr.bf16.mxu1 %v4676_v42 }
 0x65d   :  { %3060 = vmatpush3.bf16.msra.mxu1 %v3797_v33 }
 0x65e   :  { %3061 = vmatprep.subr.bf16.mxu1 %v4676_v42 }
 0x661   :  { %3062 = vmatpush3.bf16.msra.mxu1 %v3801_v40 }
 0x662   :  { %3063 = vmatprep.subr.bf16.mxu1 %v4676_v42 }
 0x665   :  { %3064 = vmatpush3.bf16.msra.mxu1 %v3805_v44 }
 0x666   :  { %1715 = vmatprep.subr.bf16.mxu1 %v3861_v34 }
 0x71b   :  { %v1325_v46 = vpop.f32.mrb[16].mxu1 }
 0x71c   :  { %v1326_v56 = vadd.f32 %v4167_v4, %v1325_v46  ;;  %v3027_v8 = vpop.f32.mrb[17].mxu1  ;;  %v4178_v46 = vld [vmem:[%s4537_s5 + $0xc] ss:$0 sm:$0xff] }
 0x71d   :  { %v1328_v12 = vpop.f32.mrb[18].mxu1 }
 0x71e   :  { %v1329_v47 = vadd.f32 %v4167_v4, %v1328_v12  ;;  %v3028_v49 = vpop.f32.mrb[19].mxu1  ;;  %v1332_v61 = vmax.f32 %v1326_v56, 0.0 }
 0x720   :  { %v1333_v45 = vmax.f32 %v1329_v47, 0.0 }
 0x722   :  { %v1334_v34 = vpack.c.bf16 %v1333_v45, %v1332_v61 }
 0x724   :  { %3046 = vmatmul.mubr.bf16.vlgmr.msra.gmra.mrb[24].mxu0 %v1334_v34 }
 0x725   :  { %3070 = vmatpush3.bf16.xpose.msra.mxu0 %v3834_v63  ;;  %3071 = vmatprep.mubr.msk.bf16.mxu0 %vm3654_vm0, %v4676_v42 }
 0x726   :  { %3075 = vmatprep.subr.bf16.mxu0 %v4676_v42 }
 0x7f7   :  { %v1433_v44 = vpop.f32.mrb[24].mxu0 }
 0x7f8   :  { %v1440_v40 = vadd.f32 %v1433_v44, %v1218_v21  ;;  %v3047_v33 = vpop.f32.mrb[25].mxu0  ;;  %v4211_v44 = vld [vmem:[%s4537_s5] ss:$0 sm:$0xff] }
 0x7f9   :  { %v1436_v8 = vpop.f32.mrb[26].mxu0  ;;  %v4685_v33 = vmov 0   ;;  %4686 = vst [vmem:[#allocation70_spill] sm:$0xff] %v4211_v44 }
 0x7fa   :  { %v1441_v56 = vadd.f32 %v1436_v8, %v1219_v1  ;;  %v3048_v12 = vpop.f32.mrb[27].mxu0  ;;  %v4181_v34 = vadd.f32 %v4178_v46, %v1440_v40 }
 0x7fc   :  { %v4184_v47 = vadd.f32 %v4178_v46, %v1441_v56 }
 0x7fe   :  { %v4188_v49 = vpack.c.bf16 %v4184_v47, %v4181_v34 }
 0x800   :  { %3066 = vmatmul.mubr.bf16.vlgmr.msra.gmra.mrb[20].mxu1 %v4188_v49 }
 0x801   :  { %1716 = vmatpush1.bf16.msra.mxu1 %v3859_v32  ;;  %1747 = vmatprep.mubr.bf16.mxu1 %v4685_v33 }
 0x802   :  { %1717 = vmatprep.subr.bf16.mxu1 %v3864_v43 }
 0x805   :  { %1718 = vmatpush1.bf16.msra.mxu1 %v3868_v50 }
 0x806   :  { %1719 = vmatprep.subr.bf16.mxu1 %v3872_v53 }
 0x809   :  { %1720 = vmatpush1.bf16.msra.mxu1 %v3877_v59 }
 0x80a   :  { %1721 = vmatprep.subr.bf16.mxu1 %v3880_v2 }
 0x80d   :  { %1722 = vmatpush1.bf16.msra.mxu1 %v3887_v7 }
 0x80e   :  { %1723 = vmatprep.subr.bf16.mxu1 %v3891_v11 }
 0x811   :  { %1724 = vmatpush1.bf16.msra.mxu1 %v3899_v16 }
 0x812   :  { %1725 = vmatprep.subr.bf16.mxu1 %v3903_v22 }
 0x815   :  { %1726 = vmatpush1.bf16.msra.mxu1 %v3909_v25 }
 0x816   :  { %1727 = vmatprep.subr.bf16.mxu1 %v3923_v38 }
 0x819   :  { %1728 = vmatpush1.bf16.msra.mxu1 %v3925_v39 }
 0x81a   :  { %1729 = vmatprep.subr.bf16.mxu1 %v3935_v54 }
 0x81d   :  { %1730 = vmatpush1.bf16.msra.mxu1 %v3933_v52 }
 0x81e   :  { %1799 = vmatprep.subr.bf16.mxu1 %v3943_v62 }
 0x8d3   :  { %v1485_v40 = vpop.f32.mrb[20].mxu1 }
 0x8d4   :  { %v1486_v21 = vadd.f32 %v4211_v44, %v1485_v40  ;;  %v3067_v1 = vpop.f32.mrb[21].mxu1 }
 0x8d5   :  { %v1488_v61 = vpop.f32.mrb[22].mxu1 }
 0x8d6   :  { %v1492_v45 = vpack.c.bf16 %v1486_v21, %v1486_v21  ;;  %v3068_v8 = vpop.f32.mrb[23].mxu1  ;;  %v1489_v56 = vadd.f32 %v4211_v44, %v1488_v61 }
 0x8d8   :  { %3072 = vmatmul.mubr.bf16.vlgmr.msra.gmra.mrb[28].mxu0 %v1492_v45  ;;  %v1493_v12 = vpack.c.bf16 %v1489_v56, %v1489_v56 }
 0x8d9   :  { %3076 = vmatpush3.bf16.xpose.msra.mxu0 %v3840_v18  ;;  %3077 = vmatprep.mubr.msk.bf16.mxu0 %vm3654_vm0, %v4676_v42 }
 0x8da   :  { %3081 = vmatprep.subr.bf16.mxu0 %v4676_v42 }
 0x8e0   :  { %3078 = vmatmul.mubr.bf16.vlgmr.msra.gmra.mrb[32].mxu0 %v1493_v12 }
 0x8e1   :  { %3082 = vmatpush3.bf16.msra.mxu0 %v3836_v3  ;;  %3083 = vmatprep.mubr.msk.bf16.mxu0 %vm3654_vm0, %v4676_v42 }
 0x8e2   :  { %3087 = vmatprep.subr.bf16.mxu0 %v4676_v42 }
 0x9ab   :  { %v1528_v40 = vpop.f32.mrb[28].mxu0 }
 0x9ac   :  { %v1574_v21 = vmul.f32 0.088388346, %v1528_v40  ;;  %v3073_v1 = vpop.f32.mrb[29].mxu0 }
 0x9ad   :  { %v1531_v45 = vpop.f32.mrb[30].mxu0 }
 0x9ae   :  { %v1576_v8 = vsel %vm479_vm1, %v1574_v21, -inf  ;;  %v3074_v18 = vpop.f32.mrb[31].mxu0 }
 0x9af   :  { %v1577_v62 = vrot.slane %v1576_v8, 4 }
 0x9b1   :  { %v1578_v61 = vmax.f32 %v1576_v8, %v1577_v62 }
 0x9b3   :  { %v1579_v44 = vrot.slane %v1578_v61, 2  ;;  %v1568_v52 = vpop.f32.mrb[32].mxu0 }
 0x9b4   :  { %v1575_v56 = vmul.f32 0.088388346, %v1568_v52  ;;  %v3079_v12 = vpop.f32.mrb[33].mxu0 }
 0x9b5   :  { %v1580_v54 = vmax.f32 %v1578_v61, %v1579_v44  ;;  %v1571_v3 = vpop.f32.mrb[34].mxu0 }
 0x9b6   :  { %v1583_v39 = vsel %vm479_vm1, %v1575_v56, -inf  ;;  %v3080_v38 = vpop.f32.mrb[35].mxu0 }
 0x9b7   :  { %v1581_v25 = vrot.slane %v1580_v54, 1  ;;  %v1584_v22 = vrot.slane %v1583_v39, 4 }
 0x9b9   :  { %v1582_v16 = vmax.f32 %v1580_v54, %v1581_v25  ;;  %v1585_v40 = vmax.f32 %v1583_v39, %v1584_v22 }
 0x9bb   :  { %v1590_v1 = vsub.f32 %v1574_v21, %v1582_v16  ;;  %v1586_v45 = vrot.slane %v1585_v40, 2 }
 0x9bd   :  { %v1592_v11 = vmul.f32 1.442695, %v1590_v1  ;;  %v1587_v7 = vmax.f32 %v1585_v40, %v1586_v45 }
 0x9bf   :  { %3416 = vpow2.f32 %v1592_v11  ;;  %v1588_v18 = vrot.slane %v1587_v7, 1 }
 0x9c1   :  { %v1589_v62 = vmax.f32 %v1587_v7, %v1588_v18 }
 0x9c3   :  { %v1591_v8 = vsub.f32 %v1575_v56, %v1589_v62 }
 0x9c5   :  { %v1594_v2 = vmul.f32 1.442695, %v1591_v8 }
 0x9c7   :  { %3418 = vpow2.f32 %v1594_v2 }
 0x9c9   :  { %v3417_v52 = vpop.eup %3416 }
 0x9ca   :  { %v1596_v3 = vsel %vm479_vm1, %v3417_v52, 0.0 }
 0x9cb   :  { %v1597_v44 = vrot.slane %v1596_v3, 4 }
 0x9cd   :  { %v1598_v61 = vadd.f32 %v1597_v44, %v1596_v3 }
 0x9cf   :  { %v1599_v38 = vrot.slane %v1598_v61, 2 }
 0x9d1   :  { %v3419_v12 = vpop.eup %3418  ;;  %v1600_v59 = vadd.f32 %v1599_v38, %v1598_v61 }
 0x9d2   :  { %v1603_v22 = vsel %vm479_vm1, %v3419_v12, 0.0 }
 0x9d3   :  { %v1604_v16 = vrot.slane %v1603_v22, 4  ;;  %v1601_v25 = vrot.slane %v1600_v59, 1 }
 0x9d5   :  { %v1605_v39 = vadd.f32 %v1604_v16, %v1603_v22  ;;  %v1602_v54 = vadd.f32 %v1601_v25, %v1600_v59 }
 0x9d7   :  { %v1606_v11 = vrot.slane %v1605_v39, 2  ;;  %3420 = vrcp.f32 %v1602_v54 }
 0x9d9   :  { %v1607_v7 = vadd.f32 %v1606_v11, %v1605_v39 }
 0x9db   :  { %v1608_v21 = vrot.slane %v1607_v7, 1 }
 0x9dd   :  { %v1609_v56 = vadd.f32 %v1608_v21, %v1607_v7 }
 0x9df   :  { %3422 = vrcp.f32 %v1609_v56 }
 0x9e1   :  { %v3421_v2 = vpop.eup %3420 }
 0x9e2   :  { %v1612_v40 = vmul.f32 %v3421_v2, %v3417_v52 }
 0x9e4   :  { %v1614_v1 = vadd.f32 1e-06, %v1612_v40 }
 0x9e6   :  { %v1616_v45 = vsel %vm479_vm1, %v1614_v1, 0.0 }
 0x9e7   :  { %1617 = vadd.xlane.f32.xlu0 %v1616_v45  ;;  %v4688_v45 = vld [vmem:[#allocation35_spill] sm:$0xff] }
 0x9e9   :  { %v3423_v18 = vpop.eup %3422 }
 0x9ea   :  { %v1613_v62 = vmul.f32 %v3423_v18, %v3419_v12  ;;  %v4689_v18 = vld [vmem:[#allocation36_spill] sm:$0xff] }
 0x9ec   :  { %v1615_v8 = vadd.f32 1e-06, %v1613_v62  ;;  %v4690_v62 = vld [vmem:[#allocation37_spill] sm:$0xff] }
 0x9ee   :  { %v1619_v3 = vsel %vm479_vm1, %v1615_v8, 0.0 }
 0x9ef   :  { %1620 = vadd.xlane.f32.xlu1 %v1619_v3  ;;  %v4692_v3 = vld [vmem:[#allocation39_spill] sm:$0xff] }
 0xa74   :  { %v1618_v44 = vpop.xlane.xlu0 %1617 }
 0xa75   :  { %3424 = vrcp.f32 %v1618_v44  ;;  %v4693_v44 = vld [vmem:[#allocation40_spill] sm:$0xff] }
 0xa7c   :  { %v1621_v59 = vpop.xlane.xlu1 %1620 }
 0xa7d   :  { %3426 = vrcp.f32 %v1621_v59  ;;  %v4694_v59 = vld [vmem:[#allocation41_spill] sm:$0xff] }
 0xa7f   :  { %v3425_v61 = vpop.eup %3424 }
 0xa80   :  { %v1624_v38 = vmul.f32 %v3425_v61, %v1614_v1  ;;  %v4687_v1 = vld [vmem:[#allocation34_spill] sm:$0xff] }
 0xa81   :  { %v4695_v61 = vld [vmem:[#allocation42_spill] sm:$0xff] }
 0xa82   :  { %v1626_v22 = vpack.c.bf16 %v1624_v38, %v1624_v38  ;;  %v4696_v38 = vld [vmem:[#allocation43_spill] sm:$0xff] }
 0xa84   :  { %3084 = vmatmul.mubr.msk.bf16.vlgmr.msra.gmra.mrb[36].mxu0 %vm479_vm1, %v1626_v22  ;;  %v4697_v22 = vld [vmem:[#allocation44_spill] sm:$0xff] }
 0xa85   :  { %3088 = vmatpush3.bf16.msra.mxu0 %v3842_v20  ;;  %3089 = vmatprep.mubr.msk.bf16.mxu0 %vm3654_vm0, %v4676_v42 }
 0xa86   :  { %3093 = vmatprep.subr.bf16.mxu0 %v4676_v42 }
 0xa87   :  { %v3427_v52 = vpop.eup %3426 }
 0xa88   :  { %v1625_v12 = vmul.f32 %v3427_v52, %v1615_v8  ;;  %v4691_v8 = vld [vmem:[#allocation38_spill] sm:$0xff]  ;;  %v4698_v52 = vld [vmem:[#allocation45_spill] sm:$0xff] }
 0xa8a   :  { %v1627_v16 = vpack.c.bf16 %v1625_v12, %v1625_v12  ;;  %v4699_v12 = vld [vmem:[#allocation46_spill] sm:$0xff] }
 0xa8c   :  { %3090 = vmatmul.mubr.msk.bf16.vlgmr.msra.gmra.mrb[40].mxu0 %vm479_vm1, %v1627_v16  ;;  %v4700_v16 = vld [vmem:[#allocation47_spill] sm:$0xff] }
 0xa8d   :  { %3094 = vmatpush3.bf16.msra.mxu0 %v3874_v58  ;;  %3109 = vmatprep.mubr.msk.bf16.mxu0 %vm3654_vm0, %v4676_v42 }
 0xa8e   :  { %3095 = vmatprep.subr.bf16.mxu0 %v4676_v42 }
 0xa91   :  { %3096 = vmatpush3.bf16.msra.mxu0 %v3884_v6 }
 0xa92   :  { %3097 = vmatprep.subr.bf16.mxu0 %v4676_v42 }
 0xa95   :  { %3098 = vmatpush3.bf16.msra.mxu0 %v3896_v15 }
 0xa96   :  { %3099 = vmatprep.subr.bf16.mxu0 %v4676_v42 }
 0xa99   :  { %3100 = vmatpush3.bf16.msra.mxu0 %v3906_v24 }
 0xa9a   :  { %3101 = vmatprep.subr.bf16.mxu0 %v4676_v42 }
 0xa9d   :  { %3102 = vmatpush3.bf16.msra.mxu0 %v3914_v28 }
 0xa9e   :  { %3103 = vmatprep.subr.bf16.mxu0 %v4676_v42 }
 0xaa1   :  { %3104 = vmatpush3.bf16.msra.mxu0 %v3920_v35 }
 0xaa2   :  { %3105 = vmatprep.subr.bf16.mxu0 %v4676_v42 }
 0xaa5   :  { %3106 = vmatpush3.bf16.msra.mxu0 %v3929_v48 }
 0xaa6   :  { %3107 = vmatprep.subr.bf16.mxu0 %v4676_v42 }
 0xaa9   :  { %3108 = vmatpush3.bf16.msra.mxu0 %v3939_v57 }
 0xaaa   :  { %3113 = vmatprep.subr.bf16.mxu0 %v4676_v42 }
 0xb57   :  { %v1665_v25 = vpop.f32.mrb[36].mxu0 }
 0xb58   :  { %v3085_v39 = vpop.f32.mrb[37].mxu0 }
 0xb59   :  { %v1668_v54 = vpop.f32.mrb[38].mxu0  ;;  %v4702_v39 = vld [vmem:[#allocation49_spill] sm:$0xff] }
 0xb5a   :  { %v3086_v11 = vpop.f32.mrb[39].mxu0  ;;  %v4703_v54 = vld [vmem:[#allocation50_spill] sm:$0xff] }
 0xb5b   :  { %v4704_v11 = vld [vmem:[#allocation51_spill] sm:$0xff] }
 0xb5f   :  { %v1708_v7 = vpop.f32.mrb[40].mxu0 }
 0xb60   :  { %v1714_v21 = vpack.c.bf16 %v1708_v7, %v1665_v25  ;;  %v3091_v56 = vpop.f32.mrb[41].mxu0  ;;  %v4701_v25 = vld [vmem:[#allocation48_spill] sm:$0xff] }
 0xb61   :  { %v1711_v2 = vpop.f32.mrb[42].mxu0  ;;  %v4705_v7 = vld [vmem:[#allocation52_spill] sm:$0xff]  ;;  %v4707_v56 = vld [vmem:[#allocation54_spill] sm:$0xff] }
 0xb62   :  { %v3092_v40 = vpop.f32.mrb[43].mxu0  ;;  %1748 = vmatmul.mubr.bf16.vlgmr.msra.gmra.mrb[24].mxu1 %v1714_v21  ;;  %3110 = vmatmul.mubr.bf16.vlgmr.msra.gmra.mrb[44].mxu0 %v1714_v21  ;;  %v4706_v21 = vld [vmem:[#allocation53_spill] sm:$0xff]  ;;  %v4708_v2 = vld [vmem:[#allocation55_spill] sm:$0xff] }
 0xb63   :  { %1800 = vmatpush1.bf16.msra.mxu1 %v4687_v1  ;;  %3114 = vmatpush3.bf16.msra.mxu0 %v4688_v45  ;;  %v4709_v40 = vld [vmem:[#allocation56_spill] sm:$0xff] }
 0xb64   :  { %1801 = vmatprep.subr.bf16.mxu1 %v4689_v18  ;;  %3115 = vmatprep.subr.bf16.mxu0 %v4676_v42 }
 0xb65   :  { %1831 = vmatprep.mubr.bf16.mxu1 %v4685_v33  ;;  %3129 = vmatprep.mubr.msk.bf16.mxu0 %vm3654_vm0, %v4676_v42 }
 0xb67   :  { %1802 = vmatpush1.bf16.msra.mxu1 %v4690_v62  ;;  %3116 = vmatpush3.bf16.msra.mxu0 %v4691_v8 }
 0xb68   :  { %1803 = vmatprep.subr.bf16.mxu1 %v4692_v3  ;;  %3117 = vmatprep.subr.bf16.mxu0 %v4676_v42 }
 0xb6b   :  { %1804 = vmatpush1.bf16.msra.mxu1 %v4693_v44  ;;  %3118 = vmatpush3.bf16.msra.mxu0 %v4694_v59 }
 0xb6c   :  { %1805 = vmatprep.subr.bf16.mxu1 %v4695_v61  ;;  %3119 = vmatprep.subr.bf16.mxu0 %v4676_v42 }
 0xb6f   :  { %1806 = vmatpush1.bf16.msra.mxu1 %v4696_v38  ;;  %3120 = vmatpush3.bf16.msra.mxu0 %v4697_v22 }
 0xb70   :  { %1807 = vmatprep.subr.bf16.mxu1 %v4698_v52  ;;  %3121 = vmatprep.subr.bf16.mxu0 %v4676_v42 }
 0xb73   :  { %1808 = vmatpush1.bf16.msra.mxu1 %v4699_v12  ;;  %3122 = vmatpush3.bf16.msra.mxu0 %v4700_v16 }
 0xb74   :  { %1809 = vmatprep.subr.bf16.mxu1 %v4701_v25  ;;  %3123 = vmatprep.subr.bf16.mxu0 %v4676_v42  ;;  %v4716_v25 = vld [vmem:[#allocation60_spill] sm:$0xff] }
 0xb77   :  { %1810 = vmatpush1.bf16.msra.mxu1 %v4702_v39  ;;  %3124 = vmatpush3.bf16.msra.mxu0 %v4703_v54  ;;  %v4715_v39 = vld [vmem:[#allocation59_spill] sm:$0xff] }
 0xb78   :  { %1811 = vmatprep.subr.bf16.mxu1 %v4704_v11  ;;  %3125 = vmatprep.subr.bf16.mxu0 %v4676_v42 }
 0xb7b   :  { %1812 = vmatpush1.bf16.msra.mxu1 %v4705_v7  ;;  %3126 = vmatpush3.bf16.msra.mxu0 %v4706_v21 }
 0xb7c   :  { %1813 = vmatprep.subr.bf16.mxu1 %v4707_v56  ;;  %3127 = vmatprep.subr.bf16.mxu0 %v4676_v42  ;;  %v4714_v56 = vld [vmem:[#allocation58_spill] sm:$0xff] }
 0xb7f   :  { %1814 = vmatpush1.bf16.msra.mxu1 %v4708_v2  ;;  %3128 = vmatpush3.bf16.msra.mxu0 %v4709_v40 }
 0xb80   :  { %3133 = vmatprep.subr.bf16.mxu1 %v4676_v42  ;;  %3153 = vmatprep.subr.bf16.mxu0 %v4676_v42 }
 0xb82   :  { %1832 = vmatmul.mubr.bf16.vlgmr.msra.gmra.mrb[24].mxu1 %v4188_v49  ;;  %3130 = vmatmul.mubr.bf16.vlgmr.msra.gmra.mrb[48].mxu0 %v4188_v49 }
 0xb83   :  { %3134 = vmatpush3.bf16.msra.mxu1 %v4058_v0  ;;  %3149 = vmatprep.mubr.msk.bf16.mxu1 %vm3654_vm0, %v4676_v42 }
 0xb84   :  { %3135 = vmatprep.subr.bf16.mxu1 %v4676_v42  ;;  %3154 = vmatpush3.bf16.msra.mxu0 %v4098_v29  ;;  %v4710_v29 = vld [vmem:[#allocation67_spill] sm:$0xff] }
 0xb85   :  { %3155 = vmatprep.subr.bf16.mxu0 %v4676_v42  ;;  %3169 = vmatprep.mubr.msk.bf16.mxu0 %vm3654_vm0, %v4676_v42 }
 0xb87   :  { %3136 = vmatpush3.bf16.msra.mxu1 %v4070_v36 }
 0xb88   :  { %3137 = vmatprep.subr.bf16.mxu1 %v4676_v42  ;;  %3156 = vmatpush3.bf16.msra.mxu0 %v4101_v26  ;;  %v4711_v26 = vld [vmem:[#allocation69_spill] sm:$0xff] }
 0xb89   :  { %3157 = vmatprep.subr.bf16.mxu0 %v4676_v42 }
 0xb8b   :  { %3138 = vmatpush3.bf16.msra.mxu1 %v4074_v17 }
 0xb8c   :  { %3139 = vmatprep.subr.bf16.mxu1 %v4676_v42  ;;  %3158 = vmatpush3.bf16.msra.mxu0 %v4105_v60  ;;  %v4712_v60 = vld [vmem:[#allocation68_spill] sm:$0xff] }
 0xb8d   :  { %3159 = vmatprep.subr.bf16.mxu0 %v4676_v42 }
 0xb8f   :  { %3140 = vmatpush3.bf16.msra.mxu1 %v4078_v5 }
 0xb90   :  { %3141 = vmatprep.subr.bf16.mxu1 %v4676_v42  ;;  %3160 = vmatpush3.bf16.msra.mxu0 %v4109_v37 }
 0xb91   :  { %3161 = vmatprep.subr.bf16.mxu0 %v4676_v42 }
 0xb93   :  { %3142 = vmatpush3.bf16.msra.mxu1 %v4082_v30  ;;  %v4713_v30 = vld [vmem:[#allocation57_spill] sm:$0xff] }
 0xb94   :  { %3143 = vmatprep.subr.bf16.mxu1 %v4676_v42  ;;  %3162 = vmatpush3.bf16.msra.mxu0 %v4113_v13 }
 0xb95   :  { %3163 = vmatprep.subr.bf16.mxu0 %v4676_v42 }
 0xb97   :  { %3144 = vmatpush3.bf16.msra.mxu1 %v4086_v27 }
 0xb98   :  { %3145 = vmatprep.subr.bf16.mxu1 %v4676_v42  ;;  %3164 = vmatpush3.bf16.msra.mxu0 %v4117_v51 }
 0xb99   :  { %3165 = vmatprep.subr.bf16.mxu0 %v4676_v42 }
 0xb9b   :  { %3146 = vmatpush3.bf16.msra.mxu1 %v4710_v29 }
 0xb9c   :  { %3147 = vmatprep.subr.bf16.mxu1 %v4676_v42  ;;  %3166 = vmatpush3.bf16.msra.mxu0 %v4711_v26 }
 0xb9d   :  { %3167 = vmatprep.subr.bf16.mxu0 %v4676_v42 }
 0xb9f   :  { %3148 = vmatpush3.bf16.msra.mxu1 %v4712_v60 }
 0xba0   :  { %3168 = vmatpush3.bf16.msra.mxu0 %v4160_v55  ;;  %3173 = vmatprep.subr.bf16.mxu1 %v4676_v42 }
 0xba1   :  { %3193 = vmatprep.subr.bf16.mxu0 %v4676_v42 }
 0xc35   :  { %v1792_v37 = vpop.f32.mrb[44].mxu0 }
 0xc36   :  { %v3111_v13 = vpop.f32.mrb[45].mxu0 }
 0xc37   :  { %v1795_v51 = vpop.f32.mrb[46].mxu0 }
 0xc38   :  { %v3112_v49 = vpop.f32.mrb[47].mxu0 }
 0xc55   :  { %v1833_v27 = vpop.f32.mrb[24].mxu1  ;;  %v1876_v29 = vpop.f32.mrb[48].mxu0 }
 0xc56   :  { %v3306_v5 = vadd.f32 %v4713_v30, %v1833_v27  ;;  %v1835_v17 = vpop.f32.mrb[25].mxu1  ;;  %v3131_v26 = vpop.f32.mrb[49].mxu0 }
 0xc57   :  { %v1837_v36 = vpop.f32.mrb[26].mxu1  ;;  %v1879_v0 = vpop.f32.mrb[50].mxu0  ;;  %v3308_v21 = vadd.f32 %v4714_v56, %v1835_v17  ;;  %v1877_v17 = vadd.f32 %v1876_v29, %v4715_v39 }
 0xc58   :  { %v2756_v40 = vmul.f32 -1.442695, %v3306_v5  ;;  %v3310_v60 = vadd.f32 %v4713_v30, %v1837_v36  ;;  %v1839_v55 = vpop.f32.mrb[27].mxu1  ;;  %v3132_v2 = vpop.f32.mrb[51].mxu0 }
 0xc59   :  { %v3312_v13 = vadd.f32 %v4714_v56, %v1839_v55  ;;  %v2758_v49 = vmul.f32 -1.442695, %v3308_v21  ;;  %v1793_v55 = vadd.f32 %v1792_v37, %v4716_v25  ;;  %v1880_v21 = vadd.f32 %v1879_v0, %v4715_v39 }
 0xc5a   :  { %3428 = vpow2.f32 %v2756_v40  ;;  %v2757_v7 = vmul.f32 -1.442695, %v3310_v60 }
 0xc5b   :  { %v2759_v11 = vmul.f32 -1.442695, %v3312_v13  ;;  %v1796_v13 = vadd.f32 %v1795_v51, %v4716_v25 }
 0xc5c   :  { %3430 = vpow2.f32 %v2757_v7 }
 0xc5d   :  { %3432 = vpow2.f32 %v2758_v49 }
 0xc5e   :  { %3434 = vpow2.f32 %v2759_v11 }
 0xc64   :  { %v3429_v27 = vpop.eup %3428 }
 0xc65   :  { %v1891_v26 = vadd.f32 1.0, %v3429_v27 }
 0xc66   :  { %v3431_v54 = vpop.eup %3430 }
 0xc67   :  { %3436 = vrcp.f32 %v1891_v26  ;;  %v1892_v5 = vadd.f32 1.0, %v3431_v54  ;;  %v3433_v36 = vpop.eup %3432 }
 0xc68   :  { %v3435_v30 = vpop.eup %3434  ;;  %v1905_v2 = vadd.f32 1.0, %v3433_v36 }
 0xc69   :  { %3438 = vrcp.f32 %v1892_v5  ;;  %v1906_v40 = vadd.f32 1.0, %v3435_v30 }
 0xc6a   :  { %3440 = vrcp.f32 %v1905_v2 }
 0xc6b   :  { %3442 = vrcp.f32 %v1906_v40 }
 0xc71   :  { %v3437_v60 = vpop.eup %3436 }
 0xc72   :  { %v1911_v7 = vmul.f32 %v3437_v60, %v1877_v17 }
 0xc73   :  { %v3439_v11 = vpop.eup %3438 }
 0xc74   :  { %v1913_v49 = vadd.f32 %v1911_v7, %v1793_v55  ;;  %v1912_v27 = vmul.f32 %v3439_v11, %v1880_v21  ;;  %v3441_v26 = vpop.eup %3440 }
 0xc75   :  { %v3443_v5 = vpop.eup %3442  ;;  %v1917_v29 = vsub.f32 1.0, %v3441_v26  ;;  %v1921_v37 = vmul.f32 %v3441_v26, %v4181_v34 }
 0xc76   :  { %3444 = vtanh.f32 %v1913_v49  ;;  %v1914_v54 = vadd.f32 %v1912_v27, %v1796_v13  ;;  %v1918_v17 = vsub.f32 1.0, %v3443_v5  ;;  %v1922_v39 = vmul.f32 %v3443_v5, %v4184_v47 }
 0xc78   :  { %3446 = vtanh.f32 %v1914_v54 }
 0xc80   :  { %v3445_v30 = vpop.eup %3444 }
 0xc81   :  { %v1919_v36 = vmul.f32 %v3445_v30, %v1917_v29 }
 0xc82   :  { %v3447_v2 = vpop.eup %3446 }
 0xc83   :  { %v1923_v60 = vadd.f32 %v1921_v37, %v1919_v36  ;;  %v1920_v0 = vmul.f32 %v3447_v2, %v1918_v17 }
 0xc85   :  { %1925 = vadd.xlane.f32.xlu0 %v1923_v60  ;;  %v1924_v51 = vadd.f32 %v1922_v39, %v1920_v0 }
 0xc87   :  { %1927 = vadd.xlane.f32.xlu1 %v1924_v51 }
 0xd12   :  { %v1926_v40 = vpop.xlane.xlu0 %1925 }
 0xd13   :  { %v1929_v55 = vmul.f32 0.0078125, %v1926_v40 }
 0xd14   :  { %v1928_v7 = vpop.xlane.xlu1 %1927 }
 0xd15   :  { %v1931_v21 = vsub.f32 %v1923_v60, %v1929_v55  ;;  %v1930_v11 = vmul.f32 0.0078125, %v1928_v7 }
 0xd17   :  { %v1932_v13 = vsub.f32 %v1924_v51, %v1930_v11  ;;  %v1933_v49 = vmul.f32 %v1931_v21, %v1931_v21 }
 0xd19   :  { %1935 = vadd.xlane.f32.xlu0 %v1933_v49  ;;  %v1934_v27 = vmul.f32 %v1932_v13, %v1932_v13 }
 0xd1b   :  { %1937 = vadd.xlane.f32.xlu1 %v1934_v27 }
 0xda6   :  { %v1936_v34 = vpop.xlane.xlu0 %1935 }
 0xda7   :  { %v1939_v54 = vmul.f32 0.0078125, %v1936_v34 }
 0xda8   :  { %v1938_v26 = vpop.xlane.xlu1 %1937 }
 0xda9   :  { %v1941_v29 = vadd.f32 1e-05, %v1939_v54  ;;  %v1940_v30 = vmul.f32 0.0078125, %v1938_v26 }
 0xdab   :  { %3448 = vrsqrt.f32 %v1941_v29  ;;  %v1942_v47 = vadd.f32 1e-05, %v1940_v30 }
 0xdad   :  { %3450 = vrsqrt.f32 %v1942_v47  ;;  %v4721_v47 = vld [vmem:[#allocation22_spill] sm:$0xff] }
 0xdb5   :  { %v3449_v39 = vpop.eup %3448 }
 0xdb6   :  { %v1945_v5 = vmul.f32 %v3449_v39, %v1931_v21  ;;  %v4723_v39 = vld [vmem:[#allocation24_spill] sm:$0xff] }
 0xdb7   :  { %v3451_v36 = vpop.eup %3450 }
 0xdb8   :  { %v1946_v37 = vmul.f32 %v3451_v36, %v1932_v13  ;;  %v1947_v17 = vmul.f32 %v4130_v41, %v1945_v5  ;;  %v4724_v5 = vld [vmem:[#allocation25_spill] sm:$0xff]  ;;  %v4725_v36 = vld [vmem:[#allocation26_spill] sm:$0xff] }
 0xdba   :  { %v1948_v2 = vmul.f32 %v4130_v41, %v1946_v37  ;;  %v1949_v60 = vadd.f32 %v4137_v10, %v1947_v17  ;;  %v4718_v41 = vld [vmem:[#allocation17_spill] sm:$0xff]  ;;  %v4726_v37 = vld [vmem:[#allocation27_spill] sm:$0xff] }
 0xdbb   :  { %v4728_v17 = vld [vmem:[#allocation29_spill] sm:$0xff] }
 0xdbc   :  { %v1950_v0 = vadd.f32 %v4137_v10, %v1948_v2  ;;  %v4732_v2 = vld [vmem:[#allocation33_spill] sm:$0xff] }
 0xdbe   :  { %v1951_v51 = vpack.c.bf16 %v1950_v0, %v1949_v60 }
 0xdc0   :  { %3150 = vmatmul.mubr.bf16.vlgmr.msra.gmra.mrb[28].mxu1 %v1951_v51 }
 0xdc1   :  { %3174 = vmatpush3.bf16.msra.mxu1 %v3778_v9  ;;  %3189 = vmatprep.mubr.msk.bf16.mxu1 %vm3654_vm0, %v4676_v42  ;;  %v4717_v9 = vld [vmem:[#allocation16_spill] sm:$0xff] }
 0xdc2   :  { %3175 = vmatprep.subr.bf16.mxu1 %v4676_v42 }
 0xdc5   :  { %3176 = vmatpush3.bf16.msra.mxu1 %v3781_v14  ;;  %v4719_v14 = vld [vmem:[#allocation18_spill] sm:$0xff] }
 0xdc6   :  { %3177 = vmatprep.subr.bf16.mxu1 %v4676_v42 }
 0xdc9   :  { %3178 = vmatpush3.bf16.msra.mxu1 %v3785_v19  ;;  %v4720_v19 = vld [vmem:[#allocation21_spill] sm:$0xff] }
 0xdca   :  { %3179 = vmatprep.subr.bf16.mxu1 %v4676_v42 }
 0xdcd   :  { %3180 = vmatpush3.bf16.msra.mxu1 %v3789_v23 }
 0xdce   :  { %3181 = vmatprep.subr.bf16.mxu1 %v4676_v42 }
 0xdd1   :  { %3182 = vmatpush3.bf16.msra.mxu1 %v3793_v31 }
 0xdd2   :  { %3183 = vmatprep.subr.bf16.mxu1 %v4676_v42 }
 0xdd5   :  { %3184 = vmatpush3.bf16.msra.mxu1 %v4717_v9 }
 0xdd6   :  { %3185 = vmatprep.subr.bf16.mxu1 %v4676_v42 }
 0xdd9   :  { %3186 = vmatpush3.bf16.msra.mxu1 %v4718_v41 }
 0xdda   :  { %3187 = vmatprep.subr.bf16.mxu1 %v4676_v42 }
 0xddd   :  { %3188 = vmatpush3.bf16.msra.mxu1 %v4719_v14 }
 0xdde   :  { %2306 = vmatprep.subr.bf16.mxu1 %v4720_v19 }
 0xe93   :  { %v1986_v10 = vpop.f32.mrb[28].mxu1 }
 0xe94   :  { %v1987_v23 = vadd.f32 %v4167_v4, %v1986_v10  ;;  %v3151_v40 = vpop.f32.mrb[29].mxu1  ;;  %v4734_v10 = vld [vmem:[#allocation20_spill] sm:$0xff] }
 0xe95   :  { %v1989_v55 = vpop.f32.mrb[30].mxu1 }
 0xe96   :  { %v1990_v31 = vadd.f32 %v4167_v4, %v1989_v55  ;;  %v3152_v7 = vpop.f32.mrb[31].mxu1  ;;  %v1993_v21 = vmax.f32 %v1987_v23, 0.0  ;;  %v4735_v55 = vld [vmem:[#allocation19_spill] sm:$0xff] }
 0xe98   :  { %v1994_v11 = vmax.f32 %v1990_v31, 0.0 }
 0xe9a   :  { %v1995_v13 = vpack.c.bf16 %v1994_v11, %v1993_v21 }
 0xe9c   :  { %3170 = vmatmul.mubr.bf16.vlgmr.msra.gmra.mrb[52].mxu0 %v1995_v13 }
 0xe9d   :  { %3194 = vmatpush3.bf16.xpose.msra.mxu0 %v3834_v63  ;;  %3195 = vmatprep.mubr.msk.bf16.mxu0 %vm3654_vm0, %v4676_v42 }
 0xe9e   :  { %3199 = vmatprep.subr.bf16.mxu0 %v4676_v42 }
 0xf6f   :  { %v2030_v49 = vpop.f32.mrb[52].mxu0 }
 0xf70   :  { %v2037_v27 = vadd.f32 %v2030_v49, %v1949_v60  ;;  %v3171_v34 = vpop.f32.mrb[53].mxu0 }
 0xf71   :  { %v2033_v54 = vpop.f32.mrb[54].mxu0 }
 0xf72   :  { %v2038_v26 = vadd.f32 %v2033_v54, %v1950_v0  ;;  %v3172_v29 = vpop.f32.mrb[55].mxu0  ;;  %v4365_v4 = vadd.f32 %v4178_v46, %v2037_v27  ;;  %v4733_v0 = vld [vmem:[#allocation70_spill] sm:$0xff] }
 0xf74   :  { %v4368_v30 = vadd.f32 %v4178_v46, %v2038_v26  ;;  %v4722_v46 = vld [vmem:[#allocation23_spill] sm:$0xff] }
 0xf76   :  { %v4372_v63 = vpack.c.bf16 %v4368_v30, %v4365_v4 }
 0xf78   :  { %3190 = vmatmul.mubr.bf16.vlgmr.msra.gmra.mrb[32].mxu1 %v4372_v63 }
 0xf79   :  { %2307 = vmatpush1.bf16.msra.mxu1 %v3859_v32  ;;  %2338 = vmatprep.mubr.bf16.mxu1 %v4685_v33  ;;  %v4727_v32 = vld [vmem:[#allocation28_spill] sm:$0xff] }
 0xf7a   :  { %2308 = vmatprep.subr.bf16.mxu1 %v3864_v43  ;;  %v4729_v43 = vld [vmem:[#allocation30_spill] sm:$0xff] }
 0xf7d   :  { %2309 = vmatpush1.bf16.msra.mxu1 %v3868_v50  ;;  %v4730_v50 = vld [vmem:[#allocation32_spill] sm:$0xff] }
 0xf7e   :  { %2310 = vmatprep.subr.bf16.mxu1 %v3872_v53  ;;  %v4731_v53 = vld [vmem:[#allocation31_spill] sm:$0xff] }
 0xf81   :  { %2311 = vmatpush1.bf16.msra.mxu1 %v4721_v47 }
 0xf82   :  { %2312 = vmatprep.subr.bf16.mxu1 %v4722_v46 }
 0xf85   :  { %2313 = vmatpush1.bf16.msra.mxu1 %v4723_v39 }
 0xf86   :  { %2314 = vmatprep.subr.bf16.mxu1 %v4724_v5 }
 0xf89   :  { %2315 = vmatpush1.bf16.msra.mxu1 %v4725_v36 }
 0xf8a   :  { %2316 = vmatprep.subr.bf16.mxu1 %v4726_v37 }
 0xf8d   :  { %2317 = vmatpush1.bf16.msra.mxu1 %v4727_v32 }
 0xf8e   :  { %2318 = vmatprep.subr.bf16.mxu1 %v4728_v17 }
 0xf91   :  { %2319 = vmatpush1.bf16.msra.mxu1 %v4729_v43 }
 0xf92   :  { %2320 = vmatprep.subr.bf16.mxu1 %v4730_v50 }
 0xf95   :  { %2321 = vmatpush1.bf16.msra.mxu1 %v4731_v53 }
 0xf96   :  { %2390 = vmatprep.subr.bf16.mxu1 %v4732_v2 }
0x104b   :  { %v2076_v60 = vpop.f32.mrb[32].mxu1 }
0x104c   :  { %v2077_v51 = vadd.f32 %v4733_v0, %v2076_v60  ;;  %v3191_v9 = vpop.f32.mrb[33].mxu1 }
0x104d   :  { %v2079_v41 = vpop.f32.mrb[34].mxu1 }
0x104e   :  { %v2083_v14 = vpack.c.bf16 %v2077_v51, %v2077_v51  ;;  %v3192_v19 = vpop.f32.mrb[35].mxu1  ;;  %v2080_v23 = vadd.f32 %v4733_v0, %v2079_v41 }
0x1050   :  { %3196 = vmatmul.mubr.bf16.vlgmr.msra.gmra.mrb[56].mxu0 %v2083_v14  ;;  %v2084_v40 = vpack.c.bf16 %v2080_v23, %v2080_v23 }
0x1051   :  { %3200 = vmatpush3.bf16.xpose.msra.mxu0 %v4734_v10  ;;  %3201 = vmatprep.mubr.msk.bf16.mxu0 %vm3654_vm0, %v4676_v42 }
0x1052   :  { %3205 = vmatprep.subr.bf16.mxu0 %v4676_v42 }
0x1058   :  { %3202 = vmatmul.mubr.bf16.vlgmr.msra.gmra.mrb[60].mxu0 %v2084_v40 }
0x1059   :  { %3206 = vmatpush3.bf16.msra.mxu0 %v4735_v55  ;;  %3207 = vmatprep.mubr.msk.bf16.mxu0 %vm3654_vm0, %v4676_v42 }
0x105a   :  { %3211 = vmatprep.subr.bf16.mxu0 %v4676_v42 }
0x1123   :  { %v2119_v31 = vpop.f32.mrb[56].mxu0 }
0x1124   :  { %v2165_v7 = vmul.f32 0.088388346, %v2119_v31  ;;  %v3197_v21 = vpop.f32.mrb[57].mxu0 }
0x1125   :  { %v2122_v11 = vpop.f32.mrb[58].mxu0 }
0x1126   :  { %v2167_v13 = vsel %vm479_vm1, %v2165_v7, -inf  ;;  %v3198_v49 = vpop.f32.mrb[59].mxu0 }
0x1127   :  { %v2168_v27 = vrot.slane %v2167_v13, 4 }
0x1129   :  { %v2169_v34 = vmax.f32 %v2167_v13, %v2168_v27 }
0x112b   :  { %v2170_v54 = vrot.slane %v2169_v34, 2  ;;  %v2159_v26 = vpop.f32.mrb[60].mxu0 }
0x112c   :  { %v2166_v29 = vmul.f32 0.088388346, %v2159_v26  ;;  %v3203_v47 = vpop.f32.mrb[61].mxu0 }
0x112d   :  { %v2171_v46 = vmax.f32 %v2169_v34, %v2170_v54  ;;  %v2162_v39 = vpop.f32.mrb[62].mxu0 }
0x112e   :  { %v2174_v5 = vsel %vm479_vm1, %v2166_v29, -inf  ;;  %v3204_v36 = vpop.f32.mrb[63].mxu0 }
0x112f   :  { %v2172_v37 = vrot.slane %v2171_v46, 1  ;;  %v2175_v32 = vrot.slane %v2174_v5, 4 }
0x1131   :  { %v2173_v17 = vmax.f32 %v2171_v46, %v2172_v37  ;;  %v2176_v43 = vmax.f32 %v2174_v5, %v2175_v32 }
0x1133   :  { %v2181_v50 = vsub.f32 %v2165_v7, %v2173_v17  ;;  %v2177_v53 = vrot.slane %v2176_v43, 2 }
0x1135   :  { %v2183_v2 = vmul.f32 1.442695, %v2181_v50  ;;  %v2178_v60 = vmax.f32 %v2176_v43, %v2177_v53 }
0x1137   :  { %3452 = vpow2.f32 %v2183_v2  ;;  %v2179_v0 = vrot.slane %v2178_v60, 1 }
0x1139   :  { %v2180_v51 = vmax.f32 %v2178_v60, %v2179_v0 }
0x113b   :  { %v2182_v9 = vsub.f32 %v2166_v29, %v2180_v51 }
0x113d   :  { %v2185_v41 = vmul.f32 1.442695, %v2182_v9 }
0x113f   :  { %3454 = vpow2.f32 %v2185_v41 }
0x1141   :  { %v3453_v14 = vpop.eup %3452 }
0x1142   :  { %v2187_v19 = vsel %vm479_vm1, %v3453_v14, 0.0 }
0x1143   :  { %v2188_v10 = vrot.slane %v2187_v19, 4 }
0x1145   :  { %v2189_v23 = vadd.f32 %v2188_v10, %v2187_v19  ;;  %v4750_v19 = vld [vmem:[#allocation66_spill] sm:$0xff]  ;;  %v3494_v10 = vld [vmem:[#allocation10 + $0x28] sm:$0xff]  }
0x1147   :  { %v2190_v40 = vrot.slane %v2189_v23, 2 }
0x1149   :  { %v3455_v55 = vpop.eup %3454  ;;  %v2191_v31 = vadd.f32 %v2190_v40, %v2189_v23  ;;  %v4751_v23 = vld [vmem:[#allocation67_spill] sm:$0xff]  ;;  %v3495_v40 = vld [vmem:[#allocation10 + $0x30] sm:$0xff]  }
0x114a   :  { %v2194_v21 = vsel %vm479_vm1, %v3455_v55, 0.0 }
0x114b   :  { %v2195_v7 = vrot.slane %v2194_v21, 4  ;;  %v2192_v11 = vrot.slane %v2191_v31, 1 }
0x114d   :  { %v2196_v13 = vadd.f32 %v2195_v7, %v2194_v21  ;;  %v2193_v49 = vadd.f32 %v2192_v11, %v2191_v31  ;;  %v3496_v31 = vld [vmem:[#allocation10 + $0x38] sm:$0xff]  }
0x114f   :  { %v2197_v27 = vrot.slane %v2196_v13, 2  ;;  %3456 = vrcp.f32 %v2193_v49 }
0x1151   :  { %v2198_v34 = vadd.f32 %v2197_v27, %v2196_v13 }
0x1153   :  { %v2199_v54 = vrot.slane %v2198_v34, 1 }
0x1155   :  { %v2200_v26 = vadd.f32 %v2199_v54, %v2198_v34  ;;  %v4753_v34 = vld [vmem:[#allocation57_spill] sm:$0xff] }
0x1157   :  { %3458 = vrcp.f32 %v2200_v26 }
0x1159   :  { %v3457_v29 = vpop.eup %3456 }
0x115a   :  { %v2203_v47 = vmul.f32 %v3457_v29, %v3453_v14 }
0x115c   :  { %v2205_v46 = vadd.f32 1e-06, %v2203_v47 }
0x115e   :  { %v2207_v39 = vsel %vm479_vm1, %v2205_v46, 0.0 }
0x115f   :  { %2208 = vadd.xlane.f32.xlu0 %v2207_v39 }
0x1161   :  { %v3459_v5 = vpop.eup %3458 }
0x1162   :  { %v2204_v36 = vmul.f32 %v3459_v5, %v3455_v55  ;;  %v4752_v55 = vld [vmem:[#allocation68_spill] sm:$0xff] }
0x1164   :  { %v2206_v37 = vadd.f32 1e-06, %v2204_v36 }
0x1166   :  { %v2210_v32 = vsel %vm479_vm1, %v2206_v37, 0.0 }
0x1167   :  { %2211 = vadd.xlane.f32.xlu1 %v2210_v32 }
0x11ec   :  { %v2209_v17 = vpop.xlane.xlu0 %2208 }
0x11ed   :  { %3460 = vrcp.f32 %v2209_v17 }
0x11f4   :  { %v2212_v43 = vpop.xlane.xlu1 %2211 }
0x11f5   :  { %3462 = vrcp.f32 %v2212_v43 }
0x11f7   :  { %v3461_v50 = vpop.eup %3460 }
0x11f8   :  { %v2215_v53 = vmul.f32 %v3461_v50, %v2205_v46 }
0x11fa   :  { %v2217_v2 = vpack.c.bf16 %v2215_v53, %v2215_v53 }
0x11fc   :  { %3208 = vmatmul.mubr.msk.bf16.vlgmr.msra.gmra.mrb[64].mxu0 %vm479_vm1, %v2217_v2 }
0x11fd   :  { %3212 = vmatpush3.bf16.msra.mxu0 %v3842_v20  ;;  %3213 = vmatprep.mubr.msk.bf16.mxu0 %vm3654_vm0, %v4676_v42 }
0x11fe   :  { %3217 = vmatprep.subr.bf16.mxu0 %v4676_v42 }
0x11ff   :  { %v3463_v60 = vpop.eup %3462 }
0x1200   :  { %v2216_v0 = vmul.f32 %v3463_v60, %v2206_v37 }
0x1202   :  { %v2218_v51 = vpack.c.bf16 %v2216_v0, %v2216_v0 }
0x1204   :  { %3214 = vmatmul.mubr.msk.bf16.vlgmr.msra.gmra.mrb[68].mxu0 %vm479_vm1, %v2218_v51 }
0x1205   :  { %3218 = vmatpush3.bf16.msra.mxu0 %v3874_v58  ;;  %3233 = vmatprep.mubr.msk.bf16.mxu0 %vm3654_vm0, %v4676_v42 }
0x1206   :  { %3219 = vmatprep.subr.bf16.mxu0 %v4676_v42 }
0x1209   :  { %3220 = vmatpush3.bf16.msra.mxu0 %v3884_v6 }
0x120a   :  { %3221 = vmatprep.subr.bf16.mxu0 %v4676_v42 }
0x120d   :  { %3222 = vmatpush3.bf16.msra.mxu0 %v3896_v15 }
0x120e   :  { %3223 = vmatprep.subr.bf16.mxu0 %v4676_v42 }
0x1211   :  { %3224 = vmatpush3.bf16.msra.mxu0 %v3906_v24 }
0x1212   :  { %3225 = vmatprep.subr.bf16.mxu0 %v4676_v42 }
0x1215   :  { %3226 = vmatpush3.bf16.msra.mxu0 %v3914_v28 }
0x1216   :  { %3227 = vmatprep.subr.bf16.mxu0 %v4676_v42 }
0x1219   :  { %3228 = vmatpush3.bf16.msra.mxu0 %v3920_v35  ;;  %v4736_v35 = vld [vmem:[#allocation48_spill] sm:$0xff] }
0x121a   :  { %3229 = vmatprep.subr.bf16.mxu0 %v4676_v42 }
0x121d   :  { %3230 = vmatpush3.bf16.msra.mxu0 %v3929_v48  ;;  %v4737_v48 = vld [vmem:[#allocation49_spill] sm:$0xff] }
0x121e   :  { %3231 = vmatprep.subr.bf16.mxu0 %v4676_v42 }
0x1221   :  { %3232 = vmatpush3.bf16.msra.mxu0 %v3939_v57  ;;  %v4738_v57 = vld [vmem:[#allocation50_spill] sm:$0xff] }
0x1222   :  { %3237 = vmatprep.subr.bf16.mxu0 %v4676_v42 }
0x12cf   :  { %v2256_v20 = vpop.f32.mrb[64].mxu0 }
0x12d0   :  { %v3209_v58 = vpop.f32.mrb[65].mxu0 }
0x12d1   :  { %v2259_v6 = vpop.f32.mrb[66].mxu0 }
0x12d2   :  { %v3210_v15 = vpop.f32.mrb[67].mxu0  ;;  %v4754_v6 = vld [vmem:[#allocation59_spill] sm:$0xff] }
0x12d7   :  { %v2299_v24 = vpop.f32.mrb[68].mxu0 }
0x12d8   :  { %v2305_v28 = vpack.c.bf16 %v2299_v24, %v2256_v20  ;;  %v3215_v9 = vpop.f32.mrb[69].mxu0 }
0x12d9   :  { %v2302_v41 = vpop.f32.mrb[70].mxu0 }
0x12da   :  { %v3216_v14 = vpop.f32.mrb[71].mxu0  ;;  %2339 = vmatmul.mubr.bf16.vlgmr.msra.gmra.mrb[36].mxu1 %v2305_v28  ;;  %3234 = vmatmul.mubr.bf16.vlgmr.msra.gmra.mrb[72].mxu0 %v2305_v28 }
0x12db   :  { %2391 = vmatpush1.bf16.msra.mxu1 %v4687_v1  ;;  %3238 = vmatpush3.bf16.msra.mxu0 %v4688_v45  ;;  %v4740_v1 = vld [vmem:[#allocation52_spill] sm:$0xff]  ;;  %v4741_v45 = vld [vmem:[#allocation53_spill] sm:$0xff] }
0x12dc   :  { %2392 = vmatprep.subr.bf16.mxu1 %v4689_v18  ;;  %3239 = vmatprep.subr.bf16.mxu0 %v4676_v42  ;;  %v4742_v18 = vld [vmem:[#allocation54_spill] sm:$0xff] }
0x12dd   :  { %2422 = vmatprep.mubr.bf16.mxu1 %v4685_v33  ;;  %3253 = vmatprep.mubr.msk.bf16.mxu0 %vm3654_vm0, %v4676_v42  ;;  %v4739_v33 = vld [vmem:[#allocation51_spill] sm:$0xff] }
0x12df   :  { %2393 = vmatpush1.bf16.msra.mxu1 %v4690_v62  ;;  %3240 = vmatpush3.bf16.msra.mxu0 %v4691_v8  ;;  %v4743_v62 = vld [vmem:[#allocation55_spill] sm:$0xff]  ;;  %v4744_v8 = vld [vmem:[#allocation56_spill] sm:$0xff] }
0x12e0   :  { %2394 = vmatprep.subr.bf16.mxu1 %v4692_v3  ;;  %3241 = vmatprep.subr.bf16.mxu0 %v4676_v42  ;;  %v4745_v3 = vld [vmem:[#allocation61_spill] sm:$0xff] }
0x12e3   :  { %2395 = vmatpush1.bf16.msra.mxu1 %v4693_v44  ;;  %3242 = vmatpush3.bf16.msra.mxu0 %v4694_v59  ;;  %v3489_v44 = vld [vmem:[#allocation10] sm:$0xff]  }
0x12e4   :  { %2396 = vmatprep.subr.bf16.mxu1 %v4695_v61  ;;  %3243 = vmatprep.subr.bf16.mxu0 %v4676_v42  ;;  %v4746_v59 = vld [vmem:[#allocation62_spill] sm:$0xff]  ;;  %v3490_v61 = vld [vmem:[#allocation10 + $0x8] sm:$0xff]  }
0x12e7   :  { %2397 = vmatpush1.bf16.msra.mxu1 %v4696_v38  ;;  %3244 = vmatpush3.bf16.msra.mxu0 %v4697_v22  ;;  %v4747_v38 = vld [vmem:[#allocation63_spill] sm:$0xff]  ;;  %v3491_v22 = vld [vmem:[#allocation10 + $0x10] sm:$0xff]  }
0x12e8   :  { %2398 = vmatprep.subr.bf16.mxu1 %v4698_v52  ;;  %3245 = vmatprep.subr.bf16.mxu0 %v4676_v42  ;;  %v4748_v52 = vld [vmem:[#allocation64_spill] sm:$0xff] }
0x12eb   :  { %2399 = vmatpush1.bf16.msra.mxu1 %v4699_v12  ;;  %3246 = vmatpush3.bf16.msra.mxu0 %v4700_v16  ;;  %v3492_v12 = vld [vmem:[#allocation10 + $0x18] sm:$0xff]  }
0x12ec   :  { %2400 = vmatprep.subr.bf16.mxu1 %v4736_v35  ;;  %3247 = vmatprep.subr.bf16.mxu0 %v4676_v42  ;;  %v4749_v16 = vld [vmem:[#allocation65_spill] sm:$0xff] }
0x12ef   :  { %2401 = vmatpush1.bf16.msra.mxu1 %v4737_v48  ;;  %3248 = vmatpush3.bf16.msra.mxu0 %v4738_v57 }
0x12f0   :  { %2402 = vmatprep.subr.bf16.mxu1 %v4739_v33  ;;  %3249 = vmatprep.subr.bf16.mxu0 %v4676_v42 }
0x12f3   :  { %2403 = vmatpush1.bf16.msra.mxu1 %v4740_v1  ;;  %3250 = vmatpush3.bf16.msra.mxu0 %v4741_v45 }
0x12f4   :  { %2404 = vmatprep.subr.bf16.mxu1 %v4742_v18  ;;  %3251 = vmatprep.subr.bf16.mxu0 %v4676_v42 }
0x12f7   :  { %2405 = vmatpush1.bf16.msra.mxu1 %v4743_v62  ;;  %3252 = vmatpush3.bf16.msra.mxu0 %v4744_v8 }
0x12f8   :  { %3257 = vmatprep.subr.bf16.mxu1 %v4676_v42  ;;  %3277 = vmatprep.subr.bf16.mxu0 %v4676_v42 }
0x12fa   :  { %2423 = vmatmul.mubr.bf16.vlgmr.msra.gmra.mrb[36].mxu1 %v4372_v63  ;;  %3254 = vmatmul.mubr.bf16.vlgmr.msra.gmra.mrb[76].mxu0 %v4372_v63  ;;  %v3493_v63 = vld [vmem:[#allocation10 + $0x20] sm:$0xff]  }
0x12fb   :  { %3258 = vmatpush3.bf16.msra.mxu1 %v4745_v3  ;;  %3273 = vmatprep.mubr.msk.bf16.mxu1 %vm3654_vm0, %v4676_v42 }
0x12fc   :  { %3259 = vmatprep.subr.bf16.mxu1 %v4676_v42  ;;  %3278 = vmatpush3.bf16.msra.mxu0 %v3489_v44 }
0x12fd   :  { %3279 = vmatprep.subr.bf16.mxu0 %v4676_v42  ;;  %3293 = vmatprep.mubr.msk.bf16.mxu0 %vm3654_vm0, %v4676_v42 }
0x12ff   :  { %3260 = vmatpush3.bf16.msra.mxu1 %v4746_v59 }
0x1300   :  { %3261 = vmatprep.subr.bf16.mxu1 %v4676_v42  ;;  %3280 = vmatpush3.bf16.msra.mxu0 %v3490_v61 }
0x1301   :  { %3281 = vmatprep.subr.bf16.mxu0 %v4676_v42 }
0x1303   :  { %3262 = vmatpush3.bf16.msra.mxu1 %v4747_v38 }
0x1304   :  { %3263 = vmatprep.subr.bf16.mxu1 %v4676_v42  ;;  %3282 = vmatpush3.bf16.msra.mxu0 %v3491_v22 }
0x1305   :  { %3283 = vmatprep.subr.bf16.mxu0 %v4676_v42 }
0x1307   :  { %3264 = vmatpush3.bf16.msra.mxu1 %v4748_v52 }
0x1308   :  { %3265 = vmatprep.subr.bf16.mxu1 %v4676_v42  ;;  %3284 = vmatpush3.bf16.msra.mxu0 %v3492_v12 }
0x1309   :  { %3285 = vmatprep.subr.bf16.mxu0 %v4676_v42 }
0x130b   :  { %3266 = vmatpush3.bf16.msra.mxu1 %v4749_v16 }
0x130c   :  { %3267 = vmatprep.subr.bf16.mxu1 %v4676_v42  ;;  %3286 = vmatpush3.bf16.msra.mxu0 %v3493_v63 }
0x130d   :  { %3287 = vmatprep.subr.bf16.mxu0 %v4676_v42 }
0x130f   :  { %3268 = vmatpush3.bf16.msra.mxu1 %v4750_v19 }
0x1310   :  { %3269 = vmatprep.subr.bf16.mxu1 %v4676_v42  ;;  %3288 = vmatpush3.bf16.msra.mxu0 %v3494_v10 }
0x1311   :  { %3289 = vmatprep.subr.bf16.mxu0 %v4676_v42 }
0x1313   :  { %3270 = vmatpush3.bf16.msra.mxu1 %v4751_v23 }
0x1314   :  { %3271 = vmatprep.subr.bf16.mxu1 %v4676_v42  ;;  %3290 = vmatpush3.bf16.msra.mxu0 %v3495_v40 }
0x1315   :  { %3291 = vmatprep.subr.bf16.mxu0 %v4676_v42 }
0x1317   :  { %3272 = vmatpush3.bf16.msra.mxu1 %v4752_v55 }
0x1318   :  { %3292 = vmatpush3.bf16.msra.mxu0 %v3496_v31 }
0x13ad   :  { %v2383_v21 = vpop.f32.mrb[72].mxu0 }
0x13ae   :  { %v3235_v7 = vpop.f32.mrb[73].mxu0 }
0x13af   :  { %v2386_v11 = vpop.f32.mrb[74].mxu0 }
0x13b0   :  { %v3236_v13 = vpop.f32.mrb[75].mxu0  ;;  %v2387_v35 = vadd.f32 %v2386_v11, %v4716_v25 }
0x13cd   :  { %v2424_v49 = vpop.f32.mrb[36].mxu1  ;;  %v2467_v27 = vpop.f32.mrb[76].mxu0 }
0x13ce   :  { %v3314_v54 = vadd.f32 %v4753_v34, %v2424_v49  ;;  %v2426_v26 = vpop.f32.mrb[37].mxu1  ;;  %v3255_v29 = vpop.f32.mrb[77].mxu0  ;;  %v2468_v15 = vadd.f32 %v2467_v27, %v4754_v6 }
0x13cf   :  { %v2428_v47 = vpop.f32.mrb[38].mxu1  ;;  %v2470_v46 = vpop.f32.mrb[78].mxu0  ;;  %v3316_v37 = vadd.f32 %v4714_v56, %v2426_v26  ;;  %v3498_v29 = vld [vmem:[%s4537_s5 + $0xa] ss:$0 sm:$0xff] }
0x13d0   :  { %v2762_v39 = vmul.f32 -1.442695, %v3314_v54  ;;  %v3318_v5 = vadd.f32 %v4753_v34, %v2428_v47  ;;  %v2430_v42 = vpop.f32.mrb[39].mxu1  ;;  %v3256_v36 = vpop.f32.mrb[79].mxu0  ;;  %v2471_v41 = vadd.f32 %v2470_v46, %v4754_v6  ;;  %v3497_v34 = vld [vmem:[%s4537_s5 + $0x9] ss:$0 sm:$0xff] }
0x13d1   :  { %v3320_v17 = vadd.f32 %v4714_v56, %v2430_v42  ;;  %v2764_v43 = vmul.f32 -1.442695, %v3316_v37  ;;  %v2384_v56 = vadd.f32 %v2383_v21, %v4716_v25  ;;  %v3499_v42 = vld [vmem:[%s4537_s5 + $0xb] ss:$0 sm:$0xff] }
0x13d2   :  { %3464 = vpow2.f32 %v2762_v39  ;;  %v2763_v32 = vmul.f32 -1.442695, %v3318_v5 }
0x13d3   :  { %v2765_v50 = vmul.f32 -1.442695, %v3320_v17 }
0x13d4   :  { %3466 = vpow2.f32 %v2763_v32 }
0x13d5   :  { %3468 = vpow2.f32 %v2764_v43 }
0x13d6   :  { %3470 = vpow2.f32 %v2765_v50 }
0x13dc   :  { %v3465_v53 = vpop.eup %3464 }
0x13dd   :  { %v2482_v2 = vadd.f32 1.0, %v3465_v53 }
0x13de   :  { %v3467_v60 = vpop.eup %3466 }
0x13df   :  { %3472 = vrcp.f32 %v2482_v2  ;;  %v2483_v0 = vadd.f32 1.0, %v3467_v60  ;;  %v3469_v51 = vpop.eup %3468 }
0x13e0   :  { %v3471_v20 = vpop.eup %3470  ;;  %v2496_v58 = vadd.f32 1.0, %v3469_v51 }
0x13e1   :  { %3474 = vrcp.f32 %v2483_v0  ;;  %v2497_v24 = vadd.f32 1.0, %v3471_v20 }
0x13e2   :  { %3476 = vrcp.f32 %v2496_v58  ;;  %v3500_v58 = vld [vmem:[%s4537_s5 + $0xc] ss:$0 sm:$0xff] }
0x13e3   :  { %3478 = vrcp.f32 %v2497_v24 }
0x13e9   :  { %v3473_v28 = vpop.eup %3472 }
0x13ea   :  { %v2502_v9 = vmul.f32 %v3473_v28, %v2468_v15 }
0x13eb   :  { %v3475_v14 = vpop.eup %3474 }
0x13ec   :  { %v2504_v48 = vadd.f32 %v2502_v9, %v2384_v56  ;;  %v2503_v57 = vmul.f32 %v3475_v14, %v2471_v41  ;;  %v3477_v1 = vpop.eup %3476 }
0x13ed   :  { %v3479_v45 = vpop.eup %3478  ;;  %v2508_v18 = vsub.f32 1.0, %v3477_v1  ;;  %v2512_v3 = vmul.f32 %v3477_v1, %v4365_v4 }
0x13ee   :  { %3480 = vtanh.f32 %v2504_v48  ;;  %v2505_v33 = vadd.f32 %v2503_v57, %v2387_v35  ;;  %v2509_v44 = vsub.f32 1.0, %v3479_v45  ;;  %v2513_v22 = vmul.f32 %v3479_v45, %v4368_v30 }
0x13f0   :  { %3482 = vtanh.f32 %v2505_v33 }
0x13f8   :  { %v3481_v62 = vpop.eup %3480 }
0x13f9   :  { %v2510_v8 = vmul.f32 %v3481_v62, %v2508_v18 }
0x13fa   :  { %v3483_v59 = vpop.eup %3482 }
0x13fb   :  { %v2514_v61 = vadd.f32 %v2512_v3, %v2510_v8  ;;  %v2511_v38 = vmul.f32 %v3483_v59, %v2509_v44 }
0x13fd   :  { %2516 = vadd.xlane.f32.xlu0 %v2514_v61  ;;  %v2515_v25 = vadd.f32 %v2513_v22, %v2511_v38 }
0x13ff   :  { %2518 = vadd.xlane.f32.xlu1 %v2515_v25 }
0x148a   :  { %v2517_v52 = vpop.xlane.xlu0 %2516 }
0x148b   :  { %v2520_v12 = vmul.f32 0.0078125, %v2517_v52 }
0x148c   :  { %v2519_v16 = vpop.xlane.xlu1 %2518 }
0x148d   :  { %v2522_v63 = vsub.f32 %v2514_v61, %v2520_v12  ;;  %v2521_v19 = vmul.f32 0.0078125, %v2519_v16 }
0x148f   :  { %v2523_v10 = vsub.f32 %v2515_v25, %v2521_v19  ;;  %v2524_v23 = vmul.f32 %v2522_v63, %v2522_v63 }
0x1491   :  { %2526 = vadd.xlane.f32.xlu0 %v2524_v23  ;;  %v2525_v40 = vmul.f32 %v2523_v10, %v2523_v10 }
0x1493   :  { %2528 = vadd.xlane.f32.xlu1 %v2525_v40 }
0x151e   :  { %v2527_v4 = vpop.xlane.xlu0 %2526 }
0x151f   :  { %v2530_v55 = vmul.f32 0.0078125, %v2527_v4 }
0x1520   :  { %v2529_v31 = vpop.xlane.xlu1 %2528 }
0x1521   :  { %v2532_v21 = vadd.f32 1e-05, %v2530_v55  ;;  %v2531_v7 = vmul.f32 0.0078125, %v2529_v31 }
0x1523   :  { %3484 = vrsqrt.f32 %v2532_v21  ;;  %v2533_v30 = vadd.f32 1e-05, %v2531_v7 }
0x1525   :  { %3486 = vrsqrt.f32 %v2533_v30 }
0x152d   :  { %v3485_v11 = vpop.eup %3484 }
0x152e   :  { %v2536_v13 = vmul.f32 %v3485_v11, %v2522_v63 }
0x152f   :  { %v3487_v49 = vpop.eup %3486 }
0x1530   :  { %v2537_v27 = vmul.f32 %v3487_v49, %v2523_v10  ;;  %v2538_v54 = vmul.f32 %v3497_v34, %v2536_v13 }
0x1532   :  { %v2539_v26 = vmul.f32 %v3497_v34, %v2537_v27  ;;  %v2540_v47 = vadd.f32 %v3498_v29, %v2538_v54 }
0x1534   :  { %v2541_v46 = vadd.f32 %v3498_v29, %v2539_v26 }
0x1536   :  { %v2542_v39 = vpack.c.bf16 %v2541_v46, %v2540_v47 }
0x1538   :  { %3274 = vmatmul.mubr.bf16.vlgmr.msra.gmra.mrb[40].mxu1 %v2542_v39 }
0x160b   :  { %v2577_v5 = vpop.f32.mrb[40].mxu1 }
0x160c   :  { %v2578_v36 = vadd.f32 %v3499_v42, %v2577_v5  ;;  %v3275_v37 = vpop.f32.mrb[41].mxu1 }
0x160d   :  { %v2580_v32 = vpop.f32.mrb[42].mxu1 }
0x160e   :  { %v2581_v17 = vadd.f32 %v3499_v42, %v2580_v32  ;;  %v3276_v43 = vpop.f32.mrb[43].mxu1  ;;  %v2584_v50 = vmax.f32 %v2578_v36, 0.0 }
0x1610   :  { %v2585_v53 = vmax.f32 %v2581_v17, 0.0 }
0x1612   :  { %v2586_v2 = vpack.c.bf16 %v2585_v53, %v2584_v50 }
0x1614   :  { %3294 = vmatmul.mubr.bf16.vlgmr.msra.gmra.mrb[80].mxu0 %v2586_v2 }
0x16e7   :  { %v2621_v60 = vpop.f32.mrb[80].mxu0 }
0x16e8   :  { %v2628_v0 = vadd.f32 %v2621_v60, %v2540_v47  ;;  %v3295_v51 = vpop.f32.mrb[81].mxu0 }
0x16e9   :  { %v2624_v20 = vpop.f32.mrb[82].mxu0 }
0x16ea   :  { %v2630_v6 = vadd.f32 %v3500_v58, %v2628_v0  ;;  %v2629_v15 = vadd.f32 %v2624_v20, %v2541_v46  ;;  %v3296_v24 = vpop.f32.mrb[83].mxu0 }
0x16ec   :  { %2632 = vst [vmem:[#allocation11] sm:$0xff] %v2630_v6  ;;  %v2631_v28 = vadd.f32 %v3500_v58, %v2629_v15 }
0x16ee   :  { %2633 = vst [vmem:[#allocation11 + $0x8] sm:$0xff] %v2631_v28 }
0x16ef   :  { %3622 = shalt.err (!%p3619_p2)
}
0x16f0   :  { %s3623_s18 = scalar_lea.hbm %s4538_s6, 256 }
0x16f1   :  { %p3624_p3 = scmp.ne.s32.totalorder %s4538_s6, %s3623_s18  ;;  %p3627_p4 = scmp.lt.u32.totalorder %s3623_s18, %s4538_s6 }
0x16f3   :  { %p3629_p5 = pnand %p3627_p4, %p3624_p3 }
0x16f5   :  { %3632 = shalt.err (!%p3629_p5)
}
0x16f6   :  { %2645 = dma.vmem_to_hbm [thread:$0]  %s2640_s4, 256, %s4538_s6, [#allocation4], %s3643_s9, %s3643_s9, %s3644_s10  }
0x16f7   :  { %3639 = dma.done.wait [#allocation4], 256  }
0x16f8   :  { %3640 = vsyncadd [#allocation4], 4294967040 }
0x16f9   :  { %2649 = vsyncpa [#allocation3], 1 }
0x16fa   :  { %2650 = vsyncpa [#allocation6], 1 }
0x16fb   :  { %2651 = vsyncpa [#allocation9], 1 }
0x16fc   :  { %2652 = vsyncpa [#allocation4], 1 }

</bundles_post_ra>
